<compile_context>
chip_gen: v6e
topology: v6e:2x2x1
jax: 0.10.0
libtpu: 0.0.40
codegen_flags: <defaults>
</compile_context>

<pallas_src>
import jax
import jax.numpy as jnp
from jax import lax
from jax.experimental import pallas as pl
from jax.experimental.pallas import tpu as pltpu


def _round_up(x, m):
    return (x + m - 1) // m * m


def _bigru_chunk_kernel(len_ref, xh_ref, xt_ref,
                        wih_f_ref, wih_b_ref, bxf_ref, bxb_ref,
                        whh_f_ref, whh_b_ref, bhn_f_ref, bhn_b_ref,
                        out_f_ref, out_b_ref,
                        gxf_ref, gxb_ref, hf_ref, hb_ref):
    """One time-chunk of the fused bidirectional GRU.

    Grid: (NC,) over time chunks ("arbitrary" — hidden-state carry in scratch).
      xh_ref  : (CT*Bp, D)    chunk c of x (forward chain), f32 or bf16
      xt_ref  : (CT*Bp, D)    chunk NC-1-c of x (backward chain)
      wih_*   : (D, 3Hp)      input weights, gate-aligned 128-lane slabs
      bx*     : (1, 3Hp)      b_ih with b_hr/b_hz folded in
      whh_*   : (Hp, 3Hp)     recurrent weights (read at the dot site — no hoist)
      bhn_*   : (1, Hp)       recurrent bias of the n gate
      out_*   : (CT, Bp, Hp)  per-chunk hidden states (fwd / bwd)
      gx*_ref : (CT*Bp, 3Hp)  f32 scratch: per-chunk precomputed x-gates
      h*_ref  : (Bp, Hp)      f32 scratch: hidden-state carry across grid steps
    """
    CT, Bp, Hp = out_f_ref.shape
    c = pl.program_id(0)
    nc = pl.num_programs(0)

    @pl.when(c == 0)
    def _():
        hf_ref[...] = jnp.zeros_like(hf_ref)
        hb_ref[...] = jnp.zeros_like(hb_ref)

    # Per-chunk input projection for both directions (one MXU matmul each,
    # f32 accumulation regardless of x/wih dtype).  Biases pre-folded.
    gxf_ref[...] = (
        jnp.dot(xh_ref[...], wih_f_ref[...], preferred_element_type=jnp.float32)
        + bxf_ref[...])
    gxb_ref[...] = (
        jnp.dot(xt_ref[...], wih_b_ref[...], preferred_element_type=jnp.float32)
        + bxb_ref[...])

    # Loop-invariant small values only (keep vreg pressure low).
    lens = len_ref[...]                                       # (Bp, 1) i32
    bhn_f = jnp.broadcast_to(bhn_f_ref[...], (Bp, Hp))
    bhn_b = jnp.broadcast_to(bhn_b_ref[...], (Bp, Hp))

    t0_f = c * CT                 # global time of fwd chunk start
    t0_b = (nc - 1 - c) * CT      # global time of bwd chunk start

    def cell(gx, h, whh_ref, bhn):
        # PyTorch GRU cell; gx already carries b_ih (+ b_hr, b_hz folded).
        # NOTE: whh is read from its VMEM ref here (vld) rather than hoisted
        # to an SSA value — avoids spilling 96 vregs of loop-invariant weights.
        gh = jnp.dot(h, whh_ref[...], preferred_element_type=jnp.float32)
        r = jax.nn.sigmoid(gx[:, 0:Hp] + gh[:, 0:Hp])
        z = jax.nn.sigmoid(gx[:, Hp:2 * Hp] + gh[:, Hp:2 * Hp])
        n = jnp.tanh(gx[:, 2 * Hp:3 * Hp] + r * (gh[:, 2 * Hp:3 * Hp] + bhn))
        return (1.0 - z) * n + z * h

    def body(tl, carry):
        h_f, h_b = carry
        tlb = CT - 1 - tl

        row_f = pl.multiple_of(tl * Bp, Bp)
        row_b = pl.multiple_of(tlb * Bp, Bp)
        gx_f = gxf_ref[pl.ds(row_f, Bp), :]          # (Bp, 3Hp) fwd gates
        gx_b = gxb_ref[pl.ds(row_b, Bp), :]          # (Bp, 3Hp) bwd gates

        tg_f = t0_f + tl
        tg_b = t0_b + tlb
        valid_f = lens > tg_f                        # (Bp, 1) bool
        valid_b = lens > tg_b

        # Packed-sequence semantics: carry holds on invalid steps (h0 == 0, so
        # the reverse chain effectively starts at len_i - 1 with zero state).
        h_f = jnp.where(valid_f, cell(gx_f, h_f, whh_f_ref, bhn_f), h_f)
        h_b = jnp.where(valid_b, cell(gx_b, h_b, whh_b_ref, bhn_b), h_b)

        # Lane-dense, 128-aligned full-width stores.
        out_f_ref[tl, :, :] = jnp.where(valid_f, h_f, 0.0)
        out_b_ref[tlb, :, :] = jnp.where(valid_b, h_b, 0.0)
        return (h_f, h_b)

    h_f, h_b = lax.fori_loop(0, CT, body, (hf_ref[...], hb_ref[...]),
                             unroll=min(4, CT))
    hf_ref[...] = h_f
    hb_ref[...] = h_b


def _pack_params(params, H, Hp, x_dtype):
    """Repack nn.GRU-style params into gate-aligned, 128-lane-padded slabs."""

    def pad_gate_cols(w):
        # (X, 3H) -> (X, 3Hp) with gate g at columns [g*Hp, g*Hp + H).
        out = jnp.zeros((w.shape[0], 3 * Hp), jnp.float32)
        for g in range(3):
            out = out.at[:, g * Hp:g * Hp + H].set(w[:, g * H:(g + 1) * H])
        return out

    def pack_dir(wih, whh, bih, bhh):
        wih_p = pad_gate_cols(wih).astype(x_dtype)                  # (D, 3Hp)
        whh_p = jnp.zeros((Hp, 3 * Hp), jnp.float32)
        whh_p = whh_p.at[:H, :].set(pad_gate_cols(whh))             # (Hp, 3Hp)
        # Fold b_ih + (b_hr, b_hz) into the x-side bias; keep b_hn separate.
        bx = jnp.concatenate(
            [bih[:, 0:H] + bhh[:, 0:H],
             bih[:, H:2 * H] + bhh[:, H:2 * H],
             bih[:, 2 * H:3 * H]], axis=1)                          # (1, 3H)
        bx_p = pad_gate_cols(bx)                                    # (1, 3Hp)
        bhn_p = jnp.zeros((1, Hp), jnp.float32).at[:, :H].set(bhh[:, 2 * H:3 * H])
        return wih_p, whh_p, bx_p, bhn_p

    fwd = pack_dir(params["wih_f"], params["whh_f"], params["bih_f"], params["bhh_f"])
    bwd = pack_dir(params["wih_b"], params["whh_b"], params["bih_b"], params["bhh_b"])
    return fwd, bwd


def _vmem_limit_bytes(D, Hp, Bp, CT, x_itemsize):
    """Generation-aware VMEM limit derived from the actual buffer sizes."""
    f32 = 4
    g3 = 3 * Hp
    weights = (2 * D * g3 * x_itemsize          # wih_f, wih_b
               + 2 * g3 * f32                   # bx
               + 2 * Hp * g3 * f32              # whh
               + 2 * Hp * f32                   # bhn
               + _round_up(Bp, 8) * 128 * 4)    # lens (tile-padded)
    x_blocks = 2 * 2 * CT * Bp * D * x_itemsize         # 2 streams, double-buffered
    out_blocks = 2 * 2 * CT * Bp * Hp * f32
    scratch = 2 * CT * Bp * g3 * f32 + 2 * Bp * Hp * f32
    needed = weights + x_blocks + out_blocks + scratch + (4 << 20)

    try:
        cap = int(getattr(pltpu.get_tpu_info(), "vmem_capacity_bytes", 64 << 20))
    except Exception:  # pragma: no cover - conservative fallback
        cap = 64 << 20
    if cap >= (128 << 20):            # v5e / v6e: 128 MiB physical
        gen_cap = 100 << 20
    else:                             # v7x: 64 MiB physical, leave headroom
        gen_cap = max(min(cap - (16 << 20), 48 << 20), 16 << 20)
    return int(min(max(needed, 16 << 20), gen_cap))


def document_level_rnn_encoder(inputs, num_nodes, params, max_nodes=None,
                               chunk_t=16, use_bf16_projection=False):
    """inputs: (B, T, D) f32; num_nodes: (B,) int.

    Returns (B, max_nodes, 2H) (max_nodes is a *static* int; defaults to T),
    matching pack_padded_sequence / pad_packed_sequence(batch_first=True).
    """
    B, T, D = inputs.shape
    H = params["whh_f"].shape[0]
    Hp = _round_up(max(H, 128), 128)
    Bp = _round_up(max(B, 8), 8)

    CT = max(2, int(chunk_t) + (int(chunk_t) % 2))   # even chunk (bf16 packing)
    Tp = _round_up(T, CT)
    NC = Tp // CT

    x_dtype = jnp.bfloat16 if use_bf16_projection else jnp.float32

    # Time-major, batch padded to a multiple of 8 sublanes, time padded to a
    # multiple of CT, flattened so each chunk is a (CT*Bp, D) matmul LHS.
    x_tm = jnp.transpose(inputs, (1, 0, 2)).astype(jnp.float32)      # (T, B, D)
    x_tm = jnp.pad(x_tm, ((0, Tp - T), (0, Bp - B), (0, 0)))
    x2d = x_tm.reshape(Tp * Bp, D).astype(x_dtype)

    lens = jnp.zeros((Bp, 1), jnp.int32).at[:B, 0].set(
        jnp.asarray(num_nodes, jnp.int32))

    (wih_f, whh_f, bx_f, bhn_f), (wih_b, whh_b, bx_b, bhn_b) = _pack_params(
        params, H, Hp, x_dtype)

    G3 = 3 * Hp
    const2 = lambda c: (0, 0)
    in_specs = [
        pl.BlockSpec((Bp, 1), const2),                           # lens
        pl.BlockSpec((CT * Bp, D), lambda c: (c, 0)),            # x head chunk (fwd)
        pl.BlockSpec((CT * Bp, D), lambda c: (NC - 1 - c, 0)),   # x tail chunk (bwd)
        pl.BlockSpec((D, G3), const2),                           # wih_f
        pl.BlockSpec((D, G3), const2),                           # wih_b
        pl.BlockSpec((1, G3), const2),                           # bx_f
        pl.BlockSpec((1, G3), const2),                           # bx_b
        pl.BlockSpec((Hp, G3), const2),                          # whh_f
        pl.BlockSpec((Hp, G3), const2),                          # whh_b
        pl.BlockSpec((1, Hp), const2),                           # bhn_f
        pl.BlockSpec((1, Hp), const2),                           # bhn_b
    ]
    out_specs = [
        pl.BlockSpec((CT, Bp, Hp), lambda c: (c, 0, 0)),          # fwd chunks
        pl.BlockSpec((CT, Bp, Hp), lambda c: (NC - 1 - c, 0, 0)), # bwd chunks
    ]

    out_f, out_b = pl.pallas_call(
        _bigru_chunk_kernel,
        out_shape=(jax.ShapeDtypeStruct((Tp, Bp, Hp), jnp.float32),
                   jax.ShapeDtypeStruct((Tp, Bp, Hp), jnp.float32)),
        grid=(NC,),
        in_specs=in_specs,
        out_specs=out_specs,
        scratch_shapes=[
            pltpu.VMEM((CT * Bp, G3), jnp.float32),   # gx fwd chunk
            pltpu.VMEM((CT * Bp, G3), jnp.float32),   # gx bwd chunk
            pltpu.VMEM((Bp, Hp), jnp.float32),        # h_f carry
            pltpu.VMEM((Bp, Hp), jnp.float32),        # h_b carry
        ],
        compiler_params=pltpu.CompilerParams(
            dimension_semantics=("arbitrary",),
            vmem_limit_bytes=_vmem_limit_bytes(
                D, Hp, Bp, CT, jnp.dtype(x_dtype).itemsize)),
    )(lens, x2d, x2d, wih_f, wih_b, bx_f, bx_b, whh_f, whh_b, bhn_f, bhn_b)

    if max_nodes is None:
        max_nodes = T  # static; caller may slice to max(num_nodes) itself

    # Slice valid T steps / B rows / H lanes BEFORE transposing so XLA never
    # moves padded lanes through HBM.
    out_f = out_f[:max_nodes, :B, :H]
    out_b = out_b[:max_nodes, :B, :H]
    out = jnp.concatenate([jnp.transpose(out_f, (1, 0, 2)),
                           jnp.transpose(out_b, (1, 0, 2))], axis=-1)
    return out                                                   # (B, max_nodes, 2H)


def init_gru_params(key, in_dim, hidden_dim):
    """Deterministic init mirroring nn.GRU parameter shapes (stored transposed)."""
    H = hidden_dim
    bound = 1.0 / jnp.sqrt(jnp.float32(H))
    ks = jax.random.split(key, 8)

    def u(k, shape):
        return jax.random.uniform(k, shape, jnp.float32, -bound, bound)

    return {
        "wih_f": u(ks[0], (in_dim, 3 * H)),
        "whh_f": u(ks[1], (H, 3 * H)),
        "bih_f": u(ks[2], (1, 3 * H)),
        "bhh_f": u(ks[3], (1, 3 * H)),
        "wih_b": u(ks[4], (in_dim, 3 * H)),
        "whh_b": u(ks[5], (H, 3 * H)),
        "bih_b": u(ks[6], (1, 3 * H)),
        "bhh_b": u(ks[7], (1, 3 * H)),
    }


def _reference_bigru(inputs, num_nodes, params):
    """Pure-JAX reference with identical packed-sequence semantics."""
    B, T, D = inputs.shape
    H = params["whh_f"].shape[0]
    lens = jnp.asarray(num_nodes, jnp.int32)

    def cell(x_t, h, wih, whh, bih, bhh, valid):
        gx = x_t @ wih + bih
        gh = h @ whh + bhh
        r = jax.nn.sigmoid(gx[:, :H] + gh[:, :H])
        z = jax.nn.sigmoid(gx[:, H:2 * H] + gh[:, H:2 * H])
        n = jnp.tanh(gx[:, 2 * H:] + r * gh[:, 2 * H:])
        h_new = (1 - z) * n + z * h
        return jnp.where(valid, h_new, h)

    out_fw = []
    h = jnp.zeros((B, H), jnp.float32)
    for t in range(T):
        valid = (lens > t)[:, None]
        h = cell(inputs[:, t], h, params["wih_f"], params["whh_f"],
                 params["bih_f"], params["bhh_f"], valid)
        out_fw.append(jnp.where(valid, h, 0.0))
    out_bw = [None] * T
    h = jnp.zeros((B, H), jnp.float32)
    for t in range(T - 1, -1, -1):
        valid = (lens > t)[:, None]
        h = cell(inputs[:, t], h, params["wih_b"], params["whh_b"],
                 params["bih_b"], params["bhh_b"], valid)
        out_bw[t] = jnp.where(valid, h, 0.0)
    out = jnp.concatenate(
        [jnp.stack(out_fw, axis=1), jnp.stack(out_bw, axis=1)], axis=-1)
    return out[:, : int(jnp.max(lens)), :]


if __name__ == "__main__":
    B, T, D, H = 2, 8, 32, 32          # batch=2, max_num_nodes=8, in_dim=hidden_dim=32
    key = jax.random.PRNGKey(0)
    k_x, k_p = jax.random.split(key)

    inputs = jax.random.normal(k_x, (B, T, D), dtype=jnp.float32)
    num_nodes = jnp.array([8, 5], dtype=jnp.int32)   # variable-length documents
    params = init_gru_params(k_p, D, H)

    t_out = int(num_nodes.max())                     # static, outside any jit
    ref = jax.block_until_ready(_reference_bigru(inputs, num_nodes, params))

    # f32 path (strict correctness gate); chunk_t=4 -> 2 grid steps so the
    # chunked pipeline and the cross-chunk hidden-state carry are exercised.
    out = document_level_rnn_encoder(inputs, num_nodes, params,
                                     max_nodes=t_out, chunk_t=4,
                                     use_bf16_projection=False)
    out = jax.block_until_ready(out)
    assert out.shape == (B, t_out, 2 * H), out.shape
    assert jnp.allclose(out, ref, atol=1e-3, rtol=1e-3), \
        float(jnp.max(jnp.abs(out - ref)))

    # bf16 input-projection path (v6e/v7x full-rate MXU); looser tolerance.
    out_bf16 = document_level_rnn_encoder(inputs, num_nodes, params,
                                          max_nodes=t_out, chunk_t=4,
                                          use_bf16_projection=True)
    out_bf16 = jax.block_until_ready(out_bf16)
    assert out_bf16.shape == (B, t_out, 2 * H), out_bf16.shape
    assert jnp.allclose(out_bf16, ref, atol=5e-2, rtol=5e-2), \
        float(jnp.max(jnp.abs(out_bf16 - ref)))

    print("KERNEL_OK")
</pallas_src>

<mosaic_0001>
module attributes {stable_mosaic.version = 11 : i64} {
  func.func @_bigru_chunk_kernel(%arg0: i32, %arg1: memref<8x1xi32, #tpu.memory_space<vmem>>, %arg2: memref<32x32xf32, #tpu.memory_space<vmem>>, %arg3: memref<32x32xf32, #tpu.memory_space<vmem>>, %arg4: memref<32x384xf32, #tpu.memory_space<vmem>>, %arg5: memref<32x384xf32, #tpu.memory_space<vmem>>, %arg6: memref<1x384xf32, #tpu.memory_space<vmem>>, %arg7: memref<1x384xf32, #tpu.memory_space<vmem>>, %arg8: memref<128x384xf32, #tpu.memory_space<vmem>>, %arg9: memref<128x384xf32, #tpu.memory_space<vmem>>, %arg10: memref<1x128xf32, #tpu.memory_space<vmem>>, %arg11: memref<1x128xf32, #tpu.memory_space<vmem>>, %arg12: memref<4x8x128xf32, #tpu.memory_space<vmem>>, %arg13: memref<4x8x128xf32, #tpu.memory_space<vmem>>, %arg14: memref<32x384xf32, #tpu.memory_space<vmem>>, %arg15: memref<32x384xf32, #tpu.memory_space<vmem>>, %arg16: memref<8x128xf32, #tpu.memory_space<vmem>>, %arg17: memref<8x128xf32, #tpu.memory_space<vmem>>) attributes {dimension_semantics = [#tpu.dimension_semantics<arbitrary>], iteration_bounds = array<i64: 2>, scalar_prefetch = 0 : i64, scratch_operands = 4 : i64, tpu.core_type = #tpu.core_type<tc>, window_params = [{pipeline_mode = #tpu.pipeline_mode<synchronous>, transform_indices = @transform_0, window_bounds = array<i64: 8, 1>}, {transform_indices = @transform_1, window_bounds = array<i64: 32, 32>}, {transform_indices = @transform_2, window_bounds = array<i64: 32, 32>}, {pipeline_mode = #tpu.pipeline_mode<synchronous>, transform_indices = @transform_3, window_bounds = array<i64: 32, 384>}, {pipeline_mode = #tpu.pipeline_mode<synchronous>, transform_indices = @transform_4, window_bounds = array<i64: 32, 384>}, {pipeline_mode = #tpu.pipeline_mode<synchronous>, transform_indices = @transform_5, window_bounds = array<i64: 1, 384>}, {pipeline_mode = #tpu.pipeline_mode<synchronous>, transform_indices = @transform_6, window_bounds = array<i64: 1, 384>}, {pipeline_mode = #tpu.pipeline_mode<synchronous>, transform_indices = @transform_7, window_bounds = array<i64: 128, 384>}, {pipeline_mode = #tpu.pipeline_mode<synchronous>, transform_indices = @transform_8, window_bounds = array<i64: 128, 384>}, {pipeline_mode = #tpu.pipeline_mode<synchronous>, transform_indices = @transform_9, window_bounds = array<i64: 1, 128>}, {pipeline_mode = #tpu.pipeline_mode<synchronous>, transform_indices = @transform_10, window_bounds = array<i64: 1, 128>}, {transform_indices = @transform_11, window_bounds = array<i64: 4, 8, 128>}, {transform_indices = @transform_12, window_bounds = array<i64: 4, 8, 128>}]} {
    %c0_i32 = arith.constant 0 : i32
    %0 = arith.cmpi eq, %arg0, %c0_i32 : i32
    %1 = arith.extui %0 : i1 to i32
    %c0_i32_0 = arith.constant 0 : i32
    %2 = arith.cmpi ne, %1, %c0_i32_0 : i32
    scf.if %2 {
      %cst_126 = arith.constant 0.000000e+00 : f32
      %411 = vector.broadcast %cst_126 : f32 to vector<8x128xf32>
      %c0_127 = arith.constant 0 : index
      %c0_128 = arith.constant 0 : index
      %412 = vector.load %arg16[%c0_127, %c0_128] : memref<8x128xf32, #tpu.memory_space<vmem>>, vector<8x128xf32>
      tpu.vector_store %arg16[%c0_127, %c0_128], %411 {strides = array<i32>} : memref<8x128xf32, #tpu.memory_space<vmem>>, vector<8x128xf32>,
      %cst_129 = arith.constant 0.000000e+00 : f32
      %413 = vector.broadcast %cst_129 : f32 to vector<8x128xf32>
      %c0_130 = arith.constant 0 : index
      %c0_131 = arith.constant 0 : index
      %414 = vector.load %arg17[%c0_130, %c0_131] : memref<8x128xf32, #tpu.memory_space<vmem>>, vector<8x128xf32>
      tpu.vector_store %arg17[%c0_130, %c0_131], %413 {strides = array<i32>} : memref<8x128xf32, #tpu.memory_space<vmem>>, vector<8x128xf32>,
    } else {
    }
    %c0 = arith.constant 0 : index
    %c0_1 = arith.constant 0 : index
    %3 = vector.load %arg2[%c0, %c0_1] : memref<32x32xf32, #tpu.memory_space<vmem>>, vector<32x32xf32>
    %c0_2 = arith.constant 0 : index
    %c0_3 = arith.constant 0 : index
    %4 = vector.load %arg4[%c0_2, %c0_3] : memref<32x384xf32, #tpu.memory_space<vmem>>, vector<32x384xf32>
    %cst = arith.constant dense<0.000000e+00> : vector<32x384xf32>
    %5 = tpu.matmul %3, %4, %cst {dimension_numbers = #tpu.dot_dimension_numbers<[1], [0], [0], [1], [0, 0, 1, 1], [], []>} : vector<32x32xf32>, vector<32x384xf32>, vector<32x384xf32> -> vector<32x384xf32>
    %c0_4 = arith.constant 0 : index
    %c0_5 = arith.constant 0 : index
    %6 = vector.load %arg6[%c0_4, %c0_5] : memref<1x384xf32, #tpu.memory_space<vmem>>, vector<1x384xf32>
    %7 = vector.broadcast %6 : vector<1x384xf32> to vector<32x384xf32>
    %8 = arith.addf %5, %7 : vector<32x384xf32>
    %c0_6 = arith.constant 0 : index
    %c0_7 = arith.constant 0 : index
    %9 = vector.load %arg14[%c0_6, %c0_7] : memref<32x384xf32, #tpu.memory_space<vmem>>, vector<32x384xf32>
    tpu.vector_store %arg14[%c0_6, %c0_7], %8 {strides = array<i32>} : memref<32x384xf32, #tpu.memory_space<vmem>>, vector<32x384xf32>,
    %c0_8 = arith.constant 0 : index
    %c0_9 = arith.constant 0 : index
    %10 = vector.load %arg3[%c0_8, %c0_9] : memref<32x32xf32, #tpu.memory_space<vmem>>, vector<32x32xf32>
    %c0_10 = arith.constant 0 : index
    %c0_11 = arith.constant 0 : index
    %11 = vector.load %arg5[%c0_10, %c0_11] : memref<32x384xf32, #tpu.memory_space<vmem>>, vector<32x384xf32>
    %cst_12 = arith.constant dense<0.000000e+00> : vector<32x384xf32>
    %12 = tpu.matmul %10, %11, %cst_12 {dimension_numbers = #tpu.dot_dimension_numbers<[1], [0], [0], [1], [0, 0, 1, 1], [], []>} : vector<32x32xf32>, vector<32x384xf32>, vector<32x384xf32> -> vector<32x384xf32>
    %c0_13 = arith.constant 0 : index
    %c0_14 = arith.constant 0 : index
    %13 = vector.load %arg7[%c0_13, %c0_14] : memref<1x384xf32, #tpu.memory_space<vmem>>, vector<1x384xf32>
    %14 = vector.broadcast %13 : vector<1x384xf32> to vector<32x384xf32>
    %15 = arith.addf %12, %14 : vector<32x384xf32>
    %c0_15 = arith.constant 0 : index
    %c0_16 = arith.constant 0 : index
    %16 = vector.load %arg15[%c0_15, %c0_16] : memref<32x384xf32, #tpu.memory_space<vmem>>, vector<32x384xf32>
    tpu.vector_store %arg15[%c0_15, %c0_16], %15 {strides = array<i32>} : memref<32x384xf32, #tpu.memory_space<vmem>>, vector<32x384xf32>,
    %c0_17 = arith.constant 0 : index
    %c0_18 = arith.constant 0 : index
    %17 = vector.load %arg1[%c0_17, %c0_18] : memref<8x1xi32, #tpu.memory_space<vmem>>, vector<8x1xi32>
    %c0_19 = arith.constant 0 : index
    %c0_20 = arith.constant 0 : index
    %18 = vector.load %arg10[%c0_19, %c0_20] : memref<1x128xf32, #tpu.memory_space<vmem>>, vector<1x128xf32>
    %19 = vector.shape_cast %18 : vector<1x128xf32> to vector<1x128xf32>
    %20 = vector.broadcast %19 : vector<1x128xf32> to vector<8x128xf32>
    %c0_21 = arith.constant 0 : index
    %c0_22 = arith.constant 0 : index
    %21 = vector.load %arg11[%c0_21, %c0_22] : memref<1x128xf32, #tpu.memory_space<vmem>>, vector<1x128xf32>
    %22 = vector.shape_cast %21 : vector<1x128xf32> to vector<1x128xf32>
    %23 = vector.broadcast %22 : vector<1x128xf32> to vector<8x128xf32>
    %c4_i32 = arith.constant 4 : i32
    %24 = arith.muli %arg0, %c4_i32 : i32
    %c1_i32 = arith.constant 1 : i32
    %25 = arith.subi %c1_i32, %arg0 : i32
    %c4_i32_23 = arith.constant 4 : i32
    %26 = arith.muli %25, %c4_i32_23 : i32
    %c0_24 = arith.constant 0 : index
    %c0_25 = arith.constant 0 : index
    %27 = vector.load %arg16[%c0_24, %c0_25] : memref<8x128xf32, #tpu.memory_space<vmem>>, vector<8x128xf32>
    %c0_26 = arith.constant 0 : index
    %c0_27 = arith.constant 0 : index
    %28 = vector.load %arg17[%c0_26, %c0_27] : memref<8x128xf32, #tpu.memory_space<vmem>>, vector<8x128xf32>
    %c0_i32_28 = arith.constant 0 : i32
    %c3_i32 = arith.constant 3 : i32
    %29 = arith.subi %c3_i32, %c0_i32_28 : i32
    %c8_i32 = arith.constant 8 : i32
    %30 = arith.muli %c0_i32_28, %c8_i32 : i32
    %31 = tpu.assume_multiple %30, 8 : i32
    %c8_i32_29 = arith.constant 8 : i32
    %32 = arith.muli %29, %c8_i32_29 : i32
    %33 = tpu.assume_multiple %32, 8 : i32
    %34 = arith.index_cast %31 : i32 to index
    %c0_30 = arith.constant 0 : index
    %35 = vector.load %arg14[%34, %c0_30] : memref<32x384xf32, #tpu.memory_space<vmem>>, vector<8x384xf32>
    %36 = arith.index_cast %33 : i32 to index
    %c0_31 = arith.constant 0 : index
    %37 = vector.load %arg15[%36, %c0_31] : memref<32x384xf32, #tpu.memory_space<vmem>>, vector<8x384xf32>
    %38 = arith.addi %24, %c0_i32_28 : i32
    %39 = arith.addi %26, %29 : i32
    %40 = vector.broadcast %38 : i32 to vector<8x1xi32>
    %41 = arith.cmpi sgt, %17, %40 : vector<8x1xi32>
    %42 = vector.broadcast %39 : i32 to vector<8x1xi32>
    %43 = arith.cmpi sgt, %17, %42 : vector<8x1xi32>
    %c0_32 = arith.constant 0 : index
    %c0_33 = arith.constant 0 : index
    %44 = vector.load %arg8[%c0_32, %c0_33] : memref<128x384xf32, #tpu.memory_space<vmem>>, vector<128x384xf32>
    %cst_34 = arith.constant dense<0.000000e+00> : vector<8x384xf32>
    %45 = tpu.matmul %27, %44, %cst_34 {dimension_numbers = #tpu.dot_dimension_numbers<[1], [0], [0], [1], [0, 0, 1, 1], [], []>} : vector<8x128xf32>, vector<128x384xf32>, vector<8x384xf32> -> vector<8x384xf32>
    %46 = vector.extract_strided_slice %35 {offsets = [0, 0], sizes = [8, 128], strides = [1, 1]} : vector<8x384xf32> to vector<8x128xf32>
    %47 = vector.extract_strided_slice %45 {offsets = [0, 0], sizes = [8, 128], strides = [1, 1]} : vector<8x384xf32> to vector<8x128xf32>
    %48 = arith.addf %46, %47 : vector<8x128xf32>
    %49 = arith.negf %48 : vector<8x128xf32>
    %50 = math.exp %49 : vector<8x128xf32>
    %cst_35 = arith.constant 1.000000e+00 : f32
    %51 = vector.broadcast %cst_35 : f32 to vector<8x128xf32>
    %52 = arith.addf %51, %50 : vector<8x128xf32>
    %53 = arith.divf %51, %52 : vector<8x128xf32>
    %54 = vector.extract_strided_slice %35 {offsets = [0, 128], sizes = [8, 128], strides = [1, 1]} : vector<8x384xf32> to vector<8x128xf32>
    %55 = vector.extract_strided_slice %45 {offsets = [0, 128], sizes = [8, 128], strides = [1, 1]} : vector<8x384xf32> to vector<8x128xf32>
    %56 = arith.addf %54, %55 : vector<8x128xf32>
    %57 = arith.negf %56 : vector<8x128xf32>
    %58 = math.exp %57 : vector<8x128xf32>
    %cst_36 = arith.constant 1.000000e+00 : f32
    %59 = vector.broadcast %cst_36 : f32 to vector<8x128xf32>
    %60 = arith.addf %59, %58 : vector<8x128xf32>
    %61 = arith.divf %59, %60 : vector<8x128xf32>
    %62 = vector.extract_strided_slice %35 {offsets = [0, 256], sizes = [8, 128], strides = [1, 1]} : vector<8x384xf32> to vector<8x128xf32>
    %63 = vector.extract_strided_slice %45 {offsets = [0, 256], sizes = [8, 128], strides = [1, 1]} : vector<8x384xf32> to vector<8x128xf32>
    %64 = arith.addf %63, %20 : vector<8x128xf32>
    %65 = arith.mulf %53, %64 : vector<8x128xf32>
    %66 = arith.addf %62, %65 : vector<8x128xf32>
    %67 = math.tanh %66 : vector<8x128xf32>
    %cst_37 = arith.constant 1.000000e+00 : f32
    %68 = vector.broadcast %cst_37 : f32 to vector<8x128xf32>
    %69 = arith.subf %68, %61 : vector<8x128xf32>
    %70 = arith.mulf %69, %67 : vector<8x128xf32>
    %71 = arith.mulf %61, %27 : vector<8x128xf32>
    %72 = arith.addf %70, %71 : vector<8x128xf32>
    %73 = vector.shape_cast %41 : vector<8x1xi1> to vector<8x1xi1>
    %74 = vector.broadcast %73 : vector<8x1xi1> to vector<8x128xi1>
    %75 = arith.select %74, %72, %27 : vector<8x128xi1>, vector<8x128xf32>
    %c0_38 = arith.constant 0 : index
    %c0_39 = arith.constant 0 : index
    %76 = vector.load %arg9[%c0_38, %c0_39] : memref<128x384xf32, #tpu.memory_space<vmem>>, vector<128x384xf32>
    %cst_40 = arith.constant dense<0.000000e+00> : vector<8x384xf32>
    %77 = tpu.matmul %28, %76, %cst_40 {dimension_numbers = #tpu.dot_dimension_numbers<[1], [0], [0], [1], [0, 0, 1, 1], [], []>} : vector<8x128xf32>, vector<128x384xf32>, vector<8x384xf32> -> vector<8x384xf32>
    %78 = vector.extract_strided_slice %37 {offsets = [0, 0], sizes = [8, 128], strides = [1, 1]} : vector<8x384xf32> to vector<8x128xf32>
    %79 = vector.extract_strided_slice %77 {offsets = [0, 0], sizes = [8, 128], strides = [1, 1]} : vector<8x384xf32> to vector<8x128xf32>
    %80 = arith.addf %78, %79 : vector<8x128xf32>
    %81 = arith.negf %80 : vector<8x128xf32>
    %82 = math.exp %81 : vector<8x128xf32>
    %cst_41 = arith.constant 1.000000e+00 : f32
    %83 = vector.broadcast %cst_41 : f32 to vector<8x128xf32>
    %84 = arith.addf %83, %82 : vector<8x128xf32>
    %85 = arith.divf %83, %84 : vector<8x128xf32>
    %86 = vector.extract_strided_slice %37 {offsets = [0, 128], sizes = [8, 128], strides = [1, 1]} : vector<8x384xf32> to vector<8x128xf32>
    %87 = vector.extract_strided_slice %77 {offsets = [0, 128], sizes = [8, 128], strides = [1, 1]} : vector<8x384xf32> to vector<8x128xf32>
    %88 = arith.addf %86, %87 : vector<8x128xf32>
    %89 = arith.negf %88 : vector<8x128xf32>
    %90 = math.exp %89 : vector<8x128xf32>
    %cst_42 = arith.constant 1.000000e+00 : f32
    %91 = vector.broadcast %cst_42 : f32 to vector<8x128xf32>
    %92 = arith.addf %91, %90 : vector<8x128xf32>
    %93 = arith.divf %91, %92 : vector<8x128xf32>
    %94 = vector.extract_strided_slice %37 {offsets = [0, 256], sizes = [8, 128], strides = [1, 1]} : vector<8x384xf32> to vector<8x128xf32>
    %95 = vector.extract_strided_slice %77 {offsets = [0, 256], sizes = [8, 128], strides = [1, 1]} : vector<8x384xf32> to vector<8x128xf32>
    %96 = arith.addf %95, %23 : vector<8x128xf32>
    %97 = arith.mulf %85, %96 : vector<8x128xf32>
    %98 = arith.addf %94, %97 : vector<8x128xf32>
    %99 = math.tanh %98 : vector<8x128xf32>
    %cst_43 = arith.constant 1.000000e+00 : f32
    %100 = vector.broadcast %cst_43 : f32 to vector<8x128xf32>
    %101 = arith.subf %100, %93 : vector<8x128xf32>
    %102 = arith.mulf %101, %99 : vector<8x128xf32>
    %103 = arith.mulf %93, %28 : vector<8x128xf32>
    %104 = arith.addf %102, %103 : vector<8x128xf32>
    %105 = vector.shape_cast %43 : vector<8x1xi1> to vector<8x1xi1>
    %106 = vector.broadcast %105 : vector<8x1xi1> to vector<8x128xi1>
    %107 = arith.select %106, %104, %28 : vector<8x128xi1>, vector<8x128xf32>
    %cst_44 = arith.constant 0.000000e+00 : f32
    %108 = vector.shape_cast %41 : vector<8x1xi1> to vector<8x1xi1>
    %109 = vector.broadcast %108 : vector<8x1xi1> to vector<8x128xi1>
    %110 = vector.broadcast %cst_44 : f32 to vector<8x128xf32>
    %111 = arith.select %109, %75, %110 : vector<8x128xi1>, vector<8x128xf32>
    %112 = arith.index_cast %c0_i32_28 : i32 to index
    %c0_45 = arith.constant 0 : index
    %c0_46 = arith.constant 0 : index
    %113 = vector.load %arg12[%112, %c0_45, %c0_46] : memref<4x8x128xf32, #tpu.memory_space<vmem>>, vector<1x8x128xf32>
    %114 = vector.shape_cast %113 : vector<1x8x128xf32> to vector<8x128xf32>
    %115 = vector.shape_cast %111 : vector<8x128xf32> to vector<1x8x128xf32>
    tpu.vector_store %arg12[%112, %c0_45, %c0_46], %115 {strides = array<i32>} : memref<4x8x128xf32, #tpu.memory_space<vmem>>, vector<1x8x128xf32>,
    %cst_47 = arith.constant 0.000000e+00 : f32
    %116 = vector.shape_cast %43 : vector<8x1xi1> to vector<8x1xi1>
    %117 = vector.broadcast %116 : vector<8x1xi1> to vector<8x128xi1>
    %118 = vector.broadcast %cst_47 : f32 to vector<8x128xf32>
    %119 = arith.select %117, %107, %118 : vector<8x128xi1>, vector<8x128xf32>
    %120 = arith.index_cast %29 : i32 to index
    %c0_48 = arith.constant 0 : index
    %c0_49 = arith.constant 0 : index
    %121 = vector.load %arg13[%120, %c0_48, %c0_49] : memref<4x8x128xf32, #tpu.memory_space<vmem>>, vector<1x8x128xf32>
    %122 = vector.shape_cast %121 : vector<1x8x128xf32> to vector<8x128xf32>
    %123 = vector.shape_cast %119 : vector<8x128xf32> to vector<1x8x128xf32>
    tpu.vector_store %arg13[%120, %c0_48, %c0_49], %123 {strides = array<i32>} : memref<4x8x128xf32, #tpu.memory_space<vmem>>, vector<1x8x128xf32>,
    %c1_i32_50 = arith.constant 1 : i32
    %c3_i32_51 = arith.constant 3 : i32
    %124 = arith.subi %c3_i32_51, %c1_i32_50 : i32
    %c8_i32_52 = arith.constant 8 : i32
    %125 = arith.muli %c1_i32_50, %c8_i32_52 : i32
    %126 = tpu.assume_multiple %125, 8 : i32
    %c8_i32_53 = arith.constant 8 : i32
    %127 = arith.muli %124, %c8_i32_53 : i32
    %128 = tpu.assume_multiple %127, 8 : i32
    %129 = arith.index_cast %126 : i32 to index
    %c0_54 = arith.constant 0 : index
    %130 = vector.load %arg14[%129, %c0_54] : memref<32x384xf32, #tpu.memory_space<vmem>>, vector<8x384xf32>
    %131 = arith.index_cast %128 : i32 to index
    %c0_55 = arith.constant 0 : index
    %132 = vector.load %arg15[%131, %c0_55] : memref<32x384xf32, #tpu.memory_space<vmem>>, vector<8x384xf32>
    %133 = arith.addi %24, %c1_i32_50 : i32
    %134 = arith.addi %26, %124 : i32
    %135 = vector.broadcast %133 : i32 to vector<8x1xi32>
    %136 = arith.cmpi sgt, %17, %135 : vector<8x1xi32>
    %137 = vector.broadcast %134 : i32 to vector<8x1xi32>
    %138 = arith.cmpi sgt, %17, %137 : vector<8x1xi32>
    %c0_56 = arith.constant 0 : index
    %c0_57 = arith.constant 0 : index
    %139 = vector.load %arg8[%c0_56, %c0_57] : memref<128x384xf32, #tpu.memory_space<vmem>>, vector<128x384xf32>
    %cst_58 = arith.constant dense<0.000000e+00> : vector<8x384xf32>
    %140 = tpu.matmul %75, %139, %cst_58 {dimension_numbers = #tpu.dot_dimension_numbers<[1], [0], [0], [1], [0, 0, 1, 1], [], []>} : vector<8x128xf32>, vector<128x384xf32>, vector<8x384xf32> -> vector<8x384xf32>
    %141 = vector.extract_strided_slice %130 {offsets = [0, 0], sizes = [8, 128], strides = [1, 1]} : vector<8x384xf32> to vector<8x128xf32>
    %142 = vector.extract_strided_slice %140 {offsets = [0, 0], sizes = [8, 128], strides = [1, 1]} : vector<8x384xf32> to vector<8x128xf32>
    %143 = arith.addf %141, %142 : vector<8x128xf32>
    %144 = arith.negf %143 : vector<8x128xf32>
    %145 = math.exp %144 : vector<8x128xf32>
    %cst_59 = arith.constant 1.000000e+00 : f32
    %146 = vector.broadcast %cst_59 : f32 to vector<8x128xf32>
    %147 = arith.addf %146, %145 : vector<8x128xf32>
    %148 = arith.divf %146, %147 : vector<8x128xf32>
    %149 = vector.extract_strided_slice %130 {offsets = [0, 128], sizes = [8, 128], strides = [1, 1]} : vector<8x384xf32> to vector<8x128xf32>
    %150 = vector.extract_strided_slice %140 {offsets = [0, 128], sizes = [8, 128], strides = [1, 1]} : vector<8x384xf32> to vector<8x128xf32>
    %151 = arith.addf %149, %150 : vector<8x128xf32>
    %152 = arith.negf %151 : vector<8x128xf32>
    %153 = math.exp %152 : vector<8x128xf32>
    %cst_60 = arith.constant 1.000000e+00 : f32
    %154 = vector.broadcast %cst_60 : f32 to vector<8x128xf32>
    %155 = arith.addf %154, %153 : vector<8x128xf32>
    %156 = arith.divf %154, %155 : vector<8x128xf32>
    %157 = vector.extract_strided_slice %130 {offsets = [0, 256], sizes = [8, 128], strides = [1, 1]} : vector<8x384xf32> to vector<8x128xf32>
    %158 = vector.extract_strided_slice %140 {offsets = [0, 256], sizes = [8, 128], strides = [1, 1]} : vector<8x384xf32> to vector<8x128xf32>
    %159 = arith.addf %158, %20 : vector<8x128xf32>
    %160 = arith.mulf %148, %159 : vector<8x128xf32>
    %161 = arith.addf %157, %160 : vector<8x128xf32>
    %162 = math.tanh %161 : vector<8x128xf32>
    %cst_61 = arith.constant 1.000000e+00 : f32
    %163 = vector.broadcast %cst_61 : f32 to vector<8x128xf32>
    %164 = arith.subf %163, %156 : vector<8x128xf32>
    %165 = arith.mulf %164, %162 : vector<8x128xf32>
    %166 = arith.mulf %156, %75 : vector<8x128xf32>
    %167 = arith.addf %165, %166 : vector<8x128xf32>
    %168 = vector.shape_cast %136 : vector<8x1xi1> to vector<8x1xi1>
    %169 = vector.broadcast %168 : vector<8x1xi1> to vector<8x128xi1>
    %170 = arith.select %169, %167, %75 : vector<8x128xi1>, vector<8x128xf32>
    %c0_62 = arith.constant 0 : index
    %c0_63 = arith.constant 0 : index
    %171 = vector.load %arg9[%c0_62, %c0_63] : memref<128x384xf32, #tpu.memory_space<vmem>>, vector<128x384xf32>
    %cst_64 = arith.constant dense<0.000000e+00> : vector<8x384xf32>
    %172 = tpu.matmul %107, %171, %cst_64 {dimension_numbers = #tpu.dot_dimension_numbers<[1], [0], [0], [1], [0, 0, 1, 1], [], []>} : vector<8x128xf32>, vector<128x384xf32>, vector<8x384xf32> -> vector<8x384xf32>
    %173 = vector.extract_strided_slice %132 {offsets = [0, 0], sizes = [8, 128], strides = [1, 1]} : vector<8x384xf32> to vector<8x128xf32>
    %174 = vector.extract_strided_slice %172 {offsets = [0, 0], sizes = [8, 128], strides = [1, 1]} : vector<8x384xf32> to vector<8x128xf32>
    %175 = arith.addf %173, %174 : vector<8x128xf32>
    %176 = arith.negf %175 : vector<8x128xf32>
    %177 = math.exp %176 : vector<8x128xf32>
    %cst_65 = arith.constant 1.000000e+00 : f32
    %178 = vector.broadcast %cst_65 : f32 to vector<8x128xf32>
    %179 = arith.addf %178, %177 : vector<8x128xf32>
    %180 = arith.divf %178, %179 : vector<8x128xf32>
    %181 = vector.extract_strided_slice %132 {offsets = [0, 128], sizes = [8, 128], strides = [1, 1]} : vector<8x384xf32> to vector<8x128xf32>
    %182 = vector.extract_strided_slice %172 {offsets = [0, 128], sizes = [8, 128], strides = [1, 1]} : vector<8x384xf32> to vector<8x128xf32>
    %183 = arith.addf %181, %182 : vector<8x128xf32>
    %184 = arith.negf %183 : vector<8x128xf32>
    %185 = math.exp %184 : vector<8x128xf32>
    %cst_66 = arith.constant 1.000000e+00 : f32
    %186 = vector.broadcast %cst_66 : f32 to vector<8x128xf32>
    %187 = arith.addf %186, %185 : vector<8x128xf32>
    %188 = arith.divf %186, %187 : vector<8x128xf32>
    %189 = vector.extract_strided_slice %132 {offsets = [0, 256], sizes = [8, 128], strides = [1, 1]} : vector<8x384xf32> to vector<8x128xf32>
    %190 = vector.extract_strided_slice %172 {offsets = [0, 256], sizes = [8, 128], strides = [1, 1]} : vector<8x384xf32> to vector<8x128xf32>
    %191 = arith.addf %190, %23 : vector<8x128xf32>
    %192 = arith.mulf %180, %191 : vector<8x128xf32>
    %193 = arith.addf %189, %192 : vector<8x128xf32>
    %194 = math.tanh %193 : vector<8x128xf32>
    %cst_67 = arith.constant 1.000000e+00 : f32
    %195 = vector.broadcast %cst_67 : f32 to vector<8x128xf32>
    %196 = arith.subf %195, %188 : vector<8x128xf32>
    %197 = arith.mulf %196, %194 : vector<8x128xf32>
    %198 = arith.mulf %188, %107 : vector<8x128xf32>
    %199 = arith.addf %197, %198 : vector<8x128xf32>
    %200 = vector.shape_cast %138 : vector<8x1xi1> to vector<8x1xi1>
    %201 = vector.broadcast %200 : vector<8x1xi1> to vector<8x128xi1>
    %202 = arith.select %201, %199, %107 : vector<8x128xi1>, vector<8x128xf32>
    %cst_68 = arith.constant 0.000000e+00 : f32
    %203 = vector.shape_cast %136 : vector<8x1xi1> to vector<8x1xi1>
    %204 = vector.broadcast %203 : vector<8x1xi1> to vector<8x128xi1>
    %205 = vector.broadcast %cst_68 : f32 to vector<8x128xf32>
    %206 = arith.select %204, %170, %205 : vector<8x128xi1>, vector<8x128xf32>
    %207 = arith.index_cast %c1_i32_50 : i32 to index
    %c0_69 = arith.constant 0 : index
    %c0_70 = arith.constant 0 : index
    %208 = vector.load %arg12[%207, %c0_69, %c0_70] : memref<4x8x128xf32, #tpu.memory_space<vmem>>, vector<1x8x128xf32>
    %209 = vector.shape_cast %208 : vector<1x8x128xf32> to vector<8x128xf32>
    %210 = vector.shape_cast %206 : vector<8x128xf32> to vector<1x8x128xf32>
    tpu.vector_store %arg12[%207, %c0_69, %c0_70], %210 {strides = array<i32>} : memref<4x8x128xf32, #tpu.memory_space<vmem>>, vector<1x8x128xf32>,
    %cst_71 = arith.constant 0.000000e+00 : f32
    %211 = vector.shape_cast %138 : vector<8x1xi1> to vector<8x1xi1>
    %212 = vector.broadcast %211 : vector<8x1xi1> to vector<8x128xi1>
    %213 = vector.broadcast %cst_71 : f32 to vector<8x128xf32>
    %214 = arith.select %212, %202, %213 : vector<8x128xi1>, vector<8x128xf32>
    %215 = arith.index_cast %124 : i32 to index
    %c0_72 = arith.constant 0 : index
    %c0_73 = arith.constant 0 : index
    %216 = vector.load %arg13[%215, %c0_72, %c0_73] : memref<4x8x128xf32, #tpu.memory_space<vmem>>, vector<1x8x128xf32>
    %217 = vector.shape_cast %216 : vector<1x8x128xf32> to vector<8x128xf32>
    %218 = vector.shape_cast %214 : vector<8x128xf32> to vector<1x8x128xf32>
    tpu.vector_store %arg13[%215, %c0_72, %c0_73], %218 {strides = array<i32>} : memref<4x8x128xf32, #tpu.memory_space<vmem>>, vector<1x8x128xf32>,
    %c2_i32 = arith.constant 2 : i32
    %c3_i32_74 = arith.constant 3 : i32
    %219 = arith.subi %c3_i32_74, %c2_i32 : i32
    %c8_i32_75 = arith.constant 8 : i32
    %220 = arith.muli %c2_i32, %c8_i32_75 : i32
    %221 = tpu.assume_multiple %220, 8 : i32
    %c8_i32_76 = arith.constant 8 : i32
    %222 = arith.muli %219, %c8_i32_76 : i32
    %223 = tpu.assume_multiple %222, 8 : i32
    %224 = arith.index_cast %221 : i32 to index
    %c0_77 = arith.constant 0 : index
    %225 = vector.load %arg14[%224, %c0_77] : memref<32x384xf32, #tpu.memory_space<vmem>>, vector<8x384xf32>
    %226 = arith.index_cast %223 : i32 to index
    %c0_78 = arith.constant 0 : index
    %227 = vector.load %arg15[%226, %c0_78] : memref<32x384xf32, #tpu.memory_space<vmem>>, vector<8x384xf32>
    %228 = arith.addi %24, %c2_i32 : i32
    %229 = arith.addi %26, %219 : i32
    %230 = vector.broadcast %228 : i32 to vector<8x1xi32>
    %231 = arith.cmpi sgt, %17, %230 : vector<8x1xi32>
    %232 = vector.broadcast %229 : i32 to vector<8x1xi32>
    %233 = arith.cmpi sgt, %17, %232 : vector<8x1xi32>
    %c0_79 = arith.constant 0 : index
    %c0_80 = arith.constant 0 : index
    %234 = vector.load %arg8[%c0_79, %c0_80] : memref<128x384xf32, #tpu.memory_space<vmem>>, vector<128x384xf32>
    %cst_81 = arith.constant dense<0.000000e+00> : vector<8x384xf32>
    %235 = tpu.matmul %170, %234, %cst_81 {dimension_numbers = #tpu.dot_dimension_numbers<[1], [0], [0], [1], [0, 0, 1, 1], [], []>} : vector<8x128xf32>, vector<128x384xf32>, vector<8x384xf32> -> vector<8x384xf32>
    %236 = vector.extract_strided_slice %225 {offsets = [0, 0], sizes = [8, 128], strides = [1, 1]} : vector<8x384xf32> to vector<8x128xf32>
    %237 = vector.extract_strided_slice %235 {offsets = [0, 0], sizes = [8, 128], strides = [1, 1]} : vector<8x384xf32> to vector<8x128xf32>
    %238 = arith.addf %236, %237 : vector<8x128xf32>
    %239 = arith.negf %238 : vector<8x128xf32>
    %240 = math.exp %239 : vector<8x128xf32>
    %cst_82 = arith.constant 1.000000e+00 : f32
    %241 = vector.broadcast %cst_82 : f32 to vector<8x128xf32>
    %242 = arith.addf %241, %240 : vector<8x128xf32>
    %243 = arith.divf %241, %242 : vector<8x128xf32>
    %244 = vector.extract_strided_slice %225 {offsets = [0, 128], sizes = [8, 128], strides = [1, 1]} : vector<8x384xf32> to vector<8x128xf32>
    %245 = vector.extract_strided_slice %235 {offsets = [0, 128], sizes = [8, 128], strides = [1, 1]} : vector<8x384xf32> to vector<8x128xf32>
    %246 = arith.addf %244, %245 : vector<8x128xf32>
    %247 = arith.negf %246 : vector<8x128xf32>
    %248 = math.exp %247 : vector<8x128xf32>
    %cst_83 = arith.constant 1.000000e+00 : f32
    %249 = vector.broadcast %cst_83 : f32 to vector<8x128xf32>
    %250 = arith.addf %249, %248 : vector<8x128xf32>
    %251 = arith.divf %249, %250 : vector<8x128xf32>
    %252 = vector.extract_strided_slice %225 {offsets = [0, 256], sizes = [8, 128], strides = [1, 1]} : vector<8x384xf32> to vector<8x128xf32>
    %253 = vector.extract_strided_slice %235 {offsets = [0, 256], sizes = [8, 128], strides = [1, 1]} : vector<8x384xf32> to vector<8x128xf32>
    %254 = arith.addf %253, %20 : vector<8x128xf32>
    %255 = arith.mulf %243, %254 : vector<8x128xf32>
    %256 = arith.addf %252, %255 : vector<8x128xf32>
    %257 = math.tanh %256 : vector<8x128xf32>
    %cst_84 = arith.constant 1.000000e+00 : f32
    %258 = vector.broadcast %cst_84 : f32 to vector<8x128xf32>
    %259 = arith.subf %258, %251 : vector<8x128xf32>
    %260 = arith.mulf %259, %257 : vector<8x128xf32>
    %261 = arith.mulf %251, %170 : vector<8x128xf32>
    %262 = arith.addf %260, %261 : vector<8x128xf32>
    %263 = vector.shape_cast %231 : vector<8x1xi1> to vector<8x1xi1>
    %264 = vector.broadcast %263 : vector<8x1xi1> to vector<8x128xi1>
    %265 = arith.select %264, %262, %170 : vector<8x128xi1>, vector<8x128xf32>
    %c0_85 = arith.constant 0 : index
    %c0_86 = arith.constant 0 : index
    %266 = vector.load %arg9[%c0_85, %c0_86] : memref<128x384xf32, #tpu.memory_space<vmem>>, vector<128x384xf32>
    %cst_87 = arith.constant dense<0.000000e+00> : vector<8x384xf32>
    %267 = tpu.matmul %202, %266, %cst_87 {dimension_numbers = #tpu.dot_dimension_numbers<[1], [0], [0], [1], [0, 0, 1, 1], [], []>} : vector<8x128xf32>, vector<128x384xf32>, vector<8x384xf32> -> vector<8x384xf32>
    %268 = vector.extract_strided_slice %227 {offsets = [0, 0], sizes = [8, 128], strides = [1, 1]} : vector<8x384xf32> to vector<8x128xf32>
    %269 = vector.extract_strided_slice %267 {offsets = [0, 0], sizes = [8, 128], strides = [1, 1]} : vector<8x384xf32> to vector<8x128xf32>
    %270 = arith.addf %268, %269 : vector<8x128xf32>
    %271 = arith.negf %270 : vector<8x128xf32>
    %272 = math.exp %271 : vector<8x128xf32>
    %cst_88 = arith.constant 1.000000e+00 : f32
    %273 = vector.broadcast %cst_88 : f32 to vector<8x128xf32>
    %274 = arith.addf %273, %272 : vector<8x128xf32>
    %275 = arith.divf %273, %274 : vector<8x128xf32>
    %276 = vector.extract_strided_slice %227 {offsets = [0, 128], sizes = [8, 128], strides = [1, 1]} : vector<8x384xf32> to vector<8x128xf32>
    %277 = vector.extract_strided_slice %267 {offsets = [0, 128], sizes = [8, 128], strides = [1, 1]} : vector<8x384xf32> to vector<8x128xf32>
    %278 = arith.addf %276, %277 : vector<8x128xf32>
    %279 = arith.negf %278 : vector<8x128xf32>
    %280 = math.exp %279 : vector<8x128xf32>
    %cst_89 = arith.constant 1.000000e+00 : f32
    %281 = vector.broadcast %cst_89 : f32 to vector<8x128xf32>
    %282 = arith.addf %281, %280 : vector<8x128xf32>
    %283 = arith.divf %281, %282 : vector<8x128xf32>
    %284 = vector.extract_strided_slice %227 {offsets = [0, 256], sizes = [8, 128], strides = [1, 1]} : vector<8x384xf32> to vector<8x128xf32>
    %285 = vector.extract_strided_slice %267 {offsets = [0, 256], sizes = [8, 128], strides = [1, 1]} : vector<8x384xf32> to vector<8x128xf32>
    %286 = arith.addf %285, %23 : vector<8x128xf32>
    %287 = arith.mulf %275, %286 : vector<8x128xf32>
    %288 = arith.addf %284, %287 : vector<8x128xf32>
    %289 = math.tanh %288 : vector<8x128xf32>
    %cst_90 = arith.constant 1.000000e+00 : f32
    %290 = vector.broadcast %cst_90 : f32 to vector<8x128xf32>
    %291 = arith.subf %290, %283 : vector<8x128xf32>
    %292 = arith.mulf %291, %289 : vector<8x128xf32>
    %293 = arith.mulf %283, %202 : vector<8x128xf32>
    %294 = arith.addf %292, %293 : vector<8x128xf32>
    %295 = vector.shape_cast %233 : vector<8x1xi1> to vector<8x1xi1>
    %296 = vector.broadcast %295 : vector<8x1xi1> to vector<8x128xi1>
    %297 = arith.select %296, %294, %202 : vector<8x128xi1>, vector<8x128xf32>
    %cst_91 = arith.constant 0.000000e+00 : f32
    %298 = vector.shape_cast %231 : vector<8x1xi1> to vector<8x1xi1>
    %299 = vector.broadcast %298 : vector<8x1xi1> to vector<8x128xi1>
    %300 = vector.broadcast %cst_91 : f32 to vector<8x128xf32>
    %301 = arith.select %299, %265, %300 : vector<8x128xi1>, vector<8x128xf32>
    %302 = arith.index_cast %c2_i32 : i32 to index
    %c0_92 = arith.constant 0 : index
    %c0_93 = arith.constant 0 : index
    %303 = vector.load %arg12[%302, %c0_92, %c0_93] : memref<4x8x128xf32, #tpu.memory_space<vmem>>, vector<1x8x128xf32>
    %304 = vector.shape_cast %303 : vector<1x8x128xf32> to vector<8x128xf32>
    %305 = vector.shape_cast %301 : vector<8x128xf32> to vector<1x8x128xf32>
    tpu.vector_store %arg12[%302, %c0_92, %c0_93], %305 {strides = array<i32>} : memref<4x8x128xf32, #tpu.memory_space<vmem>>, vector<1x8x128xf32>,
    %cst_94 = arith.constant 0.000000e+00 : f32
    %306 = vector.shape_cast %233 : vector<8x1xi1> to vector<8x1xi1>
    %307 = vector.broadcast %306 : vector<8x1xi1> to vector<8x128xi1>
    %308 = vector.broadcast %cst_94 : f32 to vector<8x128xf32>
    %309 = arith.select %307, %297, %308 : vector<8x128xi1>, vector<8x128xf32>
    %310 = arith.index_cast %219 : i32 to index
    %c0_95 = arith.constant 0 : index
    %c0_96 = arith.constant 0 : index
    %311 = vector.load %arg13[%310, %c0_95, %c0_96] : memref<4x8x128xf32, #tpu.memory_space<vmem>>, vector<1x8x128xf32>
    %312 = vector.shape_cast %311 : vector<1x8x128xf32> to vector<8x128xf32>
    %313 = vector.shape_cast %309 : vector<8x128xf32> to vector<1x8x128xf32>
    tpu.vector_store %arg13[%310, %c0_95, %c0_96], %313 {strides = array<i32>} : memref<4x8x128xf32, #tpu.memory_space<vmem>>, vector<1x8x128xf32>,
    %c3_i32_97 = arith.constant 3 : i32
    %c3_i32_98 = arith.constant 3 : i32
    %314 = arith.subi %c3_i32_98, %c3_i32_97 : i32
    %c8_i32_99 = arith.constant 8 : i32
    %315 = arith.muli %c3_i32_97, %c8_i32_99 : i32
    %316 = tpu.assume_multiple %315, 8 : i32
    %c8_i32_100 = arith.constant 8 : i32
    %317 = arith.muli %314, %c8_i32_100 : i32
    %318 = tpu.assume_multiple %317, 8 : i32
    %319 = arith.index_cast %316 : i32 to index
    %c0_101 = arith.constant 0 : index
    %320 = vector.load %arg14[%319, %c0_101] : memref<32x384xf32, #tpu.memory_space<vmem>>, vector<8x384xf32>
    %321 = arith.index_cast %318 : i32 to index
    %c0_102 = arith.constant 0 : index
    %322 = vector.load %arg15[%321, %c0_102] : memref<32x384xf32, #tpu.memory_space<vmem>>, vector<8x384xf32>
    %323 = arith.addi %24, %c3_i32_97 : i32
    %324 = arith.addi %26, %314 : i32
    %325 = vector.broadcast %323 : i32 to vector<8x1xi32>
    %326 = arith.cmpi sgt, %17, %325 : vector<8x1xi32>
    %327 = vector.broadcast %324 : i32 to vector<8x1xi32>
    %328 = arith.cmpi sgt, %17, %327 : vector<8x1xi32>
    %c0_103 = arith.constant 0 : index
    %c0_104 = arith.constant 0 : index
    %329 = vector.load %arg8[%c0_103, %c0_104] : memref<128x384xf32, #tpu.memory_space<vmem>>, vector<128x384xf32>
    %cst_105 = arith.constant dense<0.000000e+00> : vector<8x384xf32>
    %330 = tpu.matmul %265, %329, %cst_105 {dimension_numbers = #tpu.dot_dimension_numbers<[1], [0], [0], [1], [0, 0, 1, 1], [], []>} : vector<8x128xf32>, vector<128x384xf32>, vector<8x384xf32> -> vector<8x384xf32>
    %331 = vector.extract_strided_slice %320 {offsets = [0, 0], sizes = [8, 128], strides = [1, 1]} : vector<8x384xf32> to vector<8x128xf32>
    %332 = vector.extract_strided_slice %330 {offsets = [0, 0], sizes = [8, 128], strides = [1, 1]} : vector<8x384xf32> to vector<8x128xf32>
    %333 = arith.addf %331, %332 : vector<8x128xf32>
    %334 = arith.negf %333 : vector<8x128xf32>
    %335 = math.exp %334 : vector<8x128xf32>
    %cst_106 = arith.constant 1.000000e+00 : f32
    %336 = vector.broadcast %cst_106 : f32 to vector<8x128xf32>
    %337 = arith.addf %336, %335 : vector<8x128xf32>
    %338 = arith.divf %336, %337 : vector<8x128xf32>
    %339 = vector.extract_strided_slice %320 {offsets = [0, 128], sizes = [8, 128], strides = [1, 1]} : vector<8x384xf32> to vector<8x128xf32>
    %340 = vector.extract_strided_slice %330 {offsets = [0, 128], sizes = [8, 128], strides = [1, 1]} : vector<8x384xf32> to vector<8x128xf32>
    %341 = arith.addf %339, %340 : vector<8x128xf32>
    %342 = arith.negf %341 : vector<8x128xf32>
    %343 = math.exp %342 : vector<8x128xf32>
    %cst_107 = arith.constant 1.000000e+00 : f32
    %344 = vector.broadcast %cst_107 : f32 to vector<8x128xf32>
    %345 = arith.addf %344, %343 : vector<8x128xf32>
    %346 = arith.divf %344, %345 : vector<8x128xf32>
    %347 = vector.extract_strided_slice %320 {offsets = [0, 256], sizes = [8, 128], strides = [1, 1]} : vector<8x384xf32> to vector<8x128xf32>
    %348 = vector.extract_strided_slice %330 {offsets = [0, 256], sizes = [8, 128], strides = [1, 1]} : vector<8x384xf32> to vector<8x128xf32>
    %349 = arith.addf %348, %20 : vector<8x128xf32>
    %350 = arith.mulf %338, %349 : vector<8x128xf32>
    %351 = arith.addf %347, %350 : vector<8x128xf32>
    %352 = math.tanh %351 : vector<8x128xf32>
    %cst_108 = arith.constant 1.000000e+00 : f32
    %353 = vector.broadcast %cst_108 : f32 to vector<8x128xf32>
    %354 = arith.subf %353, %346 : vector<8x128xf32>
    %355 = arith.mulf %354, %352 : vector<8x128xf32>
    %356 = arith.mulf %346, %265 : vector<8x128xf32>
    %357 = arith.addf %355, %356 : vector<8x128xf32>
    %358 = vector.shape_cast %326 : vector<8x1xi1> to vector<8x1xi1>
    %359 = vector.broadcast %358 : vector<8x1xi1> to vector<8x128xi1>
    %360 = arith.select %359, %357, %265 : vector<8x128xi1>, vector<8x128xf32>
    %c0_109 = arith.constant 0 : index
    %c0_110 = arith.constant 0 : index
    %361 = vector.load %arg9[%c0_109, %c0_110] : memref<128x384xf32, #tpu.memory_space<vmem>>, vector<128x384xf32>
    %cst_111 = arith.constant dense<0.000000e+00> : vector<8x384xf32>
    %362 = tpu.matmul %297, %361, %cst_111 {dimension_numbers = #tpu.dot_dimension_numbers<[1], [0], [0], [1], [0, 0, 1, 1], [], []>} : vector<8x128xf32>, vector<128x384xf32>, vector<8x384xf32> -> vector<8x384xf32>
    %363 = vector.extract_strided_slice %322 {offsets = [0, 0], sizes = [8, 128], strides = [1, 1]} : vector<8x384xf32> to vector<8x128xf32>
    %364 = vector.extract_strided_slice %362 {offsets = [0, 0], sizes = [8, 128], strides = [1, 1]} : vector<8x384xf32> to vector<8x128xf32>
    %365 = arith.addf %363, %364 : vector<8x128xf32>
    %366 = arith.negf %365 : vector<8x128xf32>
    %367 = math.exp %366 : vector<8x128xf32>
    %cst_112 = arith.constant 1.000000e+00 : f32
    %368 = vector.broadcast %cst_112 : f32 to vector<8x128xf32>
    %369 = arith.addf %368, %367 : vector<8x128xf32>
    %370 = arith.divf %368, %369 : vector<8x128xf32>
    %371 = vector.extract_strided_slice %322 {offsets = [0, 128], sizes = [8, 128], strides = [1, 1]} : vector<8x384xf32> to vector<8x128xf32>
    %372 = vector.extract_strided_slice %362 {offsets = [0, 128], sizes = [8, 128], strides = [1, 1]} : vector<8x384xf32> to vector<8x128xf32>
    %373 = arith.addf %371, %372 : vector<8x128xf32>
    %374 = arith.negf %373 : vector<8x128xf32>
    %375 = math.exp %374 : vector<8x128xf32>
    %cst_113 = arith.constant 1.000000e+00 : f32
    %376 = vector.broadcast %cst_113 : f32 to vector<8x128xf32>
    %377 = arith.addf %376, %375 : vector<8x128xf32>
    %378 = arith.divf %376, %377 : vector<8x128xf32>
    %379 = vector.extract_strided_slice %322 {offsets = [0, 256], sizes = [8, 128], strides = [1, 1]} : vector<8x384xf32> to vector<8x128xf32>
    %380 = vector.extract_strided_slice %362 {offsets = [0, 256], sizes = [8, 128], strides = [1, 1]} : vector<8x384xf32> to vector<8x128xf32>
    %381 = arith.addf %380, %23 : vector<8x128xf32>
    %382 = arith.mulf %370, %381 : vector<8x128xf32>
    %383 = arith.addf %379, %382 : vector<8x128xf32>
    %384 = math.tanh %383 : vector<8x128xf32>
    %cst_114 = arith.constant 1.000000e+00 : f32
    %385 = vector.broadcast %cst_114 : f32 to vector<8x128xf32>
    %386 = arith.subf %385, %378 : vector<8x128xf32>
    %387 = arith.mulf %386, %384 : vector<8x128xf32>
    %388 = arith.mulf %378, %297 : vector<8x128xf32>
    %389 = arith.addf %387, %388 : vector<8x128xf32>
    %390 = vector.shape_cast %328 : vector<8x1xi1> to vector<8x1xi1>
    %391 = vector.broadcast %390 : vector<8x1xi1> to vector<8x128xi1>
    %392 = arith.select %391, %389, %297 : vector<8x128xi1>, vector<8x128xf32>
    %cst_115 = arith.constant 0.000000e+00 : f32
    %393 = vector.shape_cast %326 : vector<8x1xi1> to vector<8x1xi1>
    %394 = vector.broadcast %393 : vector<8x1xi1> to vector<8x128xi1>
    %395 = vector.broadcast %cst_115 : f32 to vector<8x128xf32>
    %396 = arith.select %394, %360, %395 : vector<8x128xi1>, vector<8x128xf32>
    %397 = arith.index_cast %c3_i32_97 : i32 to index
    %c0_116 = arith.constant 0 : index
    %c0_117 = arith.constant 0 : index
    %398 = vector.load %arg12[%397, %c0_116, %c0_117] : memref<4x8x128xf32, #tpu.memory_space<vmem>>, vector<1x8x128xf32>
    %399 = vector.shape_cast %398 : vector<1x8x128xf32> to vector<8x128xf32>
    %400 = vector.shape_cast %396 : vector<8x128xf32> to vector<1x8x128xf32>
    tpu.vector_store %arg12[%397, %c0_116, %c0_117], %400 {strides = array<i32>} : memref<4x8x128xf32, #tpu.memory_space<vmem>>, vector<1x8x128xf32>,
    %cst_118 = arith.constant 0.000000e+00 : f32
    %401 = vector.shape_cast %328 : vector<8x1xi1> to vector<8x1xi1>
    %402 = vector.broadcast %401 : vector<8x1xi1> to vector<8x128xi1>
    %403 = vector.broadcast %cst_118 : f32 to vector<8x128xf32>
    %404 = arith.select %402, %392, %403 : vector<8x128xi1>, vector<8x128xf32>
    %405 = arith.index_cast %314 : i32 to index
    %c0_119 = arith.constant 0 : index
    %c0_120 = arith.constant 0 : index
    %406 = vector.load %arg13[%405, %c0_119, %c0_120] : memref<4x8x128xf32, #tpu.memory_space<vmem>>, vector<1x8x128xf32>
    %407 = vector.shape_cast %406 : vector<1x8x128xf32> to vector<8x128xf32>
    %408 = vector.shape_cast %404 : vector<8x128xf32> to vector<1x8x128xf32>
    tpu.vector_store %arg13[%405, %c0_119, %c0_120], %408 {strides = array<i32>} : memref<4x8x128xf32, #tpu.memory_space<vmem>>, vector<1x8x128xf32>,
    %c4_i32_121 = arith.constant 4 : i32
    %c0_122 = arith.constant 0 : index
    %c0_123 = arith.constant 0 : index
    %409 = vector.load %arg16[%c0_122, %c0_123] : memref<8x128xf32, #tpu.memory_space<vmem>>, vector<8x128xf32>
    tpu.vector_store %arg16[%c0_122, %c0_123], %360 {strides = array<i32>} : memref<8x128xf32, #tpu.memory_space<vmem>>, vector<8x128xf32>,
    %c0_124 = arith.constant 0 : index
    %c0_125 = arith.constant 0 : index
    %410 = vector.load %arg17[%c0_124, %c0_125] : memref<8x128xf32, #tpu.memory_space<vmem>>, vector<8x128xf32>
    tpu.vector_store %arg17[%c0_124, %c0_125], %392 {strides = array<i32>} : memref<8x128xf32, #tpu.memory_space<vmem>>, vector<8x128xf32>,
    return
  }
  func.func @transform_0(%arg0: i32) -> (i32, i32) {
    %c0_i32 = arith.constant 0 : i32
    %c0_i32_0 = arith.constant 0 : i32
    %c0_i32_1 = arith.constant 0 : i32
    return %c0_i32, %c0_i32_0 : i32, i32
  }
  func.func @transform_1(%arg0: i32) -> (i32, i32) {
    %c0_i32 = arith.constant 0 : i32
    %c0_i32_0 = arith.constant 0 : i32
    return %arg0, %c0_i32 : i32, i32
  }
  func.func @transform_2(%arg0: i32) -> (i32, i32) {
    %c1_i32 = arith.constant 1 : i32
    %0 = arith.subi %c1_i32, %arg0 : i32
    %c0_i32 = arith.constant 0 : i32
    %c0_i32_0 = arith.constant 0 : i32
    return %0, %c0_i32 : i32, i32
  }
  func.func @transform_3(%arg0: i32) -> (i32, i32) {
    %c0_i32 = arith.constant 0 : i32
    %c0_i32_0 = arith.constant 0 : i32
    %c0_i32_1 = arith.constant 0 : i32
    return %c0_i32, %c0_i32_0 : i32, i32
  }
  func.func @transform_4(%arg0: i32) -> (i32, i32) {
    %c0_i32 = arith.constant 0 : i32
    %c0_i32_0 = arith.constant 0 : i32
    %c0_i32_1 = arith.constant 0 : i32
    return %c0_i32, %c0_i32_0 : i32, i32
  }
  func.func @transform_5(%arg0: i32) -> (i32, i32) {
    %c0_i32 = arith.constant 0 : i32
    %c0_i32_0 = arith.constant 0 : i32
    %c0_i32_1 = arith.constant 0 : i32
    return %c0_i32, %c0_i32_0 : i32, i32
  }
  func.func @transform_6(%arg0: i32) -> (i32, i32) {
    %c0_i32 = arith.constant 0 : i32
    %c0_i32_0 = arith.constant 0 : i32
    %c0_i32_1 = arith.constant 0 : i32
    return %c0_i32, %c0_i32_0 : i32, i32
  }
  func.func @transform_7(%arg0: i32) -> (i32, i32) {
    %c0_i32 = arith.constant 0 : i32
    %c0_i32_0 = arith.constant 0 : i32
    %c0_i32_1 = arith.constant 0 : i32
    return %c0_i32, %c0_i32_0 : i32, i32
  }
  func.func @transform_8(%arg0: i32) -> (i32, i32) {
    %c0_i32 = arith.constant 0 : i32
    %c0_i32_0 = arith.constant 0 : i32
    %c0_i32_1 = arith.constant 0 : i32
    return %c0_i32, %c0_i32_0 : i32, i32
  }
  func.func @transform_9(%arg0: i32) -> (i32, i32) {
    %c0_i32 = arith.constant 0 : i32
    %c0_i32_0 = arith.constant 0 : i32
    %c0_i32_1 = arith.constant 0 : i32
    return %c0_i32, %c0_i32_0 : i32, i32
  }
  func.func @transform_10(%arg0: i32) -> (i32, i32) {
    %c0_i32 = arith.constant 0 : i32
    %c0_i32_0 = arith.constant 0 : i32
    %c0_i32_1 = arith.constant 0 : i32
    return %c0_i32, %c0_i32_0 : i32, i32
  }
  func.func @transform_11(%arg0: i32) -> (i32, i32, i32) {
    %c0_i32 = arith.constant 0 : i32
    %c0_i32_0 = arith.constant 0 : i32
    %c0_i32_1 = arith.constant 0 : i32
    return %arg0, %c0_i32, %c0_i32_0 : i32, i32, i32
  }
  func.func @transform_12(%arg0: i32) -> (i32, i32, i32) {
    %c1_i32 = arith.constant 1 : i32
    %0 = arith.subi %c1_i32, %arg0 : i32
    %c0_i32 = arith.constant 0 : i32
    %c0_i32_0 = arith.constant 0 : i32
    %c0_i32_1 = arith.constant 0 : i32
    return %0, %c0_i32, %c0_i32_0 : i32, i32, i32
  }
}

</mosaic_0001>

<bundles_post_ra>
// kernel: tpu_custom_call.1
= control target key start
LH: loop header
LB: loop body
LE: loop exit
PB: predicated region body
PF: predicated region fallthrough
CT: control target
= control target key end

     0   :  { %s5468_s0 = inlined_call_operand.vmem [shape: s32[8,1], index: 0, kind: input, shape index: {}]   ;;  %s5469_s1 = inlined_call_operand.vmem [shape: f32[64,32], index: 1, kind: input, shape index: {}]   ;;  %s5470_s2 = inlined_call_operand.vmem [shape: f32[64,32], index: 2, kind: input, shape index: {}]   ;;  %s5471_s3 = inlined_call_operand.vmem [shape: f32[32,384], index: 3, kind: input, shape index: {}]   ;;  %s5472_s4 = inlined_call_operand.vmem [shape: f32[32,384], index: 4, kind: input, shape index: {}]   ;;  %s5473_s5 = inlined_call_operand.vmem [shape: f32[1,384], index: 5, kind: input, shape index: {}]   ;;  %s5474_s6 = inlined_call_operand.vmem [shape: f32[1,384], index: 6, kind: input, shape index: {}]   ;;  %s5475_s7 = inlined_call_operand.hbm [shape: f32[128,384], index: 7, kind: input, shape index: {}]   ;;  %s5476_s8 = inlined_call_operand.hbm [shape: f32[128,384], index: 8, kind: input, shape index: {}]   ;;  %s5477_s9 = inlined_call_operand.vmem [shape: f32[1,128], index: 9, kind: input, shape index: {}]   ;;  %s5478_s10 = inlined_call_operand.vmem [shape: f32[1,128], index: 10, kind: input, shape index: {}]   ;;  %s5479_s11 = inlined_call_operand.hbm [shape: f32[8,8,128], index: 11, kind: output, shape index: {0}]   ;;  %s5480_s12 = inlined_call_operand.hbm [shape: f32[8,8,128], index: 12, kind: output, shape index: {1}]  }
   0x1   :  { %5574 = sst [smem:[#allocation84_spill]] %s5475_s7 }
   0x2   :  { %5575 = sst [smem:[#allocation85_spill]] %s5476_s8 }
   0x3   :  { %5576 = sst [smem:[#allocation86_spill]] %s5480_s12 }
   0x4   :  { %18 = vsyncpa [#allocation7], 0 }
   0x5   :  { %19 = vsyncpa [#allocation10], 0 }
   0x6   :  { %20 = vsyncpa [#allocation8], 0 }
   0x7   :  { %22 = vsyncpa [#allocation8 + $0x1], 0 }
   0x8   :  { %23 = vsyncpa [#allocation13], 0 }
   0x9   :  { %25 = vsyncpa [#allocation13 + $0x1], 0  ;;  %s3935_s21 = smov 0   ;;  %s3937_s22 = smov 0  }
   0xa   :  { %s3939_s23 = smov 0   ;;  %s3941_s24 = smov 0  }
   0xb   :  { %s3943_s25 = smov 0   ;;  %s3945_s26 = smov 0  }
   0xc   :  { %s3947_s27 = smov 0  }
   0xd LB: > { %5577 = sst [smem:[#allocation18_spill]] %s3832_s21  ;;  %s3971_s28 = sadd.s32 4294967295, %s3856_s27   ;;  %s3856_s27 = sphi %s3947_s27, %s5788_s27   ;;  %s3852_s26 = sphi %s3945_s26, %s5792_s26   ;;  %s3848_s25 = sphi %s3943_s25, %s5796_s25   ;;  %s3844_s24 = sphi %s3941_s24, %s5795_s24   ;;  %s3840_s23 = sphi %s3939_s23, %s5790_s23   ;;  %s3836_s22 = sphi %s3937_s22, %s5794_s22   ;;  %s3832_s21 = sphi %s3935_s21, %s5793_s21  }
   0xe   : > { %5578 = sst [smem:[#allocation19_spill]] %s3840_s23  ;;  %s2974_s29 = sadd.s32 4294967294, %s3856_s27  }
   0xf   : > { %5579 = sst [smem:[#allocation20_spill]] %s3844_s24  ;;  %s3975_s30 = sadd.s32 1, %s3856_s27  }
  0x10   : > { %5580 = sst [smem:[#allocation21_spill]] %s3852_s26  ;;  %s281_s13 = sadd.s32 1, %s3852_s26 }
  0x11   : > { %5581 = sst [smem:[#allocation22_spill]] %s3856_s27  ;;  %s278_s14 = ssub.s32 %s3856_s27, %s3975_s30 }
  0x12   : > { %5582 = sst [smem:[#allocation23_spill]] %s3975_s30  ;;  %p291_p0 = scmp.ne.s32.totalorder %s3852_s26, %s3848_s25 }
  0x13   : > { %p279_p1 = scmp.eq.s32.totalorder %s278_s14, 0  ;;  %p292_p2 = scmp.eq.s32.totalorder %s3971_s28, 1 }
  0x14   : > { %p297_p3 = scmp.ne.s32.totalorder %s3848_s25, %s3844_s24  ;;  %p3985_p4 = scmp.eq.s32.totalorder %s2974_s29, 1 }
  0x15   : > { %s3990_s16 = scalar_select %p279_p1, %s3852_s26, %s281_s13  }
  0x16   : > { %p3994_p5 = por %p292_p2, %p291_p0  ;;  %p4000_p6 = por %p3985_p4, %p297_p3 }
  0x17   : > { %5584 = sst [smem:[#allocation24_spill]] %s3990_s16  ;;  %s304_s19 = ssub.s32 1, %s3856_s27 }
  0x18   : > { %s5586_s18 = scalar_select %p4000_p6, 1, 0 }
  0x19   : > { %s305_s20 = ssub.s32 1, %s3975_s30  ;;  %s309_s14 = sadd.s32 1, %s3840_s23 }
  0x1a   : > { %5587 = sst [smem:[#allocation25_spill]] %s5586_s18  ;;  %s306_s29 = ssub.s32 %s304_s19, %s305_s20 }
  0x1b   : > { %p307_p7 = scmp.eq.s32.totalorder %s306_s29, 0  ;;  %p319_p8 = scmp.ne.s32.totalorder %s3840_s23, %s3836_s22 }
  0x1c   : > { %p325_p9 = scmp.ne.s32.totalorder %s3836_s22, %s3832_s21  ;;  %p2975_p10 = scmp.ge.s32.totalorder %s3856_s27, 1 }
  0x1d   : > { %s4013_s13 = scalar_select %p307_p7, %s3840_s23, %s309_s14  }
  0x1e   : > { %p4017_p11 = por %p319_p8, %p292_p2  ;;  %p4023_p12 = por %p325_p9, %p3985_p4 }
  0x1f   : > { %5588 = sst [smem:[#allocation26_spill]] %s4013_s13  ;;  %p333_p13 = scmp.lt.s32.totalorder %s3856_s27, 3 }
  0x20   : > { %s5589_s16 = scalar_select %p4017_p11, 1, 0 }
  0x21   : > { %s5590_s26 = scalar_select %p4023_p12, 1, 0 }
  0x22   : > { %p5487_p1 = scmp.eq.s32.totalorder %s3971_s28, 0  ;;  %p4030_p3 = pnand %p2975_p10, %p333_p13 }
  0x23   : > { %5591 = sst [smem:[#allocation27_spill]] %s5590_s26  ;;  %s3858_s20 = smov [#allocation6]  }
  0x24   : > { %s360_s29 = sshll.u32 %s3858_s20, 4  ;;  %p3513_p2 = pneg %p4030_p3  ;;  %s361_s29 = int_to_ptr.vmem [resolvable:$true] %s360_s29 }
  0x25   : > { %s3859_s14 = smov [#allocation9]   ;;  %s3693_s23 = scalar_lea.vmem %s361_s29, 6144 }
  0x26   : > { %p4038_p7 = pnand %p5487_p1, %p3513_p2  ;;  %s373_s13 = sshll.u32 %s3859_s14, 4  ;;  %s374_s13 = int_to_ptr.vmem [resolvable:$true] %s373_s13 }
  0x27   : > { %p3694_p8 = scmp.ne.s32.totalorder %s361_s29, %s3693_s23  ;;  %p3701_p13 = scmp.lt.s32.totalorder %s361_s29, %s361_s29 }
  0x28   : > { %p3684_p4 = pneg %p4038_p7  ;;  %p3702_p0 = scmp.lt.s32.totalorder %s3693_s23, %s3693_s23 }
  0x2a   : > { %p3696_p9 = pnand %p3694_p8, %p3684_p4  ;;  %p3703_p12 = por %p3702_p0, %p3701_p13 }
  0x2c   : > { %p3697_p10 = pneg %p3696_p9 }
  0x2e   : > { %p3704_p2 = pnand %p3703_p12, %p3697_p10 }
  0x30   : > { %3707 = shalt.err (!%p3704_p2)
}
  0x31   : > { %s3860_s20 = smov 384   ;;  %s3861_s30 = smov 24  }
  0x32   : > { %s5594_s7 = sld [smem:[#allocation84_spill]]  ;;  %s3719_s21 = scalar_lea.vmem %s374_s13, 6144 }
  0x33   : > { %p3720_p1 = scmp.ne.s32.totalorder %s374_s13, %s3719_s21  ;;  %p3727_p6 = scmp.lt.s32.totalorder %s374_s13, %s374_s13 }
  0x34   : > { %p3728_p11 = scmp.lt.s32.totalorder %s3719_s21, %s3719_s21 }
  0x35   : > { %p3722_p8 = pnand %p3720_p1, %p3684_p4 }
  0x36   : > { %p3729_p0 = por %p3728_p11, %p3727_p6 }
  0x37   : > { %p3723_p9 = pneg %p3722_p8 }
  0x38   : > { %3516 = dma.hbm_to_vmem [thread:$0]  (!%p4038_p7), %s5594_s7, 6144, %s361_s29, [#allocation7], %s3860_s20, %s3860_s20, %s3861_s30  }
  0x39   : > { %p3730_p12 = pnand %p3729_p0, %p3723_p9 }
  0x3b   : > { %3733 = shalt.err (!%p3730_p12)
}
  0x3c   : > { %s5595_s8 = sld [smem:[#allocation85_spill]] }
  0x3e   : > { %415 = sbr.rel (%p4030_p3) target bundleno = 1192 (0x4a8), region = 64 }
  0x42   : > { %3519 = dma.hbm_to_vmem [thread:$0]  (!%p4038_p7), %s5595_s8, 6144, %s374_s13, [#allocation10], %s3860_s20, %s3860_s20, %s3861_s30  }
  0x43   : > { %p5596_p10 = scmp.eq.s32.totalorder %s3971_s28, 0 }
  0x45   : > { %3815 = dma.done.wait (%p5596_p10), [#allocation7], 6144   ;;  %p5597_p1 = pmov %p5596_p10 }
  0x47   : > { %3817 = vsyncadd (%p5597_p1), [#allocation7], 4294961152  ;;  %p5598_p4 = pmov %p5597_p1 }
  0x48   : > { %p5599_p6 = pmov %p5597_p1 }
  0x49   : > { %3819 = dma.done.wait (%p5598_p4), [#allocation10], 6144  }
  0x4a   : > { %3821 = vsyncadd (%p5599_p6), [#allocation10], 4294961152  ;;  %s5490_s21 = sand.u32 1, %s3848_s25   ;;  %s5491_s26 = sand.u32 1, %s3836_s22  }
  0x4b   : > { %s2982_s30 = sshll.u32 %s5490_s21, 5  ;;  %s2983_s18 = sshll.u32 %s5491_s26, 5 }
  0x4c   : > { %s4077_s13 = sshll.u32 %s3971_s28, 2  ;;  %s5495_s19 = ssub.s32 1, %s3971_s28 }
  0x4d   : > { %p473_p11 = scmp.lt.s32.totalorder %s4077_s13, 7  ;;  %s4083_s29 = sshll.u32 %s5495_s19, 2 }
  0x4e   : > { %p480_p3 = scmp.lt.s32.totalorder %s4083_s29, 7  ;;  %s4098_s12 = scalar_lea.vmem [#allocation11], %s2982_s30 }
  0x4f   : > { %s474_s15 = scalar_select %p473_p11, %s4077_s13, 7 }
  0x50   : > { %s481_s20 = scalar_select %p480_p3, %s4083_s29, 7 }
  0x51   : > { %s2985_s14 = sshll.u32 %s474_s15, 3  ;;  %s4100_s19 = scalar_lea.vmem [#allocation12], %s2983_s18 }
  0x52   : > { %s4091_s21 = scalar_lea.vmem %s5469_s1, %s2985_s14  ;;  %s2987_s26 = sshll.u32 %s481_s20, 3 }
  0x53   : > { %s4096_s27 = scalar_lea.vmem %s5470_s2, %s2987_s26  ;;  %p5600_p7 = scmp.ne.s32.totalorder %s3971_s28, 0 }
  0x55   : > { %492 = sbr.rel (%p5600_p7) target bundleno = 92 (0x5c), region = 76 }
  0x5a   : > { %v3862_v0 = vmov 0.0  }
  0x5b   : > { %493 = vst [vmem:[#allocation4] sm:$0xff] %v3862_v0  ;;  %494 = vst [vmem:[#allocation5] sm:$0xff] %v3862_v0 }
  0x5c PF: > { %v510_v1 = vld [vmem:[%s5471_s3 + $0x58] sm:$0xff]  ;;  %v507_v2 = vld [vmem:[%s5471_s3 + $0x40] sm:$0xff]  ;;  %vm528_vm0 = vcmask 261120   ;;  %v5537_v4 = vmov 0.0   ;;  %v504_v5 = vld [vmem:[%s5471_s3 + $0x28] sm:$0xff]  ;;  %v5496_v6 = vmov 0  }
  0x5d   : > { %3193 = vmatprep.subr.mxu1 %v510_v1  ;;  %v4111_v3 = vld [vmem:[%s4091_s21] sm:$0xff]  ;;  %605 = vmatprep.mubr.f32.mxu0 %v5537_v4  ;;  %v501_v7 = vld [vmem:[%s5471_s3 + $0x10] sm:$0xff]  ;;  %v4125_v8 = vld [vmem:[%s4091_s21 + $0x8] sm:$0xff]  ;;  %s990_s18 = sadd.s32 3, %s4083_s29  ;;  %vm3865_vm2 = vmmov 0   ;;  %s2358_s14 = sadd.s32 3, %s4077_s13 }
  0x5e   : > { %3194 = vmatpush3.msra.mxu1 %v510_v1  ;;  %3201 = vmatprep.mubr.msk.f32.mxu1 %vm528_vm0, %v4111_v3  ;;  %v741_v9 = vld [vmem:[%s5472_s4 + $0x50] sm:$0xff]  ;;  %v740_v10 = vld [vmem:[%s5472_s4 + $0x48] sm:$0xff]  ;;  %v738_v12 = vld [vmem:[%s5472_s4 + $0x38] sm:$0xff]  ;;  %s1446_s8 = sadd.s32 1, %s4077_s13  ;;  %s1447_s24 = sadd.s32 2, %s4083_s29 }
  0x5f   : > { %3195 = vmatprep.subr.mxu1 %v507_v2  ;;  %3598 = vset.pattern.permute.xlu0 %v5496_v6  ;;  %v4134_v11 = vld [vmem:[%s4091_s21 + $0x10] sm:$0xff]  ;;  %v508_v15 = vld [vmem:[%s5471_s3 + $0x48] sm:$0xff]  ;;  %v4153_v16 = vld [vmem:[%s4091_s21 + $0x18] sm:$0xff]  ;;  %s1902_s21 = sadd.s32 2, %s4077_s13  ;;  %s1903_s26 = sadd.s32 1, %s4083_s29 }
  0x60   : > { %3196 = vmatpush3.msra.mxu1 %v507_v2  ;;  %3599 = vset.pattern.permute.xlu1 %v5496_v6  ;;  %v509_v13 = vld [vmem:[%s5471_s3 + $0x50] sm:$0xff]  ;;  %v735_v17 = vld [vmem:[%s5472_s4 + $0x20] sm:$0xff]  ;;  %v734_v18 = vld [vmem:[%s5472_s4 + $0x18] sm:$0xff]  ;;  %s2823_s23 = sshll.u32 %s4098_s12, 4  ;;  %s5365_s23 = int_to_ptr.vmem [resolvable:$true] %s2823_s23 }
  0x61   : > { %3197 = vmatprep.subr.mxu1 %v504_v5  ;;  %v737_v14 = vld [vmem:[%s5472_s4 + $0x30] sm:$0xff]  ;;  %565 = vmatprep.subr.mxu0 %v509_v13  ;;  %v732_v19 = vld [vmem:[%s5472_s4 + $0x8] sm:$0xff]  ;;  %v506_v20 = vld [vmem:[%s5471_s3 + $0x38] sm:$0xff] }
  0x62   : > { %3198 = vmatpush3.msra.mxu1 %v504_v5  ;;  %566 = vmatpush1.msra.mxu0 %v508_v15  ;;  %v731_v21 = vld [vmem:[%s5472_s4] sm:$0xff]  ;;  %v505_v22 = vld [vmem:[%s5471_s3 + $0x30] sm:$0xff]  ;;  %v4181_v25 = vld [vmem:[#allocation6 + $0x168] sm:$0xff] }
  0x63   : > { %3199 = vmatprep.subr.mxu1 %v501_v7  ;;  %v4177_v23 = vld [vmem:[%s4096_s27] sm:$0xff]  ;;  %567 = vmatprep.subr.mxu0 %v506_v20  ;;  %v4186_v27 = vld [vmem:[#allocation6 + $0x158] sm:$0xff]  ;;  %v502_v28 = vld [vmem:[%s5471_s3 + $0x18] sm:$0xff] }
  0x64   : > { %3200 = vmatpush3.msra.mxu1 %v501_v7  ;;  %v4179_v24 = vld [vmem:[#allocation6 + $0x170] sm:$0xff]  ;;  %568 = vmatpush1.msra.mxu0 %v505_v22  ;;  %v500_v30 = vld [vmem:[%s5471_s3 + $0x8] sm:$0xff]  ;;  %v4200_v31 = vld [vmem:[#allocation6 + $0x140] sm:$0xff] }
  0x65   : > { %3202 = vmatmul.mubr.msk.f32.vlgmr.msra.gmra.mxu1 %vm528_vm0, %v4125_v8  ;;  %796 = vmatprep.subr.mxu1 %v741_v9  ;;  %v503_v26 = vld [vmem:[%s5471_s3 + $0x20] sm:$0xff]  ;;  %v4206_v33 = vld [vmem:[#allocation6 + $0x138] sm:$0xff]  ;;  %v4209_v34 = vld [vmem:[#allocation6 + $0x128] sm:$0xff] }
  0x66   : > { %797 = vmatpush1.msra.mxu1 %v740_v10  ;;  %3204 = vmatprep.mubr.msk.f32.mxu1 %vm528_vm0, %v4134_v11  ;;  %v4194_v29 = vld [vmem:[#allocation6 + $0x150] sm:$0xff]  ;;  %v742_v35 = vld [vmem:[%s5472_s4 + $0x58] sm:$0xff]  ;;  %v4215_v36 = vld [vmem:[#allocation6 + $0x120] sm:$0xff] }
  0x67   : > { %798 = vmatprep.subr.mxu1 %v738_v12  ;;  %569 = vmatprep.subr.mxu0 %v503_v26  ;;  %v499_v32 = vld [vmem:[%s5471_s3] sm:$0xff]  ;;  %v4223_v38 = vld [vmem:[#allocation6 + $0x108] sm:$0xff]  ;;  %v4226_v39 = vld [vmem:[#allocation6 + $0xf8] sm:$0xff] }
  0x68   : > { %799 = vmatpush1.msra.mxu1 %v737_v14  ;;  %570 = vmatpush1.msra.mxu0 %v502_v28  ;;  %v4218_v37 = vld [vmem:[#allocation6 + $0x110] sm:$0xff]  ;;  %v4236_v42 = vld [vmem:[#allocation6 + $0xe0] sm:$0xff]  ;;  %v728_v43 = vld [vmem:[%s4096_s27 + $0x8] sm:$0xff] }
  0x69   : > { %3205 = vmatmul.mubr.msk.f32.gmra.mxu1 %vm528_vm0, %v4153_v16  ;;  %800 = vmatprep.subr.mxu1 %v735_v17  ;;  %v4229_v40 = vld [vmem:[#allocation6 + $0xf0] sm:$0xff]  ;;  %v4241_v44 = vld [vmem:[#allocation6 + $0xd8] sm:$0xff]  ;;  %v4246_v45 = vld [vmem:[#allocation6 + $0xc8] sm:$0xff] }
  0x6a   : > { %801 = vmatpush1.msra.mxu1 %v734_v18  ;;  %836 = vmatprep.mubr.f32.mxu1 %v5537_v4  ;;  %v739_v41 = vld [vmem:[%s5472_s4 + $0x40] sm:$0xff]  ;;  %v4249_v46 = vld [vmem:[#allocation6 + $0xc0] sm:$0xff]  ;;  %v4256_v48 = vld [vmem:[#allocation6 + $0xa8] sm:$0xff] }
  0x6b   : > { %802 = vmatprep.subr.mxu1 %v732_v19  ;;  %571 = vmatprep.subr.mxu0 %v500_v30  ;;  %v4253_v47 = vld [vmem:[#allocation6 + $0xb0] sm:$0xff]  ;;  %v736_v49 = vld [vmem:[%s5472_s4 + $0x28] sm:$0xff]  ;;  %v4267_v51 = vld [vmem:[%s4096_s27 + $0x10] sm:$0xff] }
  0x6c   : > { %803 = vmatpush1.msra.mxu1 %v731_v21  ;;  %572 = vmatpush1.msra.mxu0 %v499_v32  ;;  %v4263_v50 = vld [vmem:[#allocation6 + $0x98] sm:$0xff]  ;;  %v4270_v52 = vld [vmem:[#allocation6 + $0x90] sm:$0xff]  ;;  %v4275_v53 = vld [vmem:[#allocation6 + $0x80] sm:$0xff] }
  0x6d   : > { %2997 = vmatmul.mubr.msk.f32.vlgmr.msra.gmra.mxu1 %vm528_vm0, %v4177_v23  ;;  %1043 = vmatprep.subr.mxu1 %v4179_v24  ;;  %v4278_v54 = vld [vmem:[#allocation6 + $0x78] sm:$0xff]  ;;  %v4283_v55 = vld [vmem:[#allocation6 + $0x68] sm:$0xff]  ;;  %v4286_v56 = vld [vmem:[#allocation6 + $0x60] sm:$0xff] }
  0x6e   : > { %1044 = vmatpush1.msra.mxu1 %v4181_v25  ;;  %2989 = vmatmul.mubr.msk.f32.vlgmr.msra.gmra.mxu0 %vm528_vm0, %v4111_v3  ;;  %v733_v57 = vld [vmem:[%s5472_s4 + $0x10] sm:$0xff]  ;;  %v4293_v58 = vld [vmem:[#allocation6 + $0x50] sm:$0xff]  ;;  %v4297_v59 = vld [vmem:[%s4096_s27 + $0x18] sm:$0xff] }
  0x6f   : > { %1045 = vmatprep.subr.mxu1 %v4186_v27  ;;  %3207 = vmatprep.subr.mxu0 %v742_v35  ;;  %v4300_v60 = vld [vmem:[#allocation6 + $0x48] sm:$0xff]  ;;  %v4305_v61 = vld [vmem:[#allocation6 + $0x38] sm:$0xff]  ;;  %v4310_v62 = vld [vmem:[#allocation6 + $0x30] sm:$0xff] }
  0x70   : > { %1046 = vmatpush1.msra.mxu1 %v4194_v29  ;;  %3208 = vmatpush3.msra.mxu0 %v742_v35  ;;  %v4313_v63 = vld [vmem:[#allocation6 + $0x20] sm:$0xff]  ;;  %v4316_v0 = vld [vmem:[#allocation6 + $0x18] sm:$0xff]  ;;  %v4321_v1 = vld [vmem:[#allocation6 + $0x8] sm:$0xff] }
  0x71   : > { %1047 = vmatprep.subr.mxu1 %v4200_v31  ;;  %611 = vmatprep.mubr.f32.mxu0 %v5537_v4  ;;  %v4324_v2 = vld [vmem:[#allocation6 + $0x178] sm:$0xff]  ;;  %v4328_v3 = vld [vmem:[#allocation6] sm:$0xff]  ;;  %v4332_v5 = vld [vmem:[#allocation4] sm:$0xff] }
  0x72   : > { %1048 = vmatpush1.msra.mxu1 %v4206_v33  ;;  %842 = vmatprep.mubr.f32.mxu1 %v5537_v4  ;;  %v4334_v7 = vld [vmem:[#allocation9 + $0x170] sm:$0xff]  ;;  %v4340_v9 = vld [vmem:[#allocation9 + $0x168] sm:$0xff]  ;;  %v4344_v10 = vld [vmem:[#allocation9 + $0x158] sm:$0xff] }
  0x73   : > { %1049 = vmatprep.subr.mxu1 %v4209_v34  ;;  %2990 = vmatmul.mubr.msk.f32.gmra.mxu0 %vm528_vm0, %v4125_v8  ;;  %v4338_v8 = vld [vmem:[#allocation6 + $0x160] sm:$0xff]  ;;  %v4350_v12 = vld [vmem:[#allocation9 + $0x150] sm:$0xff]  ;;  %v4360_v15 = vld [vmem:[#allocation9 + $0x138] sm:$0xff] }
  0x74   : > { %1050 = vmatpush1.msra.mxu1 %v4215_v36  ;;  %3209 = vmatprep.subr.mxu0 %v739_v41  ;;  %5601 = vst [vmem:[#allocation28_spill] sm:$0xff] %v4350_v12  ;;  %v4354_v13 = vld [vmem:[#allocation9 + $0x140] sm:$0xff]  ;;  %v4358_v14 = vld [vmem:[#allocation6 + $0x130] sm:$0xff]  ;;  %5603 = vst [vmem:[#allocation30_spill] sm:$0xff] %v4360_v15 }
  0x75   : > { %1051 = vmatprep.subr.mxu1 %v4218_v37  ;;  %2998 = vmatmul.mubr.msk.f32.gmra.mxu1 %vm528_vm0, %v728_v43  ;;  %5602 = vst [vmem:[#allocation29_spill] sm:$0xff] %v4354_v13  ;;  %v4368_v17 = vld [vmem:[#allocation6 + $0x118] sm:$0xff]  ;;  %v4370_v18 = vld [vmem:[#allocation9 + $0x120] sm:$0xff]  ;;  %v4374_v19 = vld [vmem:[#allocation9 + $0x110] sm:$0xff] }
  0x76   : > { %1052 = vmatpush1.msra.mxu1 %v4223_v38  ;;  %3210 = vmatpush3.msra.mxu0 %v739_v41  ;;  %5605 = vst [vmem:[#allocation32_spill] sm:$0xff] %v4370_v18  ;;  %5606 = vst [vmem:[#allocation33_spill] sm:$0xff] %v4374_v19  ;;  %v4378_v20 = vld [vmem:[#allocation6 + $0x100] sm:$0xff]  ;;  %v4380_v21 = vld [vmem:[#allocation9 + $0x108] sm:$0xff] }
  0x77   : > { %1053 = vmatprep.subr.mxu1 %v4226_v39  ;;  %617 = vmatprep.mubr.f32.mxu0 %v5537_v4  ;;  %5607 = vst [vmem:[#allocation34_spill] sm:$0xff] %v4380_v21  ;;  %v4384_v22 = vld [vmem:[#allocation9 + $0xf8] sm:$0xff]  ;;  %v4390_v26 = vld [vmem:[#allocation9 + $0xf0] sm:$0xff]  ;;  %v4394_v28 = vld [vmem:[#allocation9 + $0xe0] sm:$0xff] }
  0x78   : > { %1054 = vmatpush1.msra.mxu1 %v4229_v40  ;;  %848 = vmatprep.mubr.f32.mxu1 %v5537_v4  ;;  %5608 = vst [vmem:[#allocation35_spill] sm:$0xff] %v4384_v22  ;;  %5609 = vst [vmem:[#allocation36_spill] sm:$0xff] %v4390_v26  ;;  %v4398_v30 = vld [vmem:[#allocation6 + $0xd0] sm:$0xff]  ;;  %v4400_v32 = vld [vmem:[#allocation9 + $0xd8] sm:$0xff] }
  0x79   : > { %1055 = vmatprep.subr.mxu1 %v4236_v42  ;;  %2991 = vmatmul.mubr.msk.f32.gmra.mxu0 %vm528_vm0, %v4134_v11  ;;  %v4348_v11 = vld [vmem:[#allocation6 + $0x148] sm:$0xff]  ;;  %5610 = vst [vmem:[#allocation37_spill] sm:$0xff] %v4394_v28  ;;  %5611 = vst [vmem:[#allocation38_spill] sm:$0xff] %v4400_v32  ;;  %v4408_v41 = vld [vmem:[#allocation6 + $0xb8] sm:$0xff] }
  0x7a   : > { %1056 = vmatpush1.msra.mxu1 %v4241_v44  ;;  %3211 = vmatprep.subr.mxu0 %v736_v49  ;;  %v4404_v35 = vld [vmem:[#allocation9 + $0xc8] sm:$0xff] }
  0x7b   : > { %1057 = vmatprep.subr.mxu1 %v4246_v45  ;;  %2999 = vmatmul.mubr.msk.f32.gmra.mxu1 %vm528_vm0, %v4267_v51  ;;  %5612 = vst [vmem:[#allocation39_spill] sm:$0xff] %v4404_v35  ;;  %v4420_v6 = vld [vmem:[#allocation9 + $0xa8] sm:$0xff] }
  0x7c   : > { %1058 = vmatpush1.msra.mxu1 %v4249_v46  ;;  %3212 = vmatpush3.msra.mxu0 %v736_v49  ;;  %v4414_v49 = vld [vmem:[#allocation9 + $0xb0] sm:$0xff]  ;;  %5615 = vst [vmem:[#allocation42_spill] sm:$0xff] %v4420_v6 }
  0x7d   : > { %1059 = vmatprep.subr.mxu1 %v4253_v47  ;;  %623 = vmatprep.mubr.f32.mxu0 %v5537_v4  ;;  %5614 = vst [vmem:[#allocation41_spill] sm:$0xff] %v4414_v49 }
  0x7e   : > { %1060 = vmatpush1.msra.mxu1 %v4256_v48  ;;  %854 = vmatprep.mubr.f32.mxu1 %v5537_v4 }
  0x7f   : > { %1061 = vmatprep.subr.mxu1 %v4263_v50  ;;  %2992 = vmatmul.mubr.msk.f32.gmra.mxu0 %vm528_vm0, %v4153_v16  ;;  %v4364_v16 = vld [vmem:[#allocation9 + $0x128] sm:$0xff] }
  0x80   : > { %1062 = vmatpush1.msra.mxu1 %v4270_v52  ;;  %3213 = vmatprep.subr.mxu0 %v733_v57  ;;  %5604 = vst [vmem:[#allocation31_spill] sm:$0xff] %v4364_v16 }
  0x81   : > { %1063 = vmatprep.subr.mxu1 %v4275_v53  ;;  %3000 = vmatmul.mubr.msk.f32.gmra.mxu1 %vm528_vm0, %v4297_v59 }
  0x82   : > { %1064 = vmatpush1.msra.mxu1 %v4278_v54  ;;  %3214 = vmatpush3.msra.mxu0 %v733_v57  ;;  %v4418_v57 = vld [vmem:[#allocation6 + $0xa0] sm:$0xff] }
  0x83   : > { %1065 = vmatprep.subr.mxu1 %v4283_v55  ;;  %3215 = vmatprep.mubr.msk.f32.mxu0 %vm528_vm0, %v4177_v23  ;;  %v4388_v23 = vld [vmem:[#allocation6 + $0xe8] sm:$0xff] }
  0x84   : > { %1066 = vmatpush1.msra.mxu1 %v4286_v56  ;;  %3221 = vmatprep.subr.mxu0 %v5537_v4 }
  0x85   : > { %1067 = vmatprep.subr.mxu1 %v4293_v58  ;;  %3216 = vmatmul.mubr.msk.f32.vlgmr.msra.gmra.mxu0 %vm528_vm0, %v728_v43  ;;  %v4410_v43 = vld [vmem:[#allocation9 + $0xc0] sm:$0xff] }
  0x86   : > { %1068 = vmatpush1.msra.mxu1 %v4300_v60  ;;  %1107 = vmatprep.mubr.f32.mxu1 %v5537_v4  ;;  %5613 = vst [vmem:[#allocation40_spill] sm:$0xff] %v4410_v43 }
  0x87   : > { %1069 = vmatprep.subr.mxu1 %v4305_v61  ;;  %3222 = vmatpush3.msra.mxu0 %v4324_v2 }
  0x88   : > { %1070 = vmatpush1.msra.mxu1 %v4310_v62  ;;  %3223 = vmatprep.subr.mxu0 %v5537_v4 }
  0x89   : > { %1071 = vmatprep.subr.mxu1 %v4313_v63  ;;  %3224 = vmatpush3.msra.mxu0 %v4338_v8 }
  0x8a   : > { %1072 = vmatpush1.msra.mxu1 %v4316_v0  ;;  %3225 = vmatprep.subr.mxu0 %v5537_v4 }
  0x8b   : > { %1073 = vmatprep.subr.mxu1 %v4321_v1  ;;  %3226 = vmatpush3.msra.mxu0 %v4348_v11 }
  0x8c   : > { %1074 = vmatpush1.msra.mxu1 %v4328_v3  ;;  %3227 = vmatprep.subr.mxu0 %v5537_v4 }
  0x8d   : > { %1108 = vmatmul.mubr.f32.vlgmr.msra.gmra.mxu1 %v4332_v5  ;;  %1260 = vmatprep.subr.mxu1 %v4334_v7 }
  0x8e   : > { %1261 = vmatpush1.msra.mxu1 %v4340_v9  ;;  %3228 = vmatpush3.msra.mxu0 %v4358_v14 }
  0x8f   : > { %1262 = vmatprep.subr.mxu1 %v4344_v10  ;;  %3229 = vmatprep.subr.mxu0 %v5537_v4 }
  0x90   : > { %1263 = vmatpush1.msra.mxu1 %v4350_v12  ;;  %3230 = vmatpush3.msra.mxu0 %v4368_v17 }
  0x91   : > { %1264 = vmatprep.subr.mxu1 %v4354_v13  ;;  %3231 = vmatprep.subr.mxu0 %v5537_v4  ;;  %v4530_v13 = vld [vmem:[#allocation9 + $0x130] sm:$0xff] }
  0x92   : > { %1265 = vmatpush1.msra.mxu1 %v4360_v15  ;;  %3232 = vmatpush3.msra.mxu0 %v4378_v20  ;;  %v993_v15 = vstv %s990_s18 }
  0x93   : > { %1266 = vmatprep.subr.mxu1 %v4364_v16  ;;  %3233 = vmatprep.subr.mxu0 %v5537_v4  ;;  %v991_v16 = vstv %s4077_s13  ;;  %s3866_s13 = smov [#allocation11]  }
  0x94   : > { %1267 = vmatpush1.msra.mxu1 %v4370_v18  ;;  %3234 = vmatpush3.msra.mxu0 %v4388_v23  ;;  %v4484_v18 = vld [vmem:[#allocation9 + $0x18] sm:$0xff] }
  0x95   : > { %1268 = vmatprep.subr.mxu1 %v4374_v19  ;;  %3235 = vmatprep.subr.mxu0 %v5537_v4  ;;  %v4460_v19 = vld [vmem:[#allocation9 + $0x48] sm:$0xff]  ;;  %5627 = vst [vmem:[#allocation54_spill] sm:$0xff] %v4484_v18 }
  0x96   : > { %1269 = vmatpush1.msra.mxu1 %v4380_v21  ;;  %3236 = vmatpush3.msra.mxu0 %v4398_v30  ;;  %v4450_v21 = vld [vmem:[#allocation9 + $0x60] sm:$0xff]  ;;  %5623 = vst [vmem:[#allocation50_spill] sm:$0xff] %v4460_v19 }
  0x97   : > { %1270 = vmatprep.subr.mxu1 %v4384_v22  ;;  %3237 = vmatprep.subr.mxu0 %v5537_v4  ;;  %v4440_v22 = vld [vmem:[#allocation9 + $0x78] sm:$0xff]  ;;  %5621 = vst [vmem:[#allocation48_spill] sm:$0xff] %v4450_v21 }
  0x98   : > { %1271 = vmatpush1.msra.mxu1 %v4390_v26  ;;  %3238 = vmatpush3.msra.mxu0 %v4408_v41  ;;  %v4430_v26 = vld [vmem:[#allocation9 + $0x90] sm:$0xff]  ;;  %5619 = vst [vmem:[#allocation46_spill] sm:$0xff] %v4440_v22 }
  0x99   : > { %1272 = vmatprep.subr.mxu1 %v4394_v28  ;;  %v4424_v28 = vld [vmem:[#allocation9 + $0x98] sm:$0xff]  ;;  %3239 = vmatprep.subr.mxu0 %v5537_v4  ;;  %5617 = vst [vmem:[#allocation44_spill] sm:$0xff] %v4430_v26 }
  0x9a   : > { %1273 = vmatpush1.msra.mxu1 %v4400_v32  ;;  %5616 = vst [vmem:[#allocation43_spill] sm:$0xff] %v4424_v28  ;;  %v4428_v32 = vld [vmem:[#allocation6 + $0x88] sm:$0xff]  ;;  %3240 = vmatpush3.msra.mxu0 %v4418_v57 }
  0x9b   : > { %1274 = vmatprep.subr.mxu1 %v4404_v35  ;;  %v4434_v35 = vld [vmem:[#allocation9 + $0x80] sm:$0xff]  ;;  %3241 = vmatprep.subr.mxu0 %v5537_v4 }
  0x9c   : > { %1275 = vmatpush1.msra.mxu1 %v4410_v43  ;;  %5618 = vst [vmem:[#allocation45_spill] sm:$0xff] %v4434_v35  ;;  %v4438_v43 = vld [vmem:[#allocation6 + $0x70] sm:$0xff]  ;;  %3242 = vmatpush3.msra.mxu0 %v4428_v32 }
  0x9d   : > { %1276 = vmatprep.subr.mxu1 %v4414_v49  ;;  %v4444_v49 = vld [vmem:[#allocation9 + $0x68] sm:$0xff]  ;;  %3243 = vmatprep.subr.mxu0 %v5537_v4 }
  0x9e   : > { %1277 = vmatpush1.msra.mxu1 %v4420_v6  ;;  %5620 = vst [vmem:[#allocation47_spill] sm:$0xff] %v4444_v49  ;;  %v4448_v6 = vld [vmem:[#allocation6 + $0x58] sm:$0xff]  ;;  %3244 = vmatpush3.msra.mxu0 %v4438_v43 }
  0x9f   : > { %1278 = vmatprep.subr.mxu1 %v4424_v28  ;;  %v4454_v28 = vld [vmem:[#allocation9 + $0x50] sm:$0xff]  ;;  %3245 = vmatprep.subr.mxu0 %v5537_v4 }
  0xa0   : > { %1279 = vmatpush1.msra.mxu1 %v4430_v26  ;;  %5622 = vst [vmem:[#allocation49_spill] sm:$0xff] %v4454_v28  ;;  %v4458_v26 = vld [vmem:[#allocation6 + $0x40] sm:$0xff]  ;;  %3246 = vmatpush3.msra.mxu0 %v4448_v6 }
  0xa1   : > { %1280 = vmatprep.subr.mxu1 %v4434_v35  ;;  %3247 = vmatprep.subr.mxu0 %v5537_v4  ;;  %v4472_v35 = vld [vmem:[#allocation9 + $0x30] sm:$0xff] }
  0xa2   : > { %1281 = vmatpush1.msra.mxu1 %v4440_v22  ;;  %v4466_v22 = vld [vmem:[#allocation9 + $0x38] sm:$0xff]  ;;  %3248 = vmatpush3.msra.mxu0 %v4458_v26  ;;  %5625 = vst [vmem:[#allocation52_spill] sm:$0xff] %v4472_v35 }
  0xa3   : > { %1282 = vmatprep.subr.mxu1 %v4444_v49  ;;  %5624 = vst [vmem:[#allocation51_spill] sm:$0xff] %v4466_v22  ;;  %v4470_v49 = vld [vmem:[#allocation6 + $0x28] sm:$0xff]  ;;  %3218 = vmatprep.mubr.msk.f32.mxu0 %vm528_vm0, %v4267_v51 }
  0xa4   : > { %1283 = vmatpush1.msra.mxu1 %v4450_v21  ;;  %3249 = vmatprep.subr.mxu0 %v5537_v4  ;;  %v4477_v21 = vld [vmem:[#allocation9 + $0x20] sm:$0xff]  ;;  %v4494_v51 = vld [vmem:[#allocation9 + $0x8] sm:$0xff] }
  0xa5   : > { %1284 = vmatprep.subr.mxu1 %v4454_v28  ;;  %5626 = vst [vmem:[#allocation53_spill] sm:$0xff] %v4477_v21  ;;  %3219 = vmatmul.mubr.msk.f32.gmra.mxu0 %vm528_vm0, %v4297_v59  ;;  %v4482_v28 = vld [vmem:[#allocation6 + $0x10] sm:$0xff]  ;;  %5628 = vst [vmem:[#allocation55_spill] sm:$0xff] %v4494_v51  ;;  %v4501_v59 = vld [vmem:[#allocation9] sm:$0xff] }
  0xa6   : > { %1285 = vmatpush1.msra.mxu1 %v4460_v19  ;;  %v4489_v19 = vld [vmem:[%s5468_s0] sm:$0xff]  ;;  %3250 = vmatpush3.msra.mxu0 %v4470_v49  ;;  %5629 = vst [vmem:[#allocation56_spill] sm:$0xff] %v4501_v59 }
  0xa7   : > { %1286 = vmatprep.subr.mxu1 %v4466_v22  ;;  %3251 = vmatprep.subr.mxu0 %v5537_v4  ;;  %vm992_vm1 = vcmp.gt.s32.totalorder %v4489_v19, %v991_v16  ;;  %v4509_v22 = vld [vmem:[#allocation5] sm:$0xff]  ;;  %v4516_v16 = vld [vmem:[#allocation9 + $0x160] sm:$0xff]  ;;  %vm994_vm3 = vcmp.gt.s32.totalorder %v4489_v19, %v993_v15 }
  0xa8   : > { %1287 = vmatpush1.msra.mxu1 %v4472_v35  ;;  %3252 = vmatpush3.msra.mxu0 %v4482_v28  ;;  %v4507_v35 = vld [vmem:[#allocation9 + $0x178] sm:$0xff]  ;;  %5630 = vst [vmem:[#allocation57_spill] sm:$0xff] %v4516_v16 }
  0xa9   : > { %1288 = vmatprep.subr.mxu1 %v4477_v21  ;;  %3253 = vmatprep.mubr.msk.f32.mxu0 %vm3865_vm2, %v5537_v4  ;;  %v4538_v15 = vld [vmem:[#allocation9 + $0x118] sm:$0xff] }
  0xaa   : > { %1289 = vmatpush1.msra.mxu1 %v4484_v18  ;;  %3256 = vmatprep.subr.mxu0 %v5537_v4  ;;  %v5631_v18 = vmov 0  }
  0xab   : > { %1290 = vmatprep.subr.mxu1 %v4494_v51  ;;  %3254 = vmatmul.mubr.f32.vlgmr.msra.gmra.mxu0 %v4332_v5  ;;  %v1206_v21 = vsel %vm992_vm1, 1, %v5631_v18  ;;  %v4523_v51 = vld [vmem:[#allocation9 + $0x148] sm:$0xff]  ;;  %v1423_v12 = vsel %vm994_vm3, 1, %v5631_v18 }
  0xac   : > { %1291 = vmatpush1.msra.mxu1 %v4501_v59  ;;  %1324 = vmatprep.mubr.f32.mxu1 %v5537_v4  ;;  %v1904_v59 = vstv %s1902_s21 }
  0xad   : > { %3257 = vmatpush3.msra.mxu0 %v4507_v35  ;;  %1325 = vmatmul.mubr.f32.vlgmr.msra.gmra.mxu1 %v4509_v22  ;;  %vm1905_vm4 = vcmp.gt.s32.totalorder %v4489_v19, %v1904_v59 }
  0xae   : > { %3258 = vmatprep.subr.mxu0 %v5537_v4  ;;  %3288 = vmatprep.mubr.msk.f32.mxu0 %vm3865_vm2, %v5537_v4 }
  0xaf   : > { %3259 = vmatpush3.msra.mxu0 %v4516_v16  ;;  %1208 = vperm.xlu0 %3598, %v1206_v21   ;;  %v2359_v21 = vstv %s2358_s14  ;;  %v4543_v16 = vld [vmem:[#allocation9 + $0x100] sm:$0xff]  ;;  %s3039_s14 = sshll.u32 %s3971_s28, 9 }
  0xb0   : > { %3260 = vmatprep.subr.mxu0 %v5537_v4  ;;  %1500 = vmatprep.subr.mxu1 %v4179_v24  ;;  %v2119_v24 = vsel %vm1905_vm4, 1, %v5631_v18  ;;  %vm2360_vm5 = vcmp.gt.s32.totalorder %v4489_v19, %v2359_v21  ;;  %s5363_s20 = scalar_lea.hbm %s5479_s11, %s3039_s14 }
  0xb1   : > { %3261 = vmatpush3.msra.mxu0 %v4523_v51  ;;  %1501 = vmatpush1.msra.mxu1 %v4181_v25  ;;  %v4551_v25 = vld [vmem:[#allocation9 + $0xe8] sm:$0xff] }
  0xb2   : > { %3262 = vmatprep.subr.mxu0 %v5537_v4  ;;  %1502 = vmatprep.subr.mxu1 %v4186_v27  ;;  %v4556_v27 = vld [vmem:[#allocation9 + $0xd0] sm:$0xff] }
  0xb3   : > { %3263 = vmatpush3.msra.mxu0 %v4530_v13  ;;  %1425 = vperm.xlu0 %3598, %v1423_v12  }
  0xb4   : > { %3264 = vmatprep.subr.mxu0 %v5537_v4  ;;  %1503 = vmatpush1.msra.mxu1 %v4194_v29  ;;  %v2574_v29 = vsel %vm2360_vm5, 1, %v5631_v18 }
  0xb5   : > { %3265 = vmatpush3.msra.mxu0 %v4538_v15  ;;  %1504 = vmatprep.subr.mxu1 %v4200_v31  ;;  %v4563_v31 = vld [vmem:[#allocation9 + $0xb8] sm:$0xff] }
  0xb6   : > { %3266 = vmatprep.subr.mxu0 %v5537_v4  ;;  %1505 = vmatpush1.msra.mxu1 %v4206_v33  ;;  %v4568_v33 = vld [vmem:[#allocation9 + $0xa0] sm:$0xff] }
  0xb7   : > { %3267 = vmatpush3.msra.mxu0 %v4543_v16  ;;  %2121 = vperm.xlu0 %3598, %v2119_v24  }
  0xb8   : > { %3268 = vmatprep.subr.mxu0 %v5537_v4  ;;  %1506 = vmatprep.subr.mxu1 %v4209_v34  ;;  %v4574_v34 = vld [vmem:[#allocation9 + $0x88] sm:$0xff] }
  0xb9   : > { %3269 = vmatpush3.msra.mxu0 %v4551_v25  ;;  %1507 = vmatpush1.msra.mxu1 %v4215_v36  ;;  %v4580_v36 = vld [vmem:[#allocation9 + $0x70] sm:$0xff] }
  0xba   : > { %3270 = vmatprep.subr.mxu0 %v5537_v4  ;;  %1508 = vmatprep.subr.mxu1 %v4218_v37  ;;  %v4586_v37 = vld [vmem:[#allocation9 + $0x58] sm:$0xff] }
  0xbb   : > { %3271 = vmatpush3.msra.mxu0 %v4556_v27  ;;  %2576 = vperm.xlu0 %3598, %v2574_v29  }
  0xbc   : > { %3272 = vmatprep.subr.mxu0 %v5537_v4  ;;  %1509 = vmatpush1.msra.mxu1 %v4223_v38  ;;  %v4592_v38 = vld [vmem:[#allocation9 + $0x40] sm:$0xff] }
  0xbd   : > { %3273 = vmatpush3.msra.mxu0 %v4563_v31  ;;  %1510 = vmatprep.subr.mxu1 %v4226_v39  ;;  %v4598_v39 = vld [vmem:[#allocation9 + $0x28] sm:$0xff] }
  0xbe   : > { %3274 = vmatprep.subr.mxu0 %v5537_v4  ;;  %1511 = vmatpush1.msra.mxu1 %v4229_v40  ;;  %v4604_v40 = vld [vmem:[#allocation9 + $0x10] sm:$0xff] }
  0xbf   : > { %3275 = vmatpush3.msra.mxu0 %v4568_v33  ;;  %1512 = vmatprep.subr.mxu1 %v4236_v42  ;;  %v513_v42 = vlaneseq }
  0xc0   : > { %3276 = vmatprep.subr.mxu0 %v5537_v4  ;;  %1513 = vmatpush1.msra.mxu1 %v4241_v44 }
  0xc1   : > { %3277 = vmatpush3.msra.mxu0 %v4574_v34  ;;  %1514 = vmatprep.subr.mxu1 %v4246_v45  ;;  %v4658_v44 = vshrl.u32 %v513_v42, 7  ;;  %v511_v45 = vld [vmem:[%s5473_s5] sm:$0x7] }
  0xc2   : > { %3278 = vmatprep.subr.mxu0 %v5537_v4  ;;  %1515 = vmatpush1.msra.mxu1 %v4249_v46 }
  0xc3   : > { %3279 = vmatpush3.msra.mxu0 %v4580_v36  ;;  %1516 = vmatprep.subr.mxu1 %v4253_v47 }
  0xc4   : > { %3280 = vmatprep.subr.mxu0 %v5537_v4  ;;  %1517 = vmatpush1.msra.mxu1 %v4256_v48 }
  0xc5   : > { %3281 = vmatpush3.msra.mxu0 %v4586_v37  ;;  %1518 = vmatprep.subr.mxu1 %v4263_v50  ;;  %v515_v50 = vsub.s32 0, %v4658_v44 }
  0xc6   : > { %3282 = vmatprep.subr.mxu0 %v5537_v4  ;;  %1519 = vmatpush1.msra.mxu1 %v4270_v52 }
  0xc7   : > { %3283 = vmatpush3.msra.mxu0 %v4592_v38  ;;  %1520 = vmatprep.subr.mxu1 %v4275_v53  ;;  %v743_v53 = vld [vmem:[%s5474_s6] sm:$0x7] }
  0xc8   : > { %3284 = vmatprep.subr.mxu0 %v5537_v4  ;;  %1521 = vmatpush1.msra.mxu1 %v4278_v54  ;;  %v519_v54 = vsub.s32 1, %v4658_v44 }
  0xc9   : > { %3285 = vmatpush3.msra.mxu0 %v4598_v39  ;;  %1522 = vmatprep.subr.mxu1 %v4283_v55 }
  0xca   : > { %3286 = vmatprep.subr.mxu0 %v5537_v4  ;;  %1523 = vmatpush1.msra.mxu1 %v4286_v56 }
  0xcb   : > { %3287 = vmatpush3.msra.mxu0 %v4604_v40  ;;  %1524 = vmatprep.subr.mxu1 %v4293_v58  ;;  %v4681_v58 = vrot.slane %v743_v53, %v515_v50 }
  0xcc   : > { %3289 = vmatmul.mubr.f32.vlgmr.msra.gmra.mxu0 %v4509_v22  ;;  %3291 = vmatprep.subr.mxu0 %v5537_v4 }
  0xcd   : > { %3292 = vmatpush3.msra.mxu0 %v4324_v2  ;;  %1525 = vmatpush1.msra.mxu1 %v4300_v60 }
  0xce   : > { %3293 = vmatprep.subr.mxu0 %v5537_v4  ;;  %1526 = vmatprep.subr.mxu1 %v4305_v61  ;;  %v1448_v61 = vstv %s1446_s8  ;;  %s5774_s8 = sand.u32 1, %s3848_s25  }
  0xcf   : > { %3294 = vmatpush3.msra.mxu0 %v4338_v8  ;;  %1527 = vmatpush1.msra.mxu1 %v4310_v62  ;;  %v1450_v62 = vstv %s1447_s24  ;;  %vm1449_vm6 = vcmp.gt.s32.totalorder %v4489_v19, %v1448_v61  ;;  %s5371_s24 = scalar_lea.sflag [#allocation8], %s5774_s8 }
  0xd0   : > { %3295 = vmatprep.subr.mxu0 %v5537_v4  ;;  %1528 = vmatprep.subr.mxu1 %v4313_v63  ;;  %vm1451_vm7 = vcmp.gt.s32.totalorder %v4489_v19, %v1450_v62  ;;  %v1663_v2 = vsel %vm1449_vm6, 1, %v5631_v18 }
  0xd1   : > { %3296 = vmatpush3.msra.mxu0 %v4348_v11  ;;  %1529 = vmatpush1.msra.mxu1 %v4316_v0  ;;  %v4689_v0 = vrot.slane %v743_v53, %v519_v54  ;;  %v1880_v11 = vsel %vm1451_vm7, 1, %v5631_v18 }
  0xd2   : > { %3297 = vmatprep.subr.mxu0 %v5537_v4  ;;  %1530 = vmatprep.subr.mxu1 %v4321_v1 }
  0xd3   : > { %3298 = vmatpush3.msra.mxu0 %v4358_v14  ;;  %1531 = vmatpush1.msra.mxu1 %v4328_v3  ;;  %v1906_v3 = vstv %s1903_s26  ;;  %v2361_v14 = vstv %s4083_s29  ;;  %s3734_s26 = scalar_lea.vmem %s5365_s23, 512  ;;  %s3738_s29 = sshll.u32 %s3866_s13, 4  ;;  %s3739_s29 = int_to_ptr.vmem [resolvable:$false] %s3738_s29 }
  0xd4   : > { %3299 = vmatprep.subr.mxu0 %v5537_v4  ;;  %1564 = vmatprep.mubr.f32.mxu1 %v5537_v4  ;;  %vm1907_vm8 = vcmp.gt.s32.totalorder %v4489_v19, %v1906_v3  ;;  %vm2362_vm9 = vcmp.gt.s32.totalorder %v4489_v19, %v2361_v14  ;;  %p3735_p13 = scmp.ne.s32.totalorder %s5365_s23, %s3734_s26  ;;  %s3740_s27 = scalar_lea.vmem %s3739_s29, 1024 }
  0xd5   : > { %3300 = vmatpush3.msra.mxu0 %v4368_v17  ;;  %3323 = vmatprep.mubr.msk.f32.mxu0 %vm3865_vm2, %v5537_v4  ;;  %p3741_p9 = scmp.lt.s32.totalorder %s5365_s23, %s3739_s29  ;;  %p3742_p0 = scmp.lt.s32.totalorder %s3740_s27, %s3734_s26 }
  0xd6   : > { %3301 = vmatprep.subr.mxu0 %v5537_v4  ;;  %1717 = vmatprep.subr.mxu1 %v4334_v7  ;;  %p3736_p2 = pnand %p3735_p13, %p3994_p5 }
  0xd7   : > { %3302 = vmatpush3.msra.mxu0 %v4378_v20  ;;  %1665 = vperm.xlu1 %3599, %v1663_v2   ;;  %v2336_v20 = vsel %vm1907_vm8, 1, %v5631_v18  ;;  %p3743_p12 = por %p3742_p0, %p3741_p9 }
  0xd8   : > { %3303 = vmatprep.subr.mxu0 %v5537_v4  ;;  %p3737_p8 = pneg %p3736_p2 }
  0xd9   : > { %3304 = vmatpush3.msra.mxu0 %v4388_v23 }
  0xda   : > { %3305 = vmatprep.subr.mxu0 %v5537_v4  ;;  %p3744_p10 = pnand %p3743_p12, %p3737_p8 }
  0xdb   : > { %3306 = vmatpush3.msra.mxu0 %v4398_v30  ;;  %1882 = vperm.xlu1 %3599, %v1880_v11   ;;  %v2791_v30 = vsel %vm2362_vm9, 1, %v5631_v18 }
  0xdc   : > { %3307 = vmatprep.subr.mxu0 %v5537_v4 }
  0xdd   : > { %3308 = vmatpush3.msra.mxu0 %v4408_v41 }
  0xde   : > { %3309 = vmatprep.subr.mxu0 %v5537_v4 }
  0xdf   : > { %3310 = vmatpush3.msra.mxu0 %v4418_v57  ;;  %2338 = vperm.xlu1 %3599, %v2336_v20  }
  0xe0   : > { %3311 = vmatprep.subr.mxu0 %v5537_v4 }
  0xe1   : > { %3312 = vmatpush3.msra.mxu0 %v4428_v32  ;;  %v520_v32 = vrot.slane %v511_v45, %v519_v54 }
  0xe2   : > { %3313 = vmatprep.subr.mxu0 %v5537_v4 }
  0xe3   : > { %3314 = vmatpush3.msra.mxu0 %v4438_v43  ;;  %2793 = vperm.xlu1 %3599, %v2791_v30  }
  0xe4   : > { %3315 = vmatprep.subr.mxu0 %v5537_v4 }
  0xe5   : > { %3316 = vmatpush3.msra.mxu0 %v4448_v6  ;;  %v523_v6 = vsub.s32 2, %v4658_v44 }
  0xe6   : > { %3317 = vmatprep.subr.mxu0 %v5537_v4 }
  0xe7   : > { %3318 = vmatpush3.msra.mxu0 %v4458_v26  ;;  %v4666_v46 = vrot.slane %v511_v45, %v523_v6  ;;  %v516_v26 = vrot.slane %v511_v45, %v515_v50  ;;  %v4732_v2 = vrot.slane %v743_v53, %v523_v6 }
  0xe8   : > { %3319 = vmatprep.subr.mxu0 %v5537_v4 }
  0xe9   : > { %3320 = vmatpush3.msra.mxu0 %v4470_v49 }
  0xea   : > { %3321 = vmatprep.subr.mxu0 %v5537_v4 }
  0xeb   : > { %3322 = vmatpush3.msra.mxu0 %v4482_v28 }
  0xec   : > { %3326 = vmatprep.subr.mxu0 %v5537_v4 }
 0x125   : > { %v3203_v47 = vpop.f32.mrf.mxu1 }
 0x126   : > { %v4669_v48 = vadd.f32 %v3203_v47, %v4666_v46 }
 0x127   : > { %v4672_v52 = vpop.f32.mrf.mxu1 }
 0x129   : > { %v3206_v55 = vpop.f32.mrf.mxu1 }
 0x12a   : > { %v4679_v56 = vadd.f32 %v3206_v55, %v4666_v46 }
 0x12b   : > { %v706_v60 = vpop.f32.mrf.mxu1 }
 0x12c   : > { %5632 = vst [vmem:[#allocation58_spill] sm:$0xff] %v4679_v56  ;;  %v4687_v63 = vadd.f32 %v706_v60, %v4666_v46  ;;  %v4989_v56 = vld [vmem:[#allocation6 + $0x18] sm:$0xff] }
 0x12d   : > { %v838_v1 = vpop.f32.mrf.mxu1 }
 0x12e   : > { %5633 = vst [vmem:[#allocation59_spill] sm:$0xff] %v4687_v63  ;;  %v4695_v7 = vadd.f32 %v838_v1, %v4681_v58  ;;  %v607_v17 = vpop.f32.mrf.mxu0 }
 0x12f   : > { %v840_v8 = vpop.f32.mrf.mxu1  ;;  %v608_v20 = vadd.f32 %v607_v17, %v516_v26 }
 0x130   : > { %5634 = vst [vmem:[#allocation60_spill] sm:$0xff] %v4695_v7  ;;  %v4699_v12 = vadd.f32 %v840_v8, %v4689_v0  ;;  %v609_v23 = vpop.f32.mrf.mxu0  ;;  %v4991_v7 = vld [vmem:[#allocation6 + $0x28] sm:$0xff] }
 0x132   : > { %5635 = vst [vmem:[#allocation61_spill] sm:$0xff] %v4699_v12  ;;  %v4985_v12 = vld [vmem:[#allocation6 + $0x20] sm:$0xff] }
 0x133   : > { %v613_v28 = vpop.f32.mrf.mxu0 }
 0x134   : > { %v4706_v41 = vadd.f32 %v613_v28, %v516_v26 }
 0x135   : > { %v844_v43 = vpop.f32.mrf.mxu1  ;;  %v615_v49 = vpop.f32.mrf.mxu0 }
 0x136   : > { %v4709_v57 = vadd.f32 %v844_v43, %v4681_v58  ;;  %v4711_v59 = vadd.f32 %v615_v49, %v520_v32 }
 0x137   : > { %v846_v21 = vpop.f32.mrf.mxu1 }
 0x138   : > { %5636 = vst [vmem:[#allocation62_spill] sm:$0xff] %v4709_v57  ;;  %v4714_v24 = vadd.f32 %v846_v21, %v4689_v0 }
 0x139   : > { %v619_v19 = vpop.f32.mrf.mxu0 }
 0x13a   : > { %5637 = vst [vmem:[#allocation63_spill] sm:$0xff] %v4714_v24  ;;  %v4716_v29 = vadd.f32 %v619_v19, %v516_v26  ;;  %v610_v19 = vadd.f32 %v609_v23, %v520_v32  ;;  %v5005_v24 = vld [vmem:[#allocation9 + $0x170] sm:$0xff] }
 0x13b   : > { %v850_v42 = vpop.f32.mrf.mxu1  ;;  %v621_v18 = vpop.f32.mrf.mxu0 }
 0x13c   : > { %5638 = vst [vmem:[#allocation64_spill] sm:$0xff] %v4716_v29  ;;  %v4719_v45 = vadd.f32 %v850_v42, %v4681_v58  ;;  %v4721_v47 = vadd.f32 %v621_v18, %v520_v32 }
 0x13d   : > { %v852_v50 = vpop.f32.mrf.mxu1 }
 0x13e   : > { %5639 = vst [vmem:[#allocation65_spill] sm:$0xff] %v4721_v47  ;;  %v4724_v54 = vadd.f32 %v852_v50, %v4689_v0 }
 0x13f   : > { %v625_v55 = vpop.f32.mrf.mxu0 }
 0x140   : > { %v4726_v60 = vadd.f32 %v625_v55, %v516_v26  ;;  %v4748_v26 = vld [vmem:[%s5477_s9] ss:$0 sm:$0xff] }
 0x141   : > { %v856_v61 = vpop.f32.mrf.mxu1  ;;  %v627_v62 = vpop.f32.mrf.mxu0 }
 0x142   : > { %5640 = vst [vmem:[#allocation66_spill] sm:$0xff] %v4726_v60  ;;  %v4728_v1 = vadd.f32 %v627_v62, %v520_v32  ;;  %v857_v62 = vadd.f32 %v856_v61, %v4681_v58  ;;  %v4999_v60 = vld [vmem:[#allocation6] sm:$0xff] }
 0x143   : > { %v858_v3 = vpop.f32.mrf.mxu1 }
 0x144   : > { %5641 = vst [vmem:[#allocation67_spill] sm:$0xff] %v4728_v1  ;;  %v4995_v1 = vld [vmem:[#allocation6 + $0x8] sm:$0xff] }
 0x145   : > { %v3217_v8 = vpop.f32.mrf.mxu0 }
 0x146   : > { %v4735_v11 = vadd.f32 %v3217_v8, %v4732_v2 }
 0x147   : > { %v927_v14 = vpop.f32.mrf.mxu0 }
 0x148   : > { %5642 = vst [vmem:[#allocation68_spill] sm:$0xff] %v4735_v11  ;;  %v4738_v28 = vadd.f32 %v927_v14, %v4732_v2  ;;  %v5001_v11 = vld [vmem:[#allocation6 + $0x10] sm:$0xff] }
 0x14a   : > { %5643 = vst [vmem:[#allocation69_spill] sm:$0xff] %v4738_v28  ;;  %v4981_v28 = vld [vmem:[#allocation6 + $0x40] sm:$0xff] }
 0x14d   : > { %v1109_v30 = vpop.f32.mrf.mxu1 }
 0x14e   : > { %v1184_v43 = vadd.f32 %v1109_v30, %v608_v20 }
 0x14f   : > { %v1111_v21 = vpop.f32.mrf.mxu1 }
 0x150   : > { %v3009_v49 = vmul.f32 -1.442695, %v1184_v43  ;;  %v1191_v42 = vadd.f32 %v1111_v21, %v610_v19  ;;  %v697_v43 = vadd.f32 %v4672_v52, %v4666_v46 }
 0x152   : > { %3600 = vpow2.f32 %v3009_v49  ;;  %v3010_v44 = vmul.f32 -1.442695, %v1191_v42 }
 0x154   : > { %3602 = vpow2.f32 %v3010_v44 }
 0x15f   : > { %v3601_v6 = vpop.eup %3600 }
 0x160   : > { %v1188_v53 = vadd.f32 1.0, %v3601_v6  ;;  %v859_v6 = vadd.f32 %v858_v3, %v4689_v0  ;;  %v5644_v3 = vld [vmem:[#allocation28_spill] sm:$0xff] }
 0x161   : > { %v3603_v50 = vpop.eup %3602 }
 0x162   : > { %3604 = vrcp.f32 %v1188_v53  ;;  %v1195_v23 = vadd.f32 1.0, %v3603_v50 }
 0x164   : > { %3606 = vrcp.f32 %v1195_v23 }
 0x165   : > { %v4740_v18 = vpop.f32.mrf.mxu0 }
 0x167   : > { %v937_v55 = vpop.f32.mrf.mxu0 }
 0x168   : > { %v4743_v17 = vadd.f32 %v937_v55, %v4732_v2 }
 0x16b   : > { %v1180_v32 = vpop.f32.mrf.mxu0 }
 0x16c   : > { %v1198_v8 = vadd.f32 %v4748_v26, %v1180_v32 }
 0x16d   : > { %v1326_v20 = vpop.f32.mrf.mxu1  ;;  %v3255_v30 = vpop.f32.mrf.mxu0 }
 0x16e   : > { %v1401_v21 = vadd.f32 %v1326_v20, %v857_v62  ;;  %v1209_v30 = vpop.permute.xlu0 %1208 }
 0x16f   : > { %v3605_v14 = vpop.eup %3604  ;;  %v1328_v44 = vpop.f32.mrf.mxu1  ;;  %vm1210_vm10 = vcmp.eq.s32.totalorder %v1209_v30, 1  ;;  %v5658_v30 = vld [vmem:[#allocation40_spill] sm:$0xff] }
 0x170   : > { %v1199_v49 = vmul.f32 %v3605_v14, %v1198_v8  ;;  %v3011_v42 = vmul.f32 -1.442695, %v1401_v21  ;;  %v1408_v53 = vadd.f32 %v1328_v44, %v859_v6  ;;  %v5645_v14 = vld [vmem:[#allocation57_spill] sm:$0xff]  ;;  %v5652_v6 = vld [vmem:[#allocation34_spill] sm:$0xff] }
 0x171   : > { %v3607_v61 = vpop.eup %3606  ;;  %5681 = vst [vmem:[#allocation34_spill] sm:$0xff] %v4991_v7 }
 0x172   : > { %v1200_v19 = vadd.f32 %v1199_v49, %v697_v43  ;;  %v3012_v58 = vmul.f32 -1.442695, %v1408_v53  ;;  %v1202_v50 = vsub.f32 1.0, %v3607_v61  ;;  %v1204_v52 = vmul.f32 %v3607_v61, %v4332_v5  ;;  %v4773_v43 = vld [vmem:[%s5478_s10] ss:$0 sm:$0xff]  ;;  %v5650_v49 = vld [vmem:[#allocation32_spill] sm:$0xff] }
 0x173   : > { %5647 = vst [vmem:[#allocation28_spill] sm:$0xff] %v4773_v43  ;;  %5679 = vst [vmem:[#allocation32_spill] sm:$0xff] %v4985_v12 }
 0x174   : > { %3608 = vtanh.f32 %v1200_v19 }
 0x175   : > { %3610 = vpow2.f32 %v3011_v42  ;;  %v5651_v42 = vld [vmem:[#allocation33_spill] sm:$0xff] }
 0x176   : > { %3612 = vpow2.f32 %v3012_v58  ;;  %v5654_v58 = vld [vmem:[#allocation36_spill] sm:$0xff]  ;;  %5680 = vst [vmem:[#allocation33_spill] sm:$0xff] %v4989_v56 }
 0x177   : > { %5683 = vst [vmem:[#allocation36_spill] sm:$0xff] %v4999_v60 }
 0x181   : > { %v3609_v55 = vpop.eup %3608 }
 0x182   : > { %v3611_v32 = vpop.eup %3610  ;;  %v1203_v46 = vmul.f32 %v3609_v55, %v1202_v50  ;;  %v5655_v50 = vld [vmem:[#allocation37_spill] sm:$0xff]  ;;  %v5656_v55 = vld [vmem:[#allocation38_spill] sm:$0xff] }
 0x183   : > { %v1405_v23 = vadd.f32 1.0, %v3611_v32  ;;  %v3613_v20 = vpop.eup %3612  ;;  %v5657_v32 = vld [vmem:[#allocation39_spill] sm:$0xff]  ;;  %5684 = vst [vmem:[#allocation37_spill] sm:$0xff] %v5001_v11  ;;  %5685 = vst [vmem:[#allocation38_spill] sm:$0xff] %v5005_v24 }
 0x184   : > { %v1205_v62 = vadd.f32 %v1204_v52, %v1203_v46  ;;  %v1412_v21 = vadd.f32 1.0, %v3613_v20  ;;  %v5663_v46 = vld [vmem:[#allocation45_spill] sm:$0xff]  ;;  %v5665_v52 = vld [vmem:[#allocation47_spill] sm:$0xff] }
 0x185   : > { %3614 = vrcp.f32 %v1405_v23  ;;  %v5667_v23 = vld [vmem:[#allocation49_spill] sm:$0xff] }
 0x186   : > { %v4757_v8 = vsel %vm1210_vm10, %v1205_v62, %v4332_v5  ;;  %v1429_v0 = vsel %vm1210_vm10, %v1205_v62, 0.0  ;;  %v5646_v5 = vld [vmem:[#allocation29_spill] sm:$0xff]  ;;  %3616 = vrcp.f32 %v1412_v21  ;;  %v5668_v62 = vld [vmem:[#allocation50_spill] sm:$0xff] }
 0x187   : > { %1430 = vst [vmem:[%s4098_s12] sm:$0xff] %v1429_v0  ;;  %1565 = vmatmul.mubr.f32.vlgmr.msra.gmra.mxu1 %v4757_v8  ;;  %3324 = vmatmul.mubr.f32.vlgmr.msra.gmra.mxu0 %v4757_v8  ;;  %v5669_v0 = vld [vmem:[#allocation51_spill] sm:$0xff]  ;;  %v4849_v21 = vld [vmem:[#allocation6 + $0x168] sm:$0xff] }
 0x188   : > { %1718 = vmatpush1.msra.mxu1 %v4340_v9  ;;  %3327 = vmatpush3.msra.mxu0 %v4507_v35  ;;  %v5648_v9 = vld [vmem:[#allocation30_spill] sm:$0xff] }
 0x189   : > { %1719 = vmatprep.subr.mxu1 %v4344_v10  ;;  %3328 = vmatprep.subr.mxu0 %v5537_v4  ;;  %v5649_v10 = vld [vmem:[#allocation31_spill] sm:$0xff] }
 0x18a   : > { %1720 = vmatpush1.msra.mxu1 %v5644_v3  ;;  %3329 = vmatpush3.msra.mxu0 %v5645_v14  ;;  %v5671_v3 = vld [vmem:[#allocation53_spill] sm:$0xff]  ;;  %5678 = vst [vmem:[#allocation31_spill] sm:$0xff] %v4981_v28 }
 0x18b   : > { %1721 = vmatprep.subr.mxu1 %v5646_v5  ;;  %3330 = vmatprep.subr.mxu0 %v5537_v4  ;;  %v5672_v5 = vld [vmem:[#allocation54_spill] sm:$0xff] }
 0x18c   : > { %1722 = vmatpush1.msra.mxu1 %v5648_v9  ;;  %3331 = vmatpush3.msra.mxu0 %v4523_v51  ;;  %v1397_v35 = vpop.f32.mrf.mxu0  ;;  %v5653_v51 = vld [vmem:[#allocation35_spill] sm:$0xff] }
 0x18d   : > { %1723 = vmatprep.subr.mxu1 %v5649_v10  ;;  %3332 = vmatprep.subr.mxu0 %v5537_v4  ;;  %v1415_v19 = vadd.f32 %v4773_v43, %v1397_v35  ;;  %v5674_v10 = vld [vmem:[#allocation56_spill] sm:$0xff]  ;;  %5682 = vst [vmem:[#allocation35_spill] sm:$0xff] %v4995_v1 }
 0x18e   : > { %1724 = vmatpush1.msra.mxu1 %v5650_v49  ;;  %3333 = vmatpush3.msra.mxu0 %v4530_v13  ;;  %v3290_v44 = vpop.f32.mrf.mxu0  ;;  %v943_v13 = vadd.f32 %v4740_v18, %v4732_v2  ;;  %v5660_v2 = vld [vmem:[#allocation42_spill] sm:$0xff]  ;;  %v5661_v18 = vld [vmem:[#allocation43_spill] sm:$0xff] }
 0x18f   : > { %1725 = vmatprep.subr.mxu1 %v5651_v42  ;;  %3334 = vmatprep.subr.mxu0 %v5537_v4  ;;  %v4859_v42 = vld [vmem:[#allocation6 + $0x150] sm:$0xff]  ;;  %v4861_v44 = vld [vmem:[#allocation6 + $0x160] sm:$0xff] }
 0x190   : > { %1726 = vmatpush1.msra.mxu1 %v5652_v6  ;;  %3335 = vmatpush3.msra.mxu0 %v4538_v15  ;;  %v4865_v6 = vld [vmem:[#allocation6 + $0x140] sm:$0xff] }
 0x191   : > { %1727 = vmatprep.subr.mxu1 %v5653_v51  ;;  %3336 = vmatprep.subr.mxu0 %v5537_v4  ;;  %v4869_v51 = vld [vmem:[#allocation6 + $0x138] sm:$0xff] }
 0x192   : > { %v3615_v53 = vpop.eup %3614  ;;  %1728 = vmatpush1.msra.mxu1 %v5654_v58  ;;  %3337 = vmatpush3.msra.mxu0 %v4543_v16  ;;  %v5659_v16 = vld [vmem:[#allocation41_spill] sm:$0xff] }
 0x193   : > { %v1416_v61 = vmul.f32 %v3615_v53, %v1415_v19  ;;  %1729 = vmatprep.subr.mxu1 %v5655_v50  ;;  %3338 = vmatprep.subr.mxu0 %v5537_v4  ;;  %v4851_v19 = vld [vmem:[#allocation6 + $0x178] sm:$0xff]  ;;  %v4871_v53 = vld [vmem:[#allocation6 + $0x148] sm:$0xff]  ;;  %v4885_v50 = vld [vmem:[#allocation6 + $0x110] sm:$0xff] }
 0x194   : > { %1730 = vmatpush1.msra.mxu1 %v5656_v55  ;;  %3339 = vmatpush3.msra.mxu0 %v4551_v25  ;;  %v5662_v25 = vld [vmem:[#allocation44_spill] sm:$0xff]  ;;  %v4875_v58 = vld [vmem:[#allocation6 + $0x128] sm:$0xff] }
 0x195   : > { %v1417_v15 = vadd.f32 %v1416_v61, %v943_v13  ;;  %1731 = vmatprep.subr.mxu1 %v5657_v32  ;;  %3340 = vmatprep.subr.mxu0 %v5537_v4  ;;  %v4879_v13 = vld [vmem:[#allocation6 + $0x120] sm:$0xff]  ;;  %v4881_v61 = vld [vmem:[#allocation6 + $0x130] sm:$0xff]  ;;  %v4889_v55 = vld [vmem:[#allocation6 + $0x108] sm:$0xff] }
 0x196   : > { %1732 = vmatpush1.msra.mxu1 %v5658_v30  ;;  %3341 = vmatpush3.msra.mxu0 %v4556_v27  ;;  %v5664_v27 = vld [vmem:[#allocation46_spill] sm:$0xff]  ;;  %v4895_v32 = vld [vmem:[#allocation6 + $0xf8] sm:$0xff] }
 0x197   : > { %3618 = vtanh.f32 %v1417_v15  ;;  %1733 = vmatprep.subr.mxu1 %v5659_v16  ;;  %3342 = vmatprep.subr.mxu0 %v5537_v4  ;;  %v4891_v15 = vld [vmem:[#allocation6 + $0x118] sm:$0xff]  ;;  %v4899_v30 = vld [vmem:[#allocation6 + $0xf0] sm:$0xff]  ;;  %v4901_v16 = vld [vmem:[#allocation6 + $0x100] sm:$0xff] }
 0x198   : > { %1734 = vmatpush1.msra.mxu1 %v5660_v2  ;;  %3343 = vmatpush3.msra.mxu0 %v4563_v31  ;;  %v5666_v31 = vld [vmem:[#allocation48_spill] sm:$0xff] }
 0x199   : > { %1735 = vmatprep.subr.mxu1 %v5661_v18  ;;  %3344 = vmatprep.subr.mxu0 %v5537_v4  ;;  %v4905_v2 = vld [vmem:[#allocation6 + $0xe0] sm:$0xff]  ;;  %v4909_v18 = vld [vmem:[#allocation6 + $0xd8] sm:$0xff] }
 0x19a   : > { %1736 = vmatpush1.msra.mxu1 %v5662_v25  ;;  %3345 = vmatpush3.msra.mxu0 %v4568_v33  ;;  %v3617_v33 = vpop.eup %3616  ;;  %v4911_v25 = vld [vmem:[#allocation6 + $0xe8] sm:$0xff] }
 0x19b   : > { %1737 = vmatprep.subr.mxu1 %v5663_v46  ;;  %3346 = vmatprep.subr.mxu0 %v5537_v4  ;;  %v1421_v9 = vmul.f32 %v3617_v33, %v4509_v22  ;;  %v4915_v46 = vld [vmem:[#allocation6 + $0xc8] sm:$0xff] }
 0x19c   : > { %1738 = vmatpush1.msra.mxu1 %v5664_v27  ;;  %3347 = vmatpush3.msra.mxu0 %v4574_v34  ;;  %v5670_v34 = vld [vmem:[#allocation52_spill] sm:$0xff] }
 0x19d   : > { %1739 = vmatprep.subr.mxu1 %v5665_v52  ;;  %3348 = vmatprep.subr.mxu0 %v5537_v4  ;;  %v4919_v27 = vld [vmem:[#allocation6 + $0xc0] sm:$0xff]  ;;  %v4921_v52 = vld [vmem:[#allocation6 + $0xd0] sm:$0xff] }
 0x19e   : > { %1740 = vmatpush1.msra.mxu1 %v5666_v31  ;;  %3349 = vmatpush3.msra.mxu0 %v4580_v36  ;;  %v1419_v36 = vsub.f32 1.0, %v3617_v33  ;;  %v4925_v31 = vld [vmem:[#allocation6 + $0xb0] sm:$0xff]  ;;  %v4931_v33 = vld [vmem:[#allocation6 + $0xb8] sm:$0xff] }
 0x19f   : > { %1741 = vmatprep.subr.mxu1 %v5667_v23  ;;  %3350 = vmatprep.subr.mxu0 %v5537_v4  ;;  %v4929_v23 = vld [vmem:[#allocation6 + $0xa8] sm:$0xff] }
 0x1a0   : > { %1742 = vmatpush1.msra.mxu1 %v5668_v62  ;;  %3351 = vmatpush3.msra.mxu0 %v4586_v37  ;;  %v5673_v37 = vld [vmem:[#allocation55_spill] sm:$0xff] }
 0x1a1   : > { %1743 = vmatprep.subr.mxu1 %v5669_v0  ;;  %3352 = vmatprep.subr.mxu0 %v5537_v4  ;;  %v4935_v62 = vld [vmem:[#allocation6 + $0x98] sm:$0xff]  ;;  %v4939_v0 = vld [vmem:[#allocation6 + $0x90] sm:$0xff] }
 0x1a2   : > { %1744 = vmatpush1.msra.mxu1 %v5670_v34  ;;  %3353 = vmatpush3.msra.mxu0 %v4592_v38  ;;  %v1426_v38 = vpop.permute.xlu0 %1425  ;;  %v4941_v34 = vld [vmem:[#allocation6 + $0xa0] sm:$0xff] }
 0x1a3   : > { %1745 = vmatprep.subr.mxu1 %v5671_v3  ;;  %3354 = vmatprep.subr.mxu0 %v5537_v4  ;;  %vm1427_vm11 = vcmp.eq.s32.totalorder %v1426_v38, 1  ;;  %v4945_v3 = vld [vmem:[#allocation6 + $0x80] sm:$0xff]  ;;  %v4971_v38 = vld [vmem:[#allocation6 + $0x58] sm:$0xff] }
 0x1a4   : > { %v3619_v14 = vpop.eup %3618  ;;  %1746 = vmatpush1.msra.mxu1 %v5672_v5  ;;  %3355 = vmatpush3.msra.mxu0 %v4598_v39  ;;  %v4955_v5 = vld [vmem:[#allocation6 + $0x68] sm:$0xff]  ;;  %5675 = vst [vmem:[#allocation57_spill] sm:$0xff] %v4971_v38 }
 0x1a5   : > { %1747 = vmatprep.subr.mxu1 %v5673_v37  ;;  %3356 = vmatprep.subr.mxu0 %v5537_v4  ;;  %v1420_v20 = vmul.f32 %v3619_v14, %v1419_v36  ;;  %v4949_v36 = vld [vmem:[#allocation6 + $0x78] sm:$0xff]  ;;  %v4951_v14 = vld [vmem:[#allocation6 + $0x88] sm:$0xff]  ;;  %v4959_v37 = vld [vmem:[#allocation6 + $0x60] sm:$0xff] }
 0x1a6   : > { %1748 = vmatpush1.msra.mxu1 %v5674_v10  ;;  %1781 = vmatprep.mubr.f32.mxu1 %v5537_v4  ;;  %v4969_v10 = vld [vmem:[#allocation6 + $0x48] sm:$0xff] }
 0x1a7   : > { %3357 = vmatpush3.msra.mxu0 %v4604_v40  ;;  %3358 = vmatprep.mubr.msk.f32.mxu0 %vm3865_vm2, %v5537_v4  ;;  %v1422_v35 = vadd.f32 %v1421_v9, %v1420_v20  ;;  %v4846_v40 = vld [vmem:[#allocation6 + $0x170] sm:$0xff] }
 0x1a8   : > { %3361 = vmatprep.subr.mxu0 %v5537_v4  ;;  %1956 = vmatprep.subr.mxu1 %v4846_v40  ;;  %v4961_v20 = vld [vmem:[#allocation6 + $0x70] sm:$0xff] }
 0x1a9   : > { %v4838_v39 = vsel %vm1427_vm11, %v1422_v35, %v4509_v22  ;;  %v1431_v49 = vsel %vm1427_vm11, %v1422_v35, 0.0  ;;  %v4855_v22 = vld [vmem:[#allocation6 + $0x158] sm:$0xff]  ;;  %v4965_v9 = vld [vmem:[#allocation6 + $0x50] sm:$0xff] }
 0x1aa   : > { %3013 = vst [vmem:[%s4100_s19 + $0x18] sm:$0xff] %v1431_v49  ;;  %1782 = vmatmul.mubr.f32.vlgmr.msra.gmra.mxu1 %v4838_v39  ;;  %3359 = vmatmul.mubr.f32.vlgmr.msra.gmra.mxu0 %v4838_v39  ;;  %v4975_v35 = vld [vmem:[#allocation6 + $0x38] sm:$0xff]  ;;  %v4979_v49 = vld [vmem:[#allocation6 + $0x30] sm:$0xff] }
 0x1ab   : > { %2020 = vmatprep.mubr.f32.mxu1 %v5537_v4  ;;  %3393 = vmatprep.mubr.msk.f32.mxu0 %vm3865_vm2, %v5537_v4  ;;  %5676 = vst [vmem:[#allocation29_spill] sm:$0xff] %v4975_v35  ;;  %5677 = vst [vmem:[#allocation30_spill] sm:$0xff] %v4979_v49 }
 0x1ac   : > { %1957 = vmatpush1.msra.mxu1 %v4849_v21  ;;  %3362 = vmatpush3.msra.mxu0 %v4851_v19 }
 0x1ad   : > { %1958 = vmatprep.subr.mxu1 %v4855_v22  ;;  %3363 = vmatprep.subr.mxu0 %v5537_v4 }
 0x1ae   : > { %1959 = vmatpush1.msra.mxu1 %v4859_v42  ;;  %3364 = vmatpush3.msra.mxu0 %v4861_v44 }
 0x1af   : > { %1960 = vmatprep.subr.mxu1 %v4865_v6  ;;  %3365 = vmatprep.subr.mxu0 %v5537_v4 }
 0x1b0   : > { %1961 = vmatpush1.msra.mxu1 %v4869_v51  ;;  %3366 = vmatpush3.msra.mxu0 %v4871_v53 }
 0x1b1   : > { %1962 = vmatprep.subr.mxu1 %v4875_v58  ;;  %3367 = vmatprep.subr.mxu0 %v5537_v4 }
 0x1b2   : > { %1963 = vmatpush1.msra.mxu1 %v4879_v13  ;;  %3368 = vmatpush3.msra.mxu0 %v4881_v61 }
 0x1b3   : > { %1964 = vmatprep.subr.mxu1 %v4885_v50  ;;  %3369 = vmatprep.subr.mxu0 %v5537_v4 }
 0x1b4   : > { %1965 = vmatpush1.msra.mxu1 %v4889_v55  ;;  %3370 = vmatpush3.msra.mxu0 %v4891_v15 }
 0x1b5   : > { %1966 = vmatprep.subr.mxu1 %v4895_v32  ;;  %3371 = vmatprep.subr.mxu0 %v5537_v4 }
 0x1b6   : > { %1967 = vmatpush1.msra.mxu1 %v4899_v30  ;;  %3372 = vmatpush3.msra.mxu0 %v4901_v16 }
 0x1b7   : > { %1968 = vmatprep.subr.mxu1 %v4905_v2  ;;  %3373 = vmatprep.subr.mxu0 %v5537_v4 }
 0x1b8   : > { %1969 = vmatpush1.msra.mxu1 %v4909_v18  ;;  %3374 = vmatpush3.msra.mxu0 %v4911_v25 }
 0x1b9   : > { %1970 = vmatprep.subr.mxu1 %v4915_v46  ;;  %3375 = vmatprep.subr.mxu0 %v5537_v4 }
 0x1ba   : > { %1971 = vmatpush1.msra.mxu1 %v4919_v27  ;;  %3376 = vmatpush3.msra.mxu0 %v4921_v52 }
 0x1bb   : > { %1972 = vmatprep.subr.mxu1 %v4925_v31  ;;  %3377 = vmatprep.subr.mxu0 %v5537_v4 }
 0x1bc   : > { %1973 = vmatpush1.msra.mxu1 %v4929_v23  ;;  %3378 = vmatpush3.msra.mxu0 %v4931_v33 }
 0x1bd   : > { %1974 = vmatprep.subr.mxu1 %v4935_v62  ;;  %3379 = vmatprep.subr.mxu0 %v5537_v4 }
 0x1be   : > { %1975 = vmatpush1.msra.mxu1 %v4939_v0  ;;  %3380 = vmatpush3.msra.mxu0 %v4941_v34 }
 0x1bf   : > { %1976 = vmatprep.subr.mxu1 %v4945_v3  ;;  %3381 = vmatprep.subr.mxu0 %v5537_v4 }
 0x1c0   : > { %1977 = vmatpush1.msra.mxu1 %v4949_v36  ;;  %3382 = vmatpush3.msra.mxu0 %v4951_v14 }
 0x1c1   : > { %1978 = vmatprep.subr.mxu1 %v4955_v5  ;;  %3383 = vmatprep.subr.mxu0 %v5537_v4 }
 0x1c2   : > { %1979 = vmatpush1.msra.mxu1 %v4959_v37  ;;  %3384 = vmatpush3.msra.mxu0 %v4961_v20 }
 0x1c3   : > { %1980 = vmatprep.subr.mxu1 %v4965_v9  ;;  %3385 = vmatprep.subr.mxu0 %v5537_v4 }
 0x1c4   : > { %1981 = vmatpush1.msra.mxu1 %v4969_v10  ;;  %3386 = vmatpush3.msra.mxu0 %v4971_v38 }
 0x1c5   : > { %1982 = vmatprep.subr.mxu1 %v4975_v35  ;;  %3387 = vmatprep.subr.mxu0 %v5537_v4 }
 0x1c6   : > { %1983 = vmatpush1.msra.mxu1 %v4979_v49  ;;  %3388 = vmatpush3.msra.mxu0 %v4981_v28 }
 0x1c7   : > { %1984 = vmatprep.subr.mxu1 %v4985_v12  ;;  %3389 = vmatprep.subr.mxu0 %v5537_v4 }
 0x1c8   : > { %1985 = vmatpush1.msra.mxu1 %v4989_v56  ;;  %3390 = vmatpush3.msra.mxu0 %v4991_v7 }
 0x1c9   : > { %1986 = vmatprep.subr.mxu1 %v4995_v1  ;;  %3391 = vmatprep.subr.mxu0 %v5537_v4 }
 0x1ca   : > { %1987 = vmatpush1.msra.mxu1 %v4999_v60  ;;  %3392 = vmatpush3.msra.mxu0 %v5001_v11 }
 0x1cb   : > { %2173 = vmatprep.subr.mxu1 %v5005_v24  ;;  %3396 = vmatprep.subr.mxu0 %v5537_v4 }
 0x247   : > { %v1566_v63 = vpop.f32.mrf.mxu1  ;;  %v1637_v57 = vpop.f32.mrf.mxu0 }
 0x248   : > { %v1641_v47 = vadd.f32 %v1566_v63, %v4706_v41  ;;  %v1655_v24 = vadd.f32 %v4748_v26, %v1637_v57 }
 0x249   : > { %v3325_v29 = vpop.f32.mrf.mxu0  ;;  %v1568_v7 = vpop.f32.mrf.mxu1 }
 0x24a   : > { %v3014_v1 = vmul.f32 -1.442695, %v1641_v47  ;;  %v1648_v56 = vadd.f32 %v1568_v7, %v4711_v59 }
 0x24c   : > { %3620 = vpow2.f32 %v3014_v1  ;;  %v3015_v12 = vmul.f32 -1.442695, %v1648_v56  ;;  %v1666_v1 = vpop.permute.xlu1 %1665 }
 0x24d   : > { %vm1667_vm12 = vcmp.eq.s32.totalorder %v1666_v1, 1  ;;  %v5060_v1 = vld [vmem:[#allocation9 + $0x108] sm:$0xff] }
 0x24e   : > { %3622 = vpow2.f32 %v3015_v12  ;;  %5691 = vst [vmem:[#allocation43_spill] sm:$0xff] %v5060_v1 }
 0x259   : > { %v3621_v60 = vpop.eup %3620 }
 0x25a   : > { %v1645_v11 = vadd.f32 1.0, %v3621_v60 }
 0x25b   : > { %v3623_v28 = vpop.eup %3622 }
 0x25c   : > { %3624 = vrcp.f32 %v1645_v11  ;;  %v1652_v49 = vadd.f32 1.0, %v3623_v28 }
 0x25e   : > { %3626 = vrcp.f32 %v1652_v49 }
 0x269   : > { %v3625_v4 = vpop.eup %3624 }
 0x26a   : > { %v1656_v35 = vmul.f32 %v3625_v4, %v1655_v24  ;;  %v1783_v38 = vpop.f32.mrf.mxu1  ;;  %v5012_v63 = vpop.f32.mrf.mxu0 }
 0x26b   : > { %v1858_v41 = vadd.f32 %v1783_v38, %v4719_v45  ;;  %v3627_v60 = vpop.eup %3626  ;;  %v5018_v38 = vld [vmem:[#allocation9 + $0x168] sm:$0xff] }
 0x26c   : > { %v1657_v29 = vadd.f32 %v1656_v35, %v4669_v48  ;;  %v3360_v7 = vpop.f32.mrf.mxu0  ;;  %v1785_v12 = vpop.f32.mrf.mxu1  ;;  %v1659_v4 = vsub.f32 1.0, %v3627_v60  ;;  %v1661_v45 = vmul.f32 %v3627_v60, %v4757_v8  ;;  %v5020_v35 = vld [vmem:[#allocation9 + $0x178] sm:$0xff]  ;;  %v5050_v60 = vld [vmem:[#allocation9 + $0x120] sm:$0xff] }
 0x26d   : > { %v3016_v56 = vmul.f32 -1.442695, %v1858_v41  ;;  %v1865_v59 = vadd.f32 %v1785_v12, %v4724_v54  ;;  %v5025_v41 = vld [vmem:[#allocation9 + $0x158] sm:$0xff]  ;;  %v5032_v7 = vld [vmem:[#allocation9 + $0x160] sm:$0xff]  ;;  %5688 = vst [vmem:[#allocation40_spill] sm:$0xff] %v5050_v60 }
 0x26e   : > { %3628 = vtanh.f32 %v1657_v29  ;;  %v5030_v29 = vld [vmem:[#allocation9 + $0x150] sm:$0xff]  ;;  %v5040_v12 = vld [vmem:[#allocation9 + $0x138] sm:$0xff] }
 0x26f   : > { %3630 = vpow2.f32 %v3016_v56  ;;  %v3017_v47 = vmul.f32 -1.442695, %v1865_v59  ;;  %v5036_v56 = vld [vmem:[#allocation9 + $0x140] sm:$0xff]  ;;  %v5042_v59 = vld [vmem:[#allocation9 + $0x148] sm:$0xff] }
 0x271   : > { %3632 = vpow2.f32 %v3017_v47  ;;  %v5046_v47 = vld [vmem:[#allocation9 + $0x128] sm:$0xff] }
 0x272   : > { %5687 = vst [vmem:[#allocation39_spill] sm:$0xff] %v5046_v47 }
 0x27b   : > { %v3629_v57 = vpop.eup %3628 }
 0x27c   : > { %v3631_v24 = vpop.eup %3630  ;;  %v1660_v11 = vmul.f32 %v3629_v57, %v1659_v4  ;;  %v5052_v4 = vld [vmem:[#allocation9 + $0x130] sm:$0xff] }
 0x27d   : > { %v1862_v28 = vadd.f32 1.0, %v3631_v24  ;;  %5689 = vst [vmem:[#allocation41_spill] sm:$0xff] %v5052_v4  ;;  %v5056_v24 = vld [vmem:[#allocation9 + $0x110] sm:$0xff] }
 0x27e   : > { %v1662_v48 = vadd.f32 %v1661_v45, %v1660_v11  ;;  %v3633_v57 = vpop.eup %3632  ;;  %5690 = vst [vmem:[#allocation42_spill] sm:$0xff] %v5056_v24  ;;  %v5062_v11 = vld [vmem:[#allocation9 + $0x118] sm:$0xff] }
 0x27f   : > { %3634 = vrcp.f32 %v1862_v28  ;;  %5692 = vst [vmem:[#allocation44_spill] sm:$0xff] %v5062_v11  ;;  %v5066_v45 = vld [vmem:[#allocation9 + $0xf8] sm:$0xff]  ;;  %v1869_v28 = vadd.f32 1.0, %v3633_v57 }
 0x280   : > { %v5023_v54 = vsel %vm1667_vm12, %v1662_v48, %v4757_v8  ;;  %v1886_v49 = vsel %vm1667_vm12, %v1662_v48, 0.0  ;;  %v5686_v8 = vmov 0.0   ;;  %5693 = vst [vmem:[#allocation45_spill] sm:$0xff] %v5066_v45  ;;  %v5070_v48 = vld [vmem:[#allocation9 + $0xf0] sm:$0xff]  ;;  %v5082_v57 = vld [vmem:[#allocation9 + $0xd8] sm:$0xff] }
 0x281   : > { %3018 = vst [vmem:[%s4098_s12 + $0x8] sm:$0xff] %v1886_v49  ;;  %2021 = vmatmul.mubr.f32.vlgmr.msra.gmra.mxu1 %v5023_v54  ;;  %3394 = vmatmul.mubr.f32.vlgmr.msra.gmra.mxu0 %v5023_v54  ;;  %v5072_v49 = vld [vmem:[#allocation9 + $0x100] sm:$0xff]  ;;  %5695 = vst [vmem:[#allocation47_spill] sm:$0xff] %v5082_v57  ;;  %3636 = vrcp.f32 %v1869_v28  ;;  %v5109_v28 = vld [vmem:[#allocation9 + $0x98] sm:$0xff] }
 0x282   : > { %2174 = vmatpush1.msra.mxu1 %v5018_v38  ;;  %3397 = vmatpush3.msra.mxu0 %v5020_v35  ;;  %5694 = vst [vmem:[#allocation46_spill] sm:$0xff] %v5072_v49  ;;  %5703 = vst [vmem:[#allocation55_spill] sm:$0xff] %v5109_v28 }
 0x283   : > { %2175 = vmatprep.subr.mxu1 %v5025_v41  ;;  %3398 = vmatprep.subr.mxu0 %v5686_v8 }
 0x284   : > { %2176 = vmatpush1.msra.mxu1 %v5030_v29  ;;  %3399 = vmatpush3.msra.mxu0 %v5032_v7 }
 0x285   : > { %2177 = vmatprep.subr.mxu1 %v5036_v56  ;;  %3400 = vmatprep.subr.mxu0 %v5686_v8 }
 0x286   : > { %2178 = vmatpush1.msra.mxu1 %v5040_v12  ;;  %3401 = vmatpush3.msra.mxu0 %v5042_v59 }
 0x287   : > { %2179 = vmatprep.subr.mxu1 %v5046_v47  ;;  %3402 = vmatprep.subr.mxu0 %v5686_v8  ;;  %v5076_v47 = vld [vmem:[#allocation9 + $0xe0] sm:$0xff] }
 0x288   : > { %2180 = vmatpush1.msra.mxu1 %v5050_v60  ;;  %3403 = vmatpush3.msra.mxu0 %v5052_v4  ;;  %v1872_v4 = vadd.f32 %v4773_v43, %v5012_v63  ;;  %v5092_v63 = vld [vmem:[#allocation9 + $0xc0] sm:$0xff]  ;;  %v5098_v43 = vld [vmem:[#allocation9 + $0xb0] sm:$0xff] }
 0x289   : > { %2181 = vmatprep.subr.mxu1 %v5056_v24  ;;  %3404 = vmatprep.subr.mxu0 %v5686_v8  ;;  %v5084_v24 = vld [vmem:[#allocation9 + $0xe8] sm:$0xff]  ;;  %5698 = vst [vmem:[#allocation50_spill] sm:$0xff] %v5092_v63  ;;  %5700 = vst [vmem:[#allocation52_spill] sm:$0xff] %v5098_v43 }
 0x28a   : > { %2182 = vmatpush1.msra.mxu1 %v5060_v1  ;;  %3405 = vmatpush3.msra.mxu0 %v5062_v11  ;;  %5696 = vst [vmem:[#allocation48_spill] sm:$0xff] %v5084_v24  ;;  %v5088_v1 = vld [vmem:[#allocation9 + $0xc8] sm:$0xff] }
 0x28b   : > { %2183 = vmatprep.subr.mxu1 %v5066_v45  ;;  %3406 = vmatprep.subr.mxu0 %v5686_v8  ;;  %5697 = vst [vmem:[#allocation49_spill] sm:$0xff] %v5088_v1  ;;  %v5094_v45 = vld [vmem:[#allocation9 + $0xd0] sm:$0xff] }
 0x28c   : > { %v3635_v60 = vpop.eup %3634  ;;  %2184 = vmatpush1.msra.mxu1 %v5070_v48  ;;  %3407 = vmatpush3.msra.mxu0 %v5072_v49  ;;  %5699 = vst [vmem:[#allocation51_spill] sm:$0xff] %v5094_v45 }
 0x28d   : > { %v1873_v11 = vmul.f32 %v3635_v60, %v1872_v4  ;;  %2185 = vmatprep.subr.mxu1 %v5076_v47  ;;  %3408 = vmatprep.subr.mxu0 %v5686_v8  ;;  %v5103_v60 = vld [vmem:[#allocation9 + $0xa8] sm:$0xff]  ;;  %v5105_v4 = vld [vmem:[#allocation9 + $0xb8] sm:$0xff] }
 0x28e   : > { %2186 = vmatpush1.msra.mxu1 %v5082_v57  ;;  %3409 = vmatpush3.msra.mxu0 %v5084_v24  ;;  %5701 = vst [vmem:[#allocation53_spill] sm:$0xff] %v5103_v60  ;;  %5702 = vst [vmem:[#allocation54_spill] sm:$0xff] %v5105_v4 }
 0x28f   : > { %v1874_v49 = vadd.f32 %v1873_v11, %v4743_v17  ;;  %2187 = vmatprep.subr.mxu1 %v5088_v1  ;;  %3410 = vmatprep.subr.mxu0 %v5686_v8  ;;  %v5113_v17 = vld [vmem:[#allocation9 + $0x90] sm:$0xff]  ;;  %v5115_v11 = vld [vmem:[#allocation9 + $0xa0] sm:$0xff] }
 0x290   : > { %2188 = vmatpush1.msra.mxu1 %v5092_v63  ;;  %3411 = vmatpush3.msra.mxu0 %v5094_v45  ;;  %5704 = vst [vmem:[#allocation56_spill] sm:$0xff] %v5113_v17  ;;  %5705 = vst [vmem:[#allocation70_spill] sm:$0xff] %v5115_v11  ;;  %v5119_v1 = vld [vmem:[#allocation9 + $0x80] sm:$0xff]  ;;  %v5123_v45 = vld [vmem:[#allocation9 + $0x78] sm:$0xff] }
 0x291   : > { %3638 = vtanh.f32 %v1874_v49  ;;  %2189 = vmatprep.subr.mxu1 %v5098_v43  ;;  %3412 = vmatprep.subr.mxu0 %v5686_v8  ;;  %5706 = vst [vmem:[#allocation71_spill] sm:$0xff] %v5119_v1  ;;  %5707 = vst [vmem:[#allocation72_spill] sm:$0xff] %v5123_v45  ;;  %v5125_v49 = vld [vmem:[#allocation9 + $0x88] sm:$0xff]  ;;  %v5159_v63 = vld [vmem:[#allocation9 + $0x20] sm:$0xff] }
 0x292   : > { %2190 = vmatpush1.msra.mxu1 %v5103_v60  ;;  %3413 = vmatpush3.msra.mxu0 %v5105_v4  ;;  %5708 = vst [vmem:[#allocation73_spill] sm:$0xff] %v5125_v49  ;;  %v5129_v43 = vld [vmem:[#allocation9 + $0x68] sm:$0xff]  ;;  %v5133_v4 = vld [vmem:[#allocation9 + $0x60] sm:$0xff]  ;;  %v5135_v60 = vld [vmem:[#allocation9 + $0x70] sm:$0xff] }
 0x293   : > { %2191 = vmatprep.subr.mxu1 %v5109_v28  ;;  %3414 = vmatprep.subr.mxu0 %v5686_v8  ;;  %5709 = vst [vmem:[#allocation74_spill] sm:$0xff] %v5129_v43  ;;  %5710 = vst [vmem:[#allocation75_spill] sm:$0xff] %v5133_v4  ;;  %v5139_v28 = vld [vmem:[#allocation9 + $0x50] sm:$0xff] }
 0x294   : > { %2192 = vmatpush1.msra.mxu1 %v5113_v17  ;;  %3415 = vmatpush3.msra.mxu0 %v5115_v11  ;;  %5711 = vst [vmem:[#allocation76_spill] sm:$0xff] %v5135_v60  ;;  %5712 = vst [vmem:[#allocation77_spill] sm:$0xff] %v5139_v28  ;;  %v5143_v11 = vld [vmem:[#allocation9 + $0x48] sm:$0xff]  ;;  %v5145_v17 = vld [vmem:[#allocation9 + $0x58] sm:$0xff] }
 0x295   : > { %2193 = vmatprep.subr.mxu1 %v5119_v1  ;;  %3416 = vmatprep.subr.mxu0 %v5686_v8  ;;  %5713 = vst [vmem:[#allocation78_spill] sm:$0xff] %v5143_v11  ;;  %5714 = vst [vmem:[#allocation79_spill] sm:$0xff] %v5145_v17  ;;  %v5149_v1 = vld [vmem:[#allocation9 + $0x38] sm:$0xff] }
 0x296   : > { %2194 = vmatpush1.msra.mxu1 %v5123_v45  ;;  %3417 = vmatpush3.msra.mxu0 %v5125_v49  ;;  %5715 = vst [vmem:[#allocation80_spill] sm:$0xff] %v5149_v1  ;;  %v5153_v49 = vld [vmem:[#allocation9 + $0x30] sm:$0xff]  ;;  %v5155_v45 = vld [vmem:[#allocation9 + $0x40] sm:$0xff]  ;;  %5718 = vst [vmem:[#allocation83_spill] sm:$0xff] %v5159_v63 }
 0x297   : > { %2195 = vmatprep.subr.mxu1 %v5129_v43  ;;  %3418 = vmatprep.subr.mxu0 %v5686_v8  ;;  %5716 = vst [vmem:[#allocation81_spill] sm:$0xff] %v5153_v49  ;;  %5717 = vst [vmem:[#allocation82_spill] sm:$0xff] %v5155_v45  ;;  %v3637_v43 = vpop.eup %3636 }
 0x298   : > { %2196 = vmatpush1.msra.mxu1 %v5133_v4  ;;  %3419 = vmatpush3.msra.mxu0 %v5135_v60  ;;  %v5163_v60 = vld [vmem:[#allocation9 + $0x18] sm:$0xff]  ;;  %v5169_v4 = vld [vmem:[#allocation9 + $0x8] sm:$0xff]  ;;  %v1876_v24 = vsub.f32 1.0, %v3637_v43 }
 0x299   : > { %2197 = vmatprep.subr.mxu1 %v5139_v28  ;;  %3420 = vmatprep.subr.mxu0 %v5686_v8  ;;  %v5165_v28 = vld [vmem:[#allocation9 + $0x28] sm:$0xff] }
 0x29a   : > { %2198 = vmatpush1.msra.mxu1 %v5143_v11  ;;  %3421 = vmatpush3.msra.mxu0 %v5145_v17  ;;  %v5173_v17 = vld [vmem:[#allocation9] sm:$0xff]  ;;  %v5177_v11 = vld [vmem:[#allocation9 + $0x10] sm:$0xff] }
 0x29b   : > { %2199 = vmatprep.subr.mxu1 %v5149_v1  ;;  %3422 = vmatprep.subr.mxu0 %v5686_v8 }
 0x29c   : > { %2200 = vmatpush1.msra.mxu1 %v5153_v49  ;;  %3423 = vmatpush3.msra.mxu0 %v5155_v45  ;;  %v1878_v45 = vmul.f32 %v3637_v43, %v4838_v39 }
 0x29d   : > { %2201 = vmatprep.subr.mxu1 %v5159_v63  ;;  %3424 = vmatprep.subr.mxu0 %v5686_v8  ;;  %v1883_v63 = vpop.permute.xlu1 %1882 }
 0x29e   : > { %v3639_v1 = vpop.eup %3638  ;;  %2202 = vmatpush1.msra.mxu1 %v5163_v60  ;;  %3425 = vmatpush3.msra.mxu0 %v5165_v28  ;;  %vm1884_vm13 = vcmp.eq.s32.totalorder %v1883_v63, 1 }
 0x29f   : > { %v1877_v49 = vmul.f32 %v3639_v1, %v1876_v24  ;;  %2203 = vmatprep.subr.mxu1 %v5169_v4  ;;  %3426 = vmatprep.subr.mxu0 %v5686_v8 }
 0x2a0   : > { %2204 = vmatpush1.msra.mxu1 %v5173_v17  ;;  %2237 = vmatprep.mubr.f32.mxu1 %v5686_v8 }
 0x2a1   : > { %v1879_v57 = vadd.f32 %v1878_v45, %v1877_v49  ;;  %3427 = vmatpush3.msra.mxu0 %v5177_v11  ;;  %3428 = vmatprep.mubr.msk.f32.mxu0 %vm3865_vm2, %v5686_v8 }
 0x2a2   : > { %2411 = vmatprep.subr.mxu1 %v4846_v40  ;;  %3431 = vmatprep.subr.mxu0 %v5686_v8  ;;  %v5720_v40 = vld [vmem:[#allocation29_spill] sm:$0xff] }
 0x2a3   : > { %v5190_v43 = vsel %vm1884_vm13, %v1879_v57, %v4838_v39  ;;  %v1889_v24 = vsel %vm1884_vm13, %v1879_v57, 0.0  ;;  %v5719_v39 = vld [vmem:[#allocation57_spill] sm:$0xff] }
 0x2a4   : > { %3019 = vst [vmem:[%s4100_s19 + $0x10] sm:$0xff] %v1889_v24  ;;  %2238 = vmatmul.mubr.f32.vlgmr.msra.gmra.mxu1 %v5190_v43  ;;  %3429 = vmatmul.mubr.f32.vlgmr.msra.gmra.mxu0 %v5190_v43 }
 0x2a5   : > { %2412 = vmatpush1.msra.mxu1 %v4849_v21  ;;  %3432 = vmatpush3.msra.mxu0 %v4851_v19  ;;  %v5721_v21 = vld [vmem:[#allocation30_spill] sm:$0xff]  ;;  %v5722_v19 = vld [vmem:[#allocation31_spill] sm:$0xff] }
 0x2a6   : > { %2413 = vmatprep.subr.mxu1 %v4855_v22  ;;  %3433 = vmatprep.subr.mxu0 %v5686_v8  ;;  %v5723_v22 = vld [vmem:[#allocation32_spill] sm:$0xff] }
 0x2a7   : > { %2414 = vmatpush1.msra.mxu1 %v4859_v42  ;;  %3434 = vmatpush3.msra.mxu0 %v4861_v44  ;;  %v5724_v42 = vld [vmem:[#allocation33_spill] sm:$0xff]  ;;  %v5725_v44 = vld [vmem:[#allocation34_spill] sm:$0xff] }
 0x2a8   : > { %2415 = vmatprep.subr.mxu1 %v4865_v6  ;;  %3435 = vmatprep.subr.mxu0 %v5686_v8  ;;  %v5726_v6 = vld [vmem:[#allocation35_spill] sm:$0xff] }
 0x2a9   : > { %2416 = vmatpush1.msra.mxu1 %v4869_v51  ;;  %3436 = vmatpush3.msra.mxu0 %v4871_v53  ;;  %v5727_v51 = vld [vmem:[#allocation36_spill] sm:$0xff]  ;;  %v5728_v53 = vld [vmem:[#allocation37_spill] sm:$0xff] }
 0x2aa   : > { %2417 = vmatprep.subr.mxu1 %v4875_v58  ;;  %3437 = vmatprep.subr.mxu0 %v5686_v8  ;;  %v5729_v58 = vld [vmem:[#allocation38_spill] sm:$0xff] }
 0x2ab   : > { %2418 = vmatpush1.msra.mxu1 %v4879_v13  ;;  %3438 = vmatpush3.msra.mxu0 %v4881_v61 }
 0x2ac   : > { %2419 = vmatprep.subr.mxu1 %v4885_v50  ;;  %3439 = vmatprep.subr.mxu0 %v5686_v8  ;;  %v5730_v50 = vld [vmem:[#allocation64_spill] sm:$0xff] }
 0x2ad   : > { %2420 = vmatpush1.msra.mxu1 %v4889_v55  ;;  %3440 = vmatpush3.msra.mxu0 %v4891_v15 }
 0x2ae   : > { %2421 = vmatprep.subr.mxu1 %v4895_v32  ;;  %3441 = vmatprep.subr.mxu0 %v5686_v8 }
 0x2af   : > { %2422 = vmatpush1.msra.mxu1 %v4899_v30  ;;  %3442 = vmatpush3.msra.mxu0 %v4901_v16  ;;  %v5731_v16 = vld [vmem:[#allocation65_spill] sm:$0xff] }
 0x2b0   : > { %2423 = vmatprep.subr.mxu1 %v4905_v2  ;;  %3443 = vmatprep.subr.mxu0 %v5686_v8 }
 0x2b1   : > { %2424 = vmatpush1.msra.mxu1 %v4909_v18  ;;  %3444 = vmatpush3.msra.mxu0 %v4911_v25 }
 0x2b2   : > { %2425 = vmatprep.subr.mxu1 %v4915_v46  ;;  %3445 = vmatprep.subr.mxu0 %v5686_v8 }
 0x2b3   : > { %2426 = vmatpush1.msra.mxu1 %v4919_v27  ;;  %3446 = vmatpush3.msra.mxu0 %v4921_v52 }
 0x2b4   : > { %2427 = vmatprep.subr.mxu1 %v4925_v31  ;;  %3447 = vmatprep.subr.mxu0 %v5686_v8 }
 0x2b5   : > { %2428 = vmatpush1.msra.mxu1 %v4929_v23  ;;  %3448 = vmatpush3.msra.mxu0 %v4931_v33 }
 0x2b6   : > { %2429 = vmatprep.subr.mxu1 %v4935_v62  ;;  %3449 = vmatprep.subr.mxu0 %v5686_v8 }
 0x2b7   : > { %2430 = vmatpush1.msra.mxu1 %v4939_v0  ;;  %3450 = vmatpush3.msra.mxu0 %v4941_v34  ;;  %v5732_v34 = vld [vmem:[#allocation62_spill] sm:$0xff] }
 0x2b8   : > { %2431 = vmatprep.subr.mxu1 %v4945_v3  ;;  %3451 = vmatprep.subr.mxu0 %v5686_v8 }
 0x2b9   : > { %2432 = vmatpush1.msra.mxu1 %v4949_v36  ;;  %3452 = vmatpush3.msra.mxu0 %v4951_v14  ;;  %v5733_v36 = vld [vmem:[#allocation59_spill] sm:$0xff] }
 0x2ba   : > { %2433 = vmatprep.subr.mxu1 %v4955_v5  ;;  %3453 = vmatprep.subr.mxu0 %v5686_v8 }
 0x2bb   : > { %2434 = vmatpush1.msra.mxu1 %v4959_v37  ;;  %3454 = vmatpush3.msra.mxu0 %v4961_v20 }
 0x2bc   : > { %2435 = vmatprep.subr.mxu1 %v4965_v9  ;;  %3455 = vmatprep.subr.mxu0 %v5686_v8  ;;  %v5734_v9 = vld [vmem:[#allocation63_spill] sm:$0xff] }
 0x2bd   : > { %2436 = vmatpush1.msra.mxu1 %v4969_v10  ;;  %3456 = vmatpush3.msra.mxu0 %v5719_v39 }
 0x2be   : > { %2437 = vmatprep.subr.mxu1 %v5720_v40  ;;  %3457 = vmatprep.subr.mxu0 %v5686_v8  ;;  %v2122_v40 = vpop.permute.xlu0 %2121 }
 0x2bf   : > { %2438 = vmatpush1.msra.mxu1 %v5721_v21  ;;  %3458 = vmatpush3.msra.mxu0 %v5722_v19  ;;  %vm2123_vm14 = vcmp.eq.s32.totalorder %v2122_v40, 1 }
 0x2c0   : > { %2439 = vmatprep.subr.mxu1 %v5723_v22  ;;  %3459 = vmatprep.subr.mxu0 %v5686_v8 }
 0x2c1   : > { %2440 = vmatpush1.msra.mxu1 %v5724_v42  ;;  %3460 = vmatpush3.msra.mxu0 %v5725_v44  ;;  %v5738_v42 = vld [vmem:[#allocation42_spill] sm:$0xff] }
 0x2c2   : > { %2441 = vmatprep.subr.mxu1 %v5726_v6  ;;  %3461 = vmatprep.subr.mxu0 %v5686_v8 }
 0x2c3   : > { %2442 = vmatpush1.msra.mxu1 %v5727_v51  ;;  %2475 = vmatprep.mubr.f32.mxu1 %v5686_v8  ;;  %v5743_v51 = vld [vmem:[#allocation46_spill] sm:$0xff] }
 0x2c4   : > { %3462 = vmatpush3.msra.mxu0 %v5728_v53  ;;  %3463 = vmatprep.mubr.msk.f32.mxu0 %vm3865_vm2, %v5686_v8 }
 0x2c5   : > { %2628 = vmatprep.subr.mxu1 %v5729_v58  ;;  %3466 = vmatprep.subr.mxu0 %v5686_v8  ;;  %v5744_v58 = vld [vmem:[#allocation47_spill] sm:$0xff] }
 0x341   : > { %v2022_v13 = vpop.f32.mrf.mxu1  ;;  %v2093_v61 = vpop.f32.mrf.mxu0 }
 0x342   : > { %v2097_v55 = vadd.f32 %v2022_v13, %v5730_v50  ;;  %v2111_v31 = vadd.f32 %v4748_v26, %v2093_v61  ;;  %v5745_v13 = vld [vmem:[#allocation48_spill] sm:$0xff] }
 0x343   : > { %v3395_v15 = vpop.f32.mrf.mxu0  ;;  %v2024_v30 = vpop.f32.mrf.mxu1  ;;  %v5746_v61 = vld [vmem:[#allocation68_spill] sm:$0xff] }
 0x344   : > { %v3020_v32 = vmul.f32 -1.442695, %v2097_v55  ;;  %v2104_v2 = vadd.f32 %v2024_v30, %v5731_v16  ;;  %v5747_v55 = vld [vmem:[#allocation49_spill] sm:$0xff]  ;;  %v5748_v15 = vld [vmem:[#allocation50_spill] sm:$0xff]  ;;  %v5753_v16 = vld [vmem:[#allocation55_spill] sm:$0xff] }
 0x345   : > { %v5752_v30 = vld [vmem:[#allocation54_spill] sm:$0xff] }
 0x346   : > { %3640 = vpow2.f32 %v3020_v32  ;;  %v3021_v18 = vmul.f32 -1.442695, %v2104_v2  ;;  %v5750_v32 = vld [vmem:[#allocation52_spill] sm:$0xff] }
 0x347   : > { %v5754_v2 = vld [vmem:[#allocation56_spill] sm:$0xff] }
 0x348   : > { %3642 = vpow2.f32 %v3021_v18  ;;  %v5755_v18 = vld [vmem:[#allocation70_spill] sm:$0xff] }
 0x353   : > { %v3641_v25 = vpop.eup %3640 }
 0x354   : > { %v2101_v46 = vadd.f32 1.0, %v3641_v25  ;;  %v5756_v25 = vld [vmem:[#allocation71_spill] sm:$0xff] }
 0x355   : > { %v3643_v27 = vpop.eup %3642 }
 0x356   : > { %3644 = vrcp.f32 %v2101_v46  ;;  %v2108_v52 = vadd.f32 1.0, %v3643_v27  ;;  %v5757_v46 = vld [vmem:[#allocation72_spill] sm:$0xff]  ;;  %v5758_v27 = vld [vmem:[#allocation73_spill] sm:$0xff] }
 0x358   : > { %3646 = vrcp.f32 %v2108_v52  ;;  %v5759_v52 = vld [vmem:[#allocation74_spill] sm:$0xff] }
 0x363   : > { %v3645_v23 = vpop.eup %3644 }
 0x364   : > { %v2112_v33 = vmul.f32 %v3645_v23, %v2111_v31  ;;  %v2239_v62 = vpop.f32.mrf.mxu1  ;;  %v2310_v0 = vpop.f32.mrf.mxu0  ;;  %v5760_v31 = vld [vmem:[#allocation75_spill] sm:$0xff]  ;;  %v5761_v23 = vld [vmem:[#allocation76_spill] sm:$0xff] }
 0x365   : > { %v2314_v3 = vadd.f32 %v2239_v62, %v5732_v34  ;;  %v3647_v45 = vpop.eup %3646  ;;  %v5764_v34 = vld [vmem:[#allocation79_spill] sm:$0xff] }
 0x366   : > { %v2113_v14 = vadd.f32 %v2112_v33, %v5733_v36  ;;  %v3430_v5 = vpop.f32.mrf.mxu0  ;;  %v2241_v20 = vpop.f32.mrf.mxu1  ;;  %v2115_v26 = vsub.f32 1.0, %v3647_v45  ;;  %v2117_v24 = vmul.f32 %v3647_v45, %v5023_v54  ;;  %v5762_v33 = vld [vmem:[#allocation77_spill] sm:$0xff] }
 0x367   : > { %v3022_v37 = vmul.f32 -1.442695, %v2314_v3  ;;  %v2321_v10 = vadd.f32 %v2241_v20, %v5734_v9  ;;  %v5765_v3 = vld [vmem:[#allocation80_spill] sm:$0xff]  ;;  %v5766_v36 = vld [vmem:[#allocation81_spill] sm:$0xff]  ;;  %v5768_v5 = vld [vmem:[#allocation83_spill] sm:$0xff] }
 0x368   : > { %3648 = vtanh.f32 %v2113_v14  ;;  %v5767_v14 = vld [vmem:[#allocation82_spill] sm:$0xff] }
 0x369   : > { %3650 = vpow2.f32 %v3022_v37  ;;  %v3023_v1 = vmul.f32 -1.442695, %v2321_v10 }
 0x36b   : > { %3652 = vpow2.f32 %v3023_v1  ;;  %v2339_v1 = vpop.permute.xlu1 %2338 }
 0x36c   : > { %vm2340_vm15 = vcmp.eq.s32.totalorder %v2339_v1, 1 }
 0x375   : > { %v3649_v57 = vpop.eup %3648 }
 0x376   : > { %v3651_v63 = vpop.eup %3650  ;;  %v2116_v49 = vmul.f32 %v3649_v57, %v2115_v26  ;;  %v5769_v26 = vld [vmem:[#allocation66_spill] sm:$0xff] }
 0x377   : > { %v2318_v39 = vadd.f32 1.0, %v3651_v63 }
 0x378   : > { %v2118_v21 = vadd.f32 %v2117_v24, %v2116_v49 }
 0x379   : > { %3654 = vrcp.f32 %v2318_v39 }
 0x37a   : > { %v5270_v19 = vsel %vm2123_vm14, %v2118_v21, %v5023_v54  ;;  %v2342_v22 = vsel %vm2123_vm14, %v2118_v21, 0.0  ;;  %v3653_v54 = vpop.eup %3652 }
 0x37b   : > { %3024 = vst [vmem:[%s4098_s12 + $0x10] sm:$0xff] %v2342_v22  ;;  %2476 = vmatmul.mubr.f32.vlgmr.msra.gmra.mxu1 %v5270_v19  ;;  %3464 = vmatmul.mubr.f32.vlgmr.msra.gmra.mxu0 %v5270_v19 }
 0x37c   : > { %2629 = vmatpush1.msra.mxu1 %v5018_v38  ;;  %3467 = vmatpush3.msra.mxu0 %v5020_v35  ;;  %v5735_v38 = vld [vmem:[#allocation39_spill] sm:$0xff]  ;;  %v5736_v35 = vld [vmem:[#allocation40_spill] sm:$0xff] }
 0x37d   : > { %2630 = vmatprep.subr.mxu1 %v5025_v41  ;;  %3468 = vmatprep.subr.mxu0 %v5686_v8  ;;  %v5737_v41 = vld [vmem:[#allocation41_spill] sm:$0xff] }
 0x37e   : > { %2631 = vmatpush1.msra.mxu1 %v5030_v29  ;;  %3469 = vmatpush3.msra.mxu0 %v5032_v7  ;;  %v2325_v29 = vadd.f32 1.0, %v3653_v54  ;;  %v5739_v7 = vld [vmem:[#allocation43_spill] sm:$0xff]  ;;  %v3680_v54 = vld [vmem:[%s5477_s9] ss:$0 sm:$0xff] }
 0x37f   : > { %2632 = vmatprep.subr.mxu1 %v5036_v56  ;;  %3470 = vmatprep.subr.mxu0 %v5686_v8  ;;  %v5740_v56 = vld [vmem:[#allocation44_spill] sm:$0xff] }
 0x380   : > { %2633 = vmatpush1.msra.mxu1 %v5040_v12  ;;  %3471 = vmatpush3.msra.mxu0 %v5042_v59  ;;  %v5741_v12 = vld [vmem:[#allocation28_spill] sm:$0xff]  ;;  %v5742_v59 = vld [vmem:[#allocation45_spill] sm:$0xff]  ;;  %3656 = vrcp.f32 %v2325_v29 }
 0x381   : > { %2634 = vmatprep.subr.mxu1 %v5735_v38  ;;  %3472 = vmatprep.subr.mxu0 %v5686_v8  ;;  %v2328_v44 = vadd.f32 %v5741_v12, %v2310_v0  ;;  %v5763_v0 = vld [vmem:[#allocation78_spill] sm:$0xff] }
 0x382   : > { %2635 = vmatpush1.msra.mxu1 %v5736_v35  ;;  %3473 = vmatpush3.msra.mxu0 %v5737_v41  ;;  %v5772_v12 = vld [vmem:[#allocation58_spill] sm:$0xff] }
 0x383   : > { %2636 = vmatprep.subr.mxu1 %v5738_v42  ;;  %3474 = vmatprep.subr.mxu0 %v5686_v8 }
 0x384   : > { %2637 = vmatpush1.msra.mxu1 %v5739_v7  ;;  %3475 = vmatpush3.msra.mxu0 %v5740_v56  ;;  %v5771_v7 = vld [vmem:[#allocation60_spill] sm:$0xff] }
 0x385   : > { %2638 = vmatprep.subr.mxu1 %v5742_v59  ;;  %3476 = vmatprep.subr.mxu0 %v5686_v8 }
 0x386   : > { %v3655_v6 = vpop.eup %3654  ;;  %2639 = vmatpush1.msra.mxu1 %v5070_v48  ;;  %3477 = vmatpush3.msra.mxu0 %v5743_v51  ;;  %v5749_v48 = vld [vmem:[#allocation51_spill] sm:$0xff] }
 0x387   : > { %v2329_v53 = vmul.f32 %v3655_v6, %v2328_v44  ;;  %2640 = vmatprep.subr.mxu1 %v5076_v47  ;;  %3478 = vmatprep.subr.mxu0 %v5686_v8  ;;  %v5751_v47 = vld [vmem:[#allocation53_spill] sm:$0xff] }
 0x388   : > { %2641 = vmatpush1.msra.mxu1 %v5744_v58  ;;  %3479 = vmatpush3.msra.mxu0 %v5745_v13 }
 0x389   : > { %v2330_v50 = vadd.f32 %v2329_v53, %v5746_v61  ;;  %2642 = vmatprep.subr.mxu1 %v5747_v55  ;;  %3480 = vmatprep.subr.mxu0 %v5686_v8  ;;  %v5773_v53 = vld [vmem:[#allocation61_spill] sm:$0xff] }
 0x38a   : > { %2643 = vmatpush1.msra.mxu1 %v5748_v15  ;;  %3481 = vmatpush3.msra.mxu0 %v5749_v48  ;;  %v2577_v48 = vpop.permute.xlu0 %2576 }
 0x38b   : > { %3658 = vtanh.f32 %v2330_v50  ;;  %2644 = vmatprep.subr.mxu1 %v5750_v32  ;;  %3482 = vmatprep.subr.mxu0 %v5686_v8  ;;  %vm2578_vm0 = vcmp.eq.s32.totalorder %v2577_v48, 1 }
 0x38c   : > { %2645 = vmatpush1.msra.mxu1 %v5751_v47  ;;  %3483 = vmatpush3.msra.mxu0 %v5752_v30 }
 0x38d   : > { %2646 = vmatprep.subr.mxu1 %v5753_v16  ;;  %3484 = vmatprep.subr.mxu0 %v5686_v8  ;;  %v3657_v62 = vpop.eup %3656 }
 0x38e   : > { %2647 = vmatpush1.msra.mxu1 %v5754_v2  ;;  %3485 = vmatpush3.msra.mxu0 %v5755_v18  ;;  %v2332_v37 = vsub.f32 1.0, %v3657_v62  ;;  %v2334_v10 = vmul.f32 %v3657_v62, %v5190_v43 }
 0x38f   : > { %2648 = vmatprep.subr.mxu1 %v5756_v25  ;;  %3486 = vmatprep.subr.mxu0 %v5686_v8 }
 0x390   : > { %2649 = vmatpush1.msra.mxu1 %v5757_v46  ;;  %3487 = vmatpush3.msra.mxu0 %v5758_v27 }
 0x391   : > { %2650 = vmatprep.subr.mxu1 %v5759_v52  ;;  %3488 = vmatprep.subr.mxu0 %v5686_v8 }
 0x392   : > { %2651 = vmatpush1.msra.mxu1 %v5760_v31  ;;  %3489 = vmatpush3.msra.mxu0 %v5761_v23 }
 0x393   : > { %2652 = vmatprep.subr.mxu1 %v5762_v33  ;;  %3490 = vmatprep.subr.mxu0 %v5686_v8 }
 0x394   : > { %2653 = vmatpush1.msra.mxu1 %v5763_v0  ;;  %3491 = vmatpush3.msra.mxu0 %v5764_v34 }
 0x395   : > { %2654 = vmatprep.subr.mxu1 %v5765_v3  ;;  %3492 = vmatprep.subr.mxu0 %v5686_v8 }
 0x396   : > { %2655 = vmatpush1.msra.mxu1 %v5766_v36  ;;  %3493 = vmatpush3.msra.mxu0 %v5767_v14 }
 0x397   : > { %2656 = vmatprep.subr.mxu1 %v5768_v5  ;;  %3494 = vmatprep.subr.mxu0 %v5686_v8 }
 0x398   : > { %v3659_v20 = vpop.eup %3658  ;;  %2657 = vmatpush1.msra.mxu1 %v5163_v60  ;;  %3495 = vmatpush3.msra.mxu0 %v5165_v28 }
 0x399   : > { %2658 = vmatprep.subr.mxu1 %v5169_v4  ;;  %3496 = vmatprep.subr.mxu0 %v5686_v8  ;;  %v2333_v9 = vmul.f32 %v3659_v20, %v2332_v37 }
 0x39a   : > { %2659 = vmatpush1.msra.mxu1 %v5173_v17  ;;  %2692 = vmatprep.mubr.f32.mxu1 %v5686_v8 }
 0x39b   : > { %3497 = vmatpush3.msra.mxu0 %v5177_v11  ;;  %3498 = vmatprep.mubr.msk.f32.mxu0 %vm3865_vm2, %v5686_v8  ;;  %v2335_v60 = vadd.f32 %v2334_v10, %v2333_v9  ;;  %v5770_v8 = vld [vmem:[#allocation67_spill] sm:$0xff] }
 0x39d   : > { %v5344_v28 = vsel %vm2340_vm15, %v2335_v60, %v5190_v43  ;;  %v2345_v4 = vsel %vm2340_vm15, %v2335_v60, 0.0 }
 0x39e   : > { %3025 = vst [vmem:[%s4100_s19 + $0x8] sm:$0xff] %v2345_v4  ;;  %2693 = vmatmul.mubr.f32.vlgmr.msra.gmra.mxu1 %v5344_v28  ;;  %3499 = vmatmul.mubr.f32.vlgmr.msra.gmra.mxu0 %v5344_v28 }
 0x43b   : > { %v2477_v17 = vpop.f32.mrf.mxu1  ;;  %v2548_v45 = vpop.f32.mrf.mxu0 }
 0x43c   : > { %v2552_v57 = vadd.f32 %v2477_v17, %v5769_v26  ;;  %v2566_v38 = vadd.f32 %v3680_v54, %v2548_v45 }
 0x43d   : > { %v3465_v63 = vpop.f32.mrf.mxu0  ;;  %v2479_v49 = vpop.f32.mrf.mxu1 }
 0x43e   : > { %v3026_v11 = vmul.f32 -1.442695, %v2552_v57  ;;  %v2559_v24 = vadd.f32 %v2479_v49, %v5770_v8 }
 0x440   : > { %3660 = vpow2.f32 %v3026_v11  ;;  %v3027_v39 = vmul.f32 -1.442695, %v2559_v24 }
 0x442   : > { %3662 = vpow2.f32 %v3027_v39 }
 0x44d   : > { %v3661_v43 = vpop.eup %3660 }
 0x44e   : > { %v2556_v40 = vadd.f32 1.0, %v3661_v43 }
 0x44f   : > { %v3663_v21 = vpop.eup %3662 }
 0x450   : > { %3664 = vrcp.f32 %v2556_v40  ;;  %v2563_v22 = vadd.f32 1.0, %v3663_v21 }
 0x452   : > { %3666 = vrcp.f32 %v2563_v22 }
 0x45d   : > { %v3665_v35 = vpop.eup %3664 }
 0x45e   : > { %v2567_v41 = vmul.f32 %v3665_v35, %v2566_v38  ;;  %v2694_v29 = vpop.f32.mrf.mxu1  ;;  %v2765_v42 = vpop.f32.mrf.mxu0 }
 0x45f   : > { %v2769_v56 = vadd.f32 %v2694_v29, %v5771_v7  ;;  %v3667_v61 = vpop.eup %3666 }
 0x460   : > { %v2568_v44 = vadd.f32 %v2567_v41, %v5772_v12  ;;  %v3500_v59 = vpop.f32.mrf.mxu0  ;;  %v2696_v51 = vpop.f32.mrf.mxu1  ;;  %v2570_v50 = vsub.f32 1.0, %v3667_v61  ;;  %v2572_v47 = vmul.f32 %v3667_v61, %v5270_v19 }
 0x461   : > { %v3028_v6 = vmul.f32 -1.442695, %v2769_v56  ;;  %v2776_v58 = vadd.f32 %v2696_v51, %v5773_v53 }
 0x462   : > { %3668 = vtanh.f32 %v2568_v44 }
 0x463   : > { %3670 = vpow2.f32 %v3028_v6  ;;  %v3029_v13 = vmul.f32 -1.442695, %v2776_v58 }
 0x465   : > { %3672 = vpow2.f32 %v3029_v13 }
 0x46f   : > { %v3669_v55 = vpop.eup %3668 }
 0x470   : > { %v3671_v15 = vpop.eup %3670  ;;  %v2571_v32 = vmul.f32 %v3669_v55, %v2570_v50 }
 0x471   : > { %v2773_v30 = vadd.f32 1.0, %v3671_v15 }
 0x472   : > { %v2573_v16 = vadd.f32 %v2572_v47, %v2571_v32 }
 0x473   : > { %3674 = vrcp.f32 %v2773_v30 }
 0x474   : > { %v2579_v2 = vsel %vm2578_vm0, %v2573_v16, %v5270_v19  ;;  %v2797_v18 = vsel %vm2578_vm0, %v2573_v16, 0.0 }
 0x475   : > { %2802 = vst [vmem:[#allocation4] sm:$0xff] %v2579_v2  ;;  %3030 = vst [vmem:[%s4098_s12 + $0x18] sm:$0xff] %v2797_v18 }
 0x476   : > { %3747 = shalt.err (!%p3744_p10)
}
 0x477   : > { %s3748_s12 = scalar_lea.hbm %s5363_s20, 512  ;;  %s3752_s21 = scalar_lea.hbm %s5479_s11, 1024 }
 0x478   : > { %p3749_p1 = scmp.ne.s32.totalorder %s5363_s20, %s3748_s12  ;;  %p3753_p11 = scmp.lt.s32.totalorder %s5363_s20, %s5479_s11 }
 0x479   : > { %p3754_p3 = scmp.lt.s32.totalorder %s3752_s21, %s3748_s12 }
 0x47a   : > { %p3750_p4 = pnand %p3749_p1, %p3994_p5 }
 0x47b   : > { %p3755_p7 = por %p3754_p3, %p3753_p11 }
 0x47c   : > { %p3751_p6 = pneg %p3750_p4 }
 0x47e   : > { %p3756_p13 = pnand %p3755_p7, %p3751_p6 }
 0x480   : > { %3759 = shalt.err (!%p3756_p13)
}
 0x481   : > { %s3867_s15 = smov 128   ;;  %s3868_s8 = smov 8   ;;  %v3673_v19 = vpop.eup %3672  ;;  %v3681_v46 = vld [vmem:[%s5478_s10] ss:$0 sm:$0xff]  ;;  %v5775_v23 = vld [vmem:[#allocation69_spill] sm:$0xff]  ;;  %v2794_v3 = vpop.permute.xlu1 %2793 }
 0x482   : > { %3509 = dma.vmem_to_hbm [thread:$0]  (%p3994_p5), %s5365_s23, 512, %s5363_s20, %s5371_s24, %s3867_s15, %s3867_s15, %s3868_s8   ;;  %v2780_v25 = vadd.f32 1.0, %v3673_v19  ;;  %v2783_v27 = vadd.f32 %v3681_v46, %v2765_v42  ;;  %v3675_v52 = vpop.eup %3674  ;;  %vm2795_vm1 = vcmp.eq.s32.totalorder %v2794_v3, 1 }
 0x483   : > { %s5776_s17 = ssub.s32 1, %s3971_s28  ;;  %s2840_s20 = sshll.u32 %s4100_s19, 4  ;;  %s5410_s20 = int_to_ptr.vmem [resolvable:$true] %s2840_s20 }
 0x484   : > { %v2784_v31 = vmul.f32 %v3675_v52, %v2783_v27  ;;  %3676 = vrcp.f32 %v2780_v25  ;;  %s3040_s23 = sshll.u32 %s5776_s17, 9  ;;  %s5777_s27 = sld [smem:[#allocation86_spill]] }
 0x485   : > { %s5779_s28 = sand.u32 1, %s3836_s22   ;;  %s3760_s21 = scalar_lea.vmem %s5410_s20, 512 }
 0x486   : > { %v2785_v33 = vadd.f32 %v2784_v31, %v5775_v23  ;;  %s2810_s18 = scalar_lea.sflag [#allocation13], %s5779_s28  ;;  %p3761_p5 = scmp.ne.s32.totalorder %s5410_s20, %s3760_s21 }
 0x487   : > { %p5780_p2 = scmp.ne.s32.totalorder %s5589_s16, 0  ;;  %s3869_s14 = smov [#allocation12]  }
 0x488   : > { %3678 = vtanh.f32 %v2785_v33  ;;  %s3764_s7 = sshll.u32 %s3869_s14, 4  ;;  %s3765_s7 = int_to_ptr.vmem [resolvable:$false] %s3764_s7 }
 0x489   : > { %p3762_p8 = pnand %p3761_p5, %p5780_p2  ;;  %s3766_s26 = scalar_lea.vmem %s3765_s7, 1024 }
 0x48a   : > { %s5778_s12 = smov %s5777_s27  ;;  %s5408_s30 = scalar_lea.hbm %s5777_s27, %s3040_s23 }
 0x48b   : > { %p3763_p9 = pneg %p3762_p8  ;;  %p3767_p0 = scmp.lt.s32.totalorder %s5410_s20, %s3765_s7 }
 0x48c   : > { %p3768_p12 = scmp.lt.s32.totalorder %s3766_s26, %s3760_s21 }
 0x48e   : > { %p3769_p10 = por %p3768_p12, %p3767_p0 }
 0x490   : > { %p3770_p1 = pnand %p3769_p10, %p3763_p9 }
 0x491   : > { %v3677_v62 = vpop.eup %3676 }
 0x492   : > { %v2787_v0 = vsub.f32 1.0, %v3677_v62  ;;  %v2789_v14 = vmul.f32 %v3677_v62, %v5344_v28 }
 0x495   : > { %v3679_v34 = vpop.eup %3678 }
 0x496   : > { %v2788_v36 = vmul.f32 %v3679_v34, %v2787_v0 }
 0x498   : > { %v2790_v5 = vadd.f32 %v2789_v14, %v2788_v36 }
 0x49a   : > { %v2796_v37 = vsel %vm2795_vm1, %v2790_v5, %v5344_v28  ;;  %v2800_v20 = vsel %vm2795_vm1, %v2790_v5, 0.0 }
 0x49b   : > { %2803 = vst [vmem:[#allocation5] sm:$0xff] %v2796_v37  ;;  %2801 = vst [vmem:[%s4100_s19] sm:$0xff] %v2800_v20 }
 0x49c   : > { %3773 = shalt.err (!%p3770_p1)
}
 0x49d   : > { %s3774_s19 = scalar_lea.hbm %s5408_s30, 512  ;;  %s3778_s23 = scalar_lea.hbm %s5778_s12, 1024 }
 0x49e   : > { %p3775_p4 = scmp.ne.s32.totalorder %s5408_s30, %s3774_s19  ;;  %p3779_p3 = scmp.lt.s32.totalorder %s5408_s30, %s5778_s12 }
 0x49f   : > { %p3780_p7 = scmp.lt.s32.totalorder %s3778_s23, %s3774_s19 }
 0x4a0   : > { %p3776_p6 = pnand %p3775_p4, %p5780_p2 }
 0x4a1   : > { %p3781_p13 = por %p3780_p7, %p3779_p3 }
 0x4a2   : > { %p3777_p11 = pneg %p3776_p6 }
 0x4a4   : > { %p3782_p5 = pnand %p3781_p13, %p3777_p11 }
 0x4a6   : > { %3785 = shalt.err (!%p3782_p5)
}
 0x4a7   : > { %3510 = dma.vmem_to_hbm [thread:$0]  (%p5780_p2), %s5410_s20, 512, %s5408_s30, %s2810_s18, %s3867_s15, %s3867_s15, %s3868_s8  }
 0x4a8 PF: > { %s5781_s27 = sld [smem:[#allocation22_spill]] }
 0x4a9   : > { %s5782_s28 = sld [smem:[#allocation20_spill]] }
 0x4aa   : > { %s5783_s21 = sld [smem:[#allocation25_spill]] }
 0x4ae   : > { %p3531_p8 = scmp.ge.s32.totalorder %s5781_s27, 2 }
 0x4af   : > { %s2855_s14 = sand.u32 1, %s5782_s28  }
 0x4b0   : > { %p5784_p9 = scmp.ne.s32.totalorder %s5783_s21, 0  ;;  %s2856_s7 = scalar_lea.sflag [#allocation8], %s2855_s14 }
 0x4b2   : > { %p3521_p0 = pnand %p3531_p8, %p5784_p9 }
 0x4b4   : > { %p3522_p12 = pneg %p3521_p0 }
 0x4b6   : > { %3823 = dma.done.wait (%p3522_p12), %s2856_s7, 512  }
 0x4b7   : > { %3825 = vsyncadd (%p3522_p12), %s2856_s7, 4294966784  ;;  %s5785_s26 = sld [smem:[#allocation18_spill]] }
 0x4b8   : > { %s5786_s16 = sld [smem:[#allocation27_spill]] }
 0x4bd   : > { %s2864_s19 = sand.u32 1, %s5785_s26  }
 0x4be   : > { %p5787_p10 = scmp.ne.s32.totalorder %s5786_s16, 0  ;;  %s2865_s13 = scalar_lea.sflag [#allocation13], %s2864_s19 }
 0x4c0   : > { %p3524_p1 = pnand %p3531_p8, %p5787_p10 }
 0x4c2   : > { %p3525_p4 = pneg %p3524_p1 }
 0x4c4   : > { %3827 = dma.done.wait (%p3525_p4), %s2865_s13, 512  }
 0x4c5   : > { %3829 = vsyncadd (%p3525_p4), %s2865_s13, 4294966784  ;;  %s5788_s27 = sld [smem:[#allocation23_spill]]  ;;  %s5793_s21 = smov %s3836_s22 }
 0x4c6   : > { %s5789_s15 = sld [smem:[#allocation19_spill]]  ;;  %s5795_s24 = smov %s3848_s25 }
 0x4c7   : > { %s5790_s23 = sld [smem:[#allocation26_spill]] }
 0x4c8   : > { %s5791_s8 = sld [smem:[#allocation21_spill]] }
 0x4c9   : > { %s5792_s26 = sld [smem:[#allocation24_spill]] }
 0x4cb   : > { %p28_p2 = scmp.ge.s32.totalorder %s5788_s27, 4  }
 0x4cc   : > { %s5794_s22 = smov %s5789_s15 }
 0x4cd   :  { %30 = sbr.rel (!%p28_p2) target bundleno = 13 (0xd), region = 146 }
 0x4ce   : > { %s5796_s25 = smov %s5791_s8 }
 0x4d2   :  { %2870 = vsyncpa [#allocation7], 1 }
 0x4d3   :  { %2872 = vsyncpa [#allocation7 + $0x1], 1 }
 0x4d4   :  { %2873 = vsyncpa [#allocation10], 1 }
 0x4d5   :  { %2874 = vsyncpa [#allocation8], 1 }
 0x4d6   :  { %2876 = vsyncpa [#allocation8 + $0x1], 1 }
 0x4d7   :  { %2877 = vsyncpa [#allocation13], 1 }
 0x4d8   :  { %2879 = vsyncpa [#allocation13 + $0x1], 1 }

</bundles_post_ra>
